<compile_context>
chip_gen: v7x
topology: tpu7x:2x2x1
jax: 0.10.0
libtpu: 0.0.40
codegen_flags: <defaults>
</compile_context>

<pallas_src>
import functools
import math

import jax
import jax.numpy as jnp
from jax.experimental import pallas as pl
from jax.experimental.pallas import tpu as pltpu

LRELU_SLOPE = 0.2
GAIN = 1.4
INV_SQRT2 = 1.0 / math.sqrt(2.0)


def _leaky_relu(x):
    # LeakyReLU(0.2): max(x, 0.2*x) is exact for slope in (0, 1).
    return jnp.maximum(x, LRELU_SLOPE * x)


def _im2col_3x3(x_sp, H, W, C):
    """x_sp: (H, W, C) value -> (H*W, 9*C) patches, zero padding=1.

    Column order is (dy, dx, cin); the matching weight layout is produced
    host-side by _flatten_conv3x3_weight.
    """
    dt = x_sp.dtype
    zrow = jnp.zeros((1, W, C), dt)
    xp = jnp.concatenate([zrow, x_sp, zrow], axis=0)           # (H+2, W, C)
    zcol = jnp.zeros((H + 2, 1, C), dt)
    xp = jnp.concatenate([zcol, xp, zcol], axis=1)             # (H+2, W+2, C)
    slabs = []
    for dy in range(3):
        for dx in range(3):
            slabs.append(xp[dy:dy + H, dx:dx + W, :])          # (H, W, C)
    patches = jnp.concatenate(slabs, axis=-1)                  # (H, W, 9*C)
    return patches.reshape(H * W, 9 * C)


def resblock_kernel(x_ref, w1_ref, w2_ref, ws_ref, pool_ref, out_ref,
                    *, H, W, Cin, Cout):
    Ho, Wo = H // 2, W // 2
    x = x_ref[0]                                               # (H, W, Cin)

    # ---- conv1: 3x3, pad=1, no bias (EqualConv2d scale folded into w1) ----
    p1 = _im2col_3x3(x, H, W, Cin)                             # (H*W, 9*Cin)
    y1 = jnp.dot(p1, w1_ref[...], preferred_element_type=jnp.float32)
    y1 = _leaky_relu(y1) * GAIN                                # (H*W, Cin)

    # ---- fused 2x2 avg-pool of y1 (main path) and of x (skip path): one matmul ----
    x2d = x.reshape(H * W, Cin)
    stacked = jnp.concatenate([y1, x2d], axis=-1)              # (H*W, 2*Cin)
    pooled = jnp.dot(pool_ref[...], stacked,
                     preferred_element_type=jnp.float32)       # (Ho*Wo, 2*Cin)
    y1_pool = pooled[:, 0:Cin]                                 # avgpool(conv1 out)
    x_pool = pooled[:, Cin:2 * Cin]                            # avgpool(input)

    # ---- conv2: 3x3, pad=1, Cin -> Cout, no bias ----
    p2 = _im2col_3x3(y1_pool.reshape(Ho, Wo, Cin), Ho, Wo, Cin)  # (Ho*Wo, 9*Cin)
    y2 = jnp.dot(p2, w2_ref[...], preferred_element_type=jnp.float32)
    y2 = _leaky_relu(y2) * GAIN                                # (Ho*Wo, Cout)

    # ---- skip: avgpool(x) -> 1x1 conv -> *1.4 ----
    sk = jnp.dot(x_pool, ws_ref[...], preferred_element_type=jnp.float32) * GAIN

    out = (y2 + sk) * INV_SQRT2                                # (Ho*Wo, Cout)
    out_ref[0] = out.reshape(Ho, Wo, Cout)


def _pool_matrix(H, W):
    """(Ho*Wo, H*W) matrix implementing 2x2 average pooling on row-major (H, W)."""
    Ho, Wo = H // 2, W // 2
    oy = jnp.arange(H) // 2
    ox = jnp.arange(W) // 2
    r_to_o = (oy[:, None] * Wo + ox[None, :]).reshape(-1)      # (H*W,)
    onehot = (jnp.arange(Ho * Wo)[:, None] == r_to_o[None, :])
    return onehot.astype(jnp.float32) * 0.25


def _flatten_conv3x3_weight(w):
    # torch layout (Cout, Cin, 3, 3) -> (9*Cin, Cout) in (dy, dx, cin) column order,
    # with the EqualConv2d scale 1/sqrt(Cin*9) folded in.
    Cout, Cin, _, _ = w.shape
    scale = 1.0 / math.sqrt(Cin * 9)
    return jnp.transpose(w * scale, (2, 3, 1, 0)).reshape(9 * Cin, Cout)


def _flatten_conv1x1_weight(w):
    Cout, Cin, _, _ = w.shape
    scale = 1.0 / math.sqrt(Cin)
    return jnp.transpose((w * scale).reshape(Cout, Cin), (1, 0))   # (Cin, Cout)


def init_resblock_params(key, in_channel, out_channel):
    # EqualConv2d: weight ~ randn(out, in, k, k); bias is disabled on every conv
    # in this ResBlock (activate=True branches and the skip branch).
    k1, k2, k3 = jax.random.split(key, 3)
    return {
        "w1": jax.random.normal(k1, (in_channel, in_channel, 3, 3), jnp.float32),
        "w2": jax.random.normal(k2, (out_channel, in_channel, 3, 3), jnp.float32),
        "wskip": jax.random.normal(k3, (out_channel, in_channel, 1, 1), jnp.float32),
    }


def resblock_forward(x_nchw, params):
    B, Cin, H, W = x_nchw.shape
    Cout = params["w2"].shape[0]
    assert H % 2 == 0 and W % 2 == 0, "AvgPool2d(2,2) requires even spatial dims"
    Ho, Wo = H // 2, W // 2

    # Glue: NCHW -> NHWC so channels ride the lane dim inside the kernel.
    x = jnp.transpose(x_nchw, (0, 2, 3, 1)).astype(jnp.float32)

    w1f = _flatten_conv3x3_weight(params["w1"])     # (9*Cin, Cin)
    w2f = _flatten_conv3x3_weight(params["w2"])     # (9*Cin, Cout)
    wsf = _flatten_conv1x1_weight(params["wskip"])  # (Cin, Cout)
    pool = _pool_matrix(H, W)                       # (Ho*Wo, H*W)

    kernel = functools.partial(resblock_kernel, H=H, W=W, Cin=Cin, Cout=Cout)
    out_nhwc = pl.pallas_call(
        kernel,
        out_shape=jax.ShapeDtypeStruct((B, Ho, Wo, Cout), jnp.float32),
        grid_spec=pltpu.PrefetchScalarGridSpec(
            num_scalar_prefetch=0,
            grid=(B,),
            in_specs=[
                pl.BlockSpec((1, H, W, Cin), lambda b: (b, 0, 0, 0)),
                pl.BlockSpec(w1f.shape, lambda b: (0, 0)),
                pl.BlockSpec(w2f.shape, lambda b: (0, 0)),
                pl.BlockSpec(wsf.shape, lambda b: (0, 0)),
                pl.BlockSpec(pool.shape, lambda b: (0, 0)),
            ],
            out_specs=pl.BlockSpec((1, Ho, Wo, Cout), lambda b: (b, 0, 0, 0)),
        ),
        compiler_params=pltpu.CompilerParams(
            dimension_semantics=("parallel",)),   # batch axis splits across TCs on v7x
    )(x, w1f, w2f, wsf, pool)

    return jnp.transpose(out_nhwc, (0, 3, 1, 2))   # back to NCHW


def resblock_reference(x, params):
    """Pure-JAX reference matching the PyTorch module (NCHW)."""
    w1, w2, ws = params["w1"], params["w2"], params["wskip"]
    Cin = w1.shape[1]

    def conv(z, w, scale, pad):
        return jax.lax.conv_general_dilated(
            z, w * scale, window_strides=(1, 1),
            padding=((pad, pad), (pad, pad)),
            dimension_numbers=("NCHW", "OIHW", "NCHW"),
            precision=jax.lax.Precision.HIGHEST)

    def avgpool(z):
        return jax.lax.reduce_window(z, 0.0, jax.lax.add,
                                     (1, 1, 2, 2), (1, 1, 2, 2), "VALID") * 0.25

    def lrelu(z):
        return jnp.where(z >= 0, z, LRELU_SLOPE * z)

    out = lrelu(conv(x, w1, 1.0 / math.sqrt(Cin * 9), 1)) * GAIN
    out = lrelu(conv(avgpool(out), w2, 1.0 / math.sqrt(Cin * 9), 1)) * GAIN
    skip = conv(avgpool(x), ws, 1.0 / math.sqrt(Cin), 0) * GAIN
    return (out + skip) * INV_SQRT2


if __name__ == "__main__":
    # Small shapes consistent with the module: NCHW input, downsampled NCHW output.
    B, Cin, Cout, H, W = 2, 4, 8, 16, 16

    key = jax.random.PRNGKey(0)
    k_param, k_x = jax.random.split(key)

    params = init_resblock_params(k_param, Cin, Cout)
    x = jax.random.normal(k_x, (B, Cin, H, W), jnp.float32)

    out = resblock_forward(x, params)
    out = jax.block_until_ready(out)

    assert out.shape == (B, Cout, H // 2, W // 2), out.shape
    assert bool(jnp.isfinite(out).all())

    ref = resblock_reference(x, params)
    max_err = float(jnp.max(jnp.abs(out - ref)))
    assert max_err < 5e-2, f"max abs error vs reference: {max_err}"

    print("KERNEL_OK")
</pallas_src>

<mosaic_0001>
module attributes {stable_mosaic.version = 11 : i64} {
  func.func @resblock_kernel(%arg0: i32, %arg1: memref<1x16x16x4xf32, #tpu.memory_space<vmem>>, %arg2: memref<36x4xf32, #tpu.memory_space<vmem>>, %arg3: memref<36x8xf32, #tpu.memory_space<vmem>>, %arg4: memref<4x8xf32, #tpu.memory_space<vmem>>, %arg5: memref<64x256xf32, #tpu.memory_space<vmem>>, %arg6: memref<1x8x8x8xf32, #tpu.memory_space<vmem>>) attributes {dimension_semantics = [#tpu.dimension_semantics<parallel>], iteration_bounds = array<i64: 2>, scalar_prefetch = 0 : i64, scratch_operands = 0 : i64, tpu.core_type = #tpu.core_type<tc>, window_params = [{transform_indices = @transform_0, window_bounds = array<i64: 1, 16, 16, 4>}, {pipeline_mode = #tpu.pipeline_mode<synchronous>, transform_indices = @transform_1, window_bounds = array<i64: 36, 4>}, {pipeline_mode = #tpu.pipeline_mode<synchronous>, transform_indices = @transform_2, window_bounds = array<i64: 36, 8>}, {pipeline_mode = #tpu.pipeline_mode<synchronous>, transform_indices = @transform_3, window_bounds = array<i64: 4, 8>}, {pipeline_mode = #tpu.pipeline_mode<synchronous>, transform_indices = @transform_4, window_bounds = array<i64: 64, 256>}, {transform_indices = @transform_5, window_bounds = array<i64: 1, 8, 8, 8>}]} {
    %c0 = arith.constant 0 : index
    %c0_0 = arith.constant 0 : index
    %c0_1 = arith.constant 0 : index
    %c0_2 = arith.constant 0 : index
    %0 = vector.load %arg1[%c0, %c0_0, %c0_1, %c0_2] : memref<1x16x16x4xf32, #tpu.memory_space<vmem>>, vector<1x16x16x4xf32>
    %1 = vector.shape_cast %0 : vector<1x16x16x4xf32> to vector<16x16x4xf32>
    %cst = arith.constant 0.000000e+00 : f32
    %2 = vector.broadcast %cst : f32 to vector<1x16x4xf32>
    %3 = tpu.concatenate %2, %1, %2 in 0 : vector<1x16x4xf32>, vector<16x16x4xf32>, vector<1x16x4xf32> -> vector<18x16x4xf32>
    %cst_3 = arith.constant 0.000000e+00 : f32
    %4 = vector.broadcast %cst_3 : f32 to vector<18x1x4xf32>
    %5 = tpu.concatenate %4, %3, %4 in 1 : vector<18x1x4xf32>, vector<18x16x4xf32>, vector<18x1x4xf32> -> vector<18x18x4xf32>
    %6 = vector.extract_strided_slice %5 {offsets = [0, 0, 0], sizes = [16, 16, 4], strides = [1, 1, 1]} : vector<18x18x4xf32> to vector<16x16x4xf32>
    %7 = vector.extract_strided_slice %5 {offsets = [0, 1, 0], sizes = [16, 16, 4], strides = [1, 1, 1]} : vector<18x18x4xf32> to vector<16x16x4xf32>
    %8 = vector.extract_strided_slice %5 {offsets = [0, 2, 0], sizes = [16, 16, 4], strides = [1, 1, 1]} : vector<18x18x4xf32> to vector<16x16x4xf32>
    %9 = vector.extract_strided_slice %5 {offsets = [1, 0, 0], sizes = [16, 16, 4], strides = [1, 1, 1]} : vector<18x18x4xf32> to vector<16x16x4xf32>
    %10 = vector.extract_strided_slice %5 {offsets = [1, 1, 0], sizes = [16, 16, 4], strides = [1, 1, 1]} : vector<18x18x4xf32> to vector<16x16x4xf32>
    %11 = vector.extract_strided_slice %5 {offsets = [1, 2, 0], sizes = [16, 16, 4], strides = [1, 1, 1]} : vector<18x18x4xf32> to vector<16x16x4xf32>
    %12 = vector.extract_strided_slice %5 {offsets = [2, 0, 0], sizes = [16, 16, 4], strides = [1, 1, 1]} : vector<18x18x4xf32> to vector<16x16x4xf32>
    %13 = vector.extract_strided_slice %5 {offsets = [2, 1, 0], sizes = [16, 16, 4], strides = [1, 1, 1]} : vector<18x18x4xf32> to vector<16x16x4xf32>
    %14 = vector.extract_strided_slice %5 {offsets = [2, 2, 0], sizes = [16, 16, 4], strides = [1, 1, 1]} : vector<18x18x4xf32> to vector<16x16x4xf32>
    %15 = tpu.concatenate %6, %7, %8, %9, %10, %11, %12, %13, %14 in 2 : vector<16x16x4xf32>, vector<16x16x4xf32>, vector<16x16x4xf32>, vector<16x16x4xf32>, vector<16x16x4xf32>, vector<16x16x4xf32>, vector<16x16x4xf32>, vector<16x16x4xf32>, vector<16x16x4xf32> -> vector<16x16x36xf32>
    %16 = vector.shape_cast %15 : vector<16x16x36xf32> to vector<256x36xf32>
    %c0_4 = arith.constant 0 : index
    %c0_5 = arith.constant 0 : index
    %17 = vector.load %arg2[%c0_4, %c0_5] : memref<36x4xf32, #tpu.memory_space<vmem>>, vector<36x4xf32>
    %cst_6 = arith.constant dense<0.000000e+00> : vector<256x4xf32>
    %18 = tpu.matmul %16, %17, %cst_6 {dimension_numbers = #tpu.dot_dimension_numbers<[1], [0], [0], [1], [0, 0, 1, 1], [], []>} : vector<256x36xf32>, vector<36x4xf32>, vector<256x4xf32> -> vector<256x4xf32>
    %cst_7 = arith.constant 2.000000e-01 : f32
    %19 = vector.broadcast %cst_7 : f32 to vector<256x4xf32>
    %20 = arith.mulf %19, %18 : vector<256x4xf32>
    %21 = arith.maximumf %18, %20 : vector<256x4xf32>
    %cst_8 = arith.constant 1.400000e+00 : f32
    %22 = vector.broadcast %cst_8 : f32 to vector<256x4xf32>
    %23 = arith.mulf %21, %22 : vector<256x4xf32>
    %24 = vector.shape_cast %1 : vector<16x16x4xf32> to vector<256x4xf32>
    %25 = tpu.concatenate %23, %24 in 1 : vector<256x4xf32>, vector<256x4xf32> -> vector<256x8xf32>
    %c0_9 = arith.constant 0 : index
    %c0_10 = arith.constant 0 : index
    %26 = vector.load %arg5[%c0_9, %c0_10] : memref<64x256xf32, #tpu.memory_space<vmem>>, vector<64x256xf32>
    %cst_11 = arith.constant dense<0.000000e+00> : vector<64x8xf32>
    %27 = tpu.matmul %26, %25, %cst_11 {dimension_numbers = #tpu.dot_dimension_numbers<[1], [0], [0], [1], [0, 0, 1, 1], [], []>} : vector<64x256xf32>, vector<256x8xf32>, vector<64x8xf32> -> vector<64x8xf32>
    %28 = vector.extract_strided_slice %27 {offsets = [0, 0], sizes = [64, 4], strides = [1, 1]} : vector<64x8xf32> to vector<64x4xf32>
    %29 = vector.extract_strided_slice %27 {offsets = [0, 4], sizes = [64, 4], strides = [1, 1]} : vector<64x8xf32> to vector<64x4xf32>
    %30 = vector.shape_cast %28 : vector<64x4xf32> to vector<8x8x4xf32>
    %cst_12 = arith.constant 0.000000e+00 : f32
    %31 = vector.broadcast %cst_12 : f32 to vector<1x8x4xf32>
    %32 = tpu.concatenate %31, %30, %31 in 0 : vector<1x8x4xf32>, vector<8x8x4xf32>, vector<1x8x4xf32> -> vector<10x8x4xf32>
    %cst_13 = arith.constant 0.000000e+00 : f32
    %33 = vector.broadcast %cst_13 : f32 to vector<10x1x4xf32>
    %34 = tpu.concatenate %33, %32, %33 in 1 : vector<10x1x4xf32>, vector<10x8x4xf32>, vector<10x1x4xf32> -> vector<10x10x4xf32>
    %35 = vector.extract_strided_slice %34 {offsets = [0, 0, 0], sizes = [8, 8, 4], strides = [1, 1, 1]} : vector<10x10x4xf32> to vector<8x8x4xf32>
    %36 = vector.extract_strided_slice %34 {offsets = [0, 1, 0], sizes = [8, 8, 4], strides = [1, 1, 1]} : vector<10x10x4xf32> to vector<8x8x4xf32>
    %37 = vector.extract_strided_slice %34 {offsets = [0, 2, 0], sizes = [8, 8, 4], strides = [1, 1, 1]} : vector<10x10x4xf32> to vector<8x8x4xf32>
    %38 = vector.extract_strided_slice %34 {offsets = [1, 0, 0], sizes = [8, 8, 4], strides = [1, 1, 1]} : vector<10x10x4xf32> to vector<8x8x4xf32>
    %39 = vector.extract_strided_slice %34 {offsets = [1, 1, 0], sizes = [8, 8, 4], strides = [1, 1, 1]} : vector<10x10x4xf32> to vector<8x8x4xf32>
    %40 = vector.extract_strided_slice %34 {offsets = [1, 2, 0], sizes = [8, 8, 4], strides = [1, 1, 1]} : vector<10x10x4xf32> to vector<8x8x4xf32>
    %41 = vector.extract_strided_slice %34 {offsets = [2, 0, 0], sizes = [8, 8, 4], strides = [1, 1, 1]} : vector<10x10x4xf32> to vector<8x8x4xf32>
    %42 = vector.extract_strided_slice %34 {offsets = [2, 1, 0], sizes = [8, 8, 4], strides = [1, 1, 1]} : vector<10x10x4xf32> to vector<8x8x4xf32>
    %43 = vector.extract_strided_slice %34 {offsets = [2, 2, 0], sizes = [8, 8, 4], strides = [1, 1, 1]} : vector<10x10x4xf32> to vector<8x8x4xf32>
    %44 = tpu.concatenate %35, %36, %37, %38, %39, %40, %41, %42, %43 in 2 : vector<8x8x4xf32>, vector<8x8x4xf32>, vector<8x8x4xf32>, vector<8x8x4xf32>, vector<8x8x4xf32>, vector<8x8x4xf32>, vector<8x8x4xf32>, vector<8x8x4xf32>, vector<8x8x4xf32> -> vector<8x8x36xf32>
    %45 = vector.shape_cast %44 : vector<8x8x36xf32> to vector<64x36xf32>
    %c0_14 = arith.constant 0 : index
    %c0_15 = arith.constant 0 : index
    %46 = vector.load %arg3[%c0_14, %c0_15] : memref<36x8xf32, #tpu.memory_space<vmem>>, vector<36x8xf32>
    %cst_16 = arith.constant dense<0.000000e+00> : vector<64x8xf32>
    %47 = tpu.matmul %45, %46, %cst_16 {dimension_numbers = #tpu.dot_dimension_numbers<[1], [0], [0], [1], [0, 0, 1, 1], [], []>} : vector<64x36xf32>, vector<36x8xf32>, vector<64x8xf32> -> vector<64x8xf32>
    %cst_17 = arith.constant 2.000000e-01 : f32
    %48 = vector.broadcast %cst_17 : f32 to vector<64x8xf32>
    %49 = arith.mulf %48, %47 : vector<64x8xf32>
    %50 = arith.maximumf %47, %49 : vector<64x8xf32>
    %cst_18 = arith.constant 1.400000e+00 : f32
    %51 = vector.broadcast %cst_18 : f32 to vector<64x8xf32>
    %52 = arith.mulf %50, %51 : vector<64x8xf32>
    %c0_19 = arith.constant 0 : index
    %c0_20 = arith.constant 0 : index
    %53 = vector.load %arg4[%c0_19, %c0_20] : memref<4x8xf32, #tpu.memory_space<vmem>>, vector<4x8xf32>
    %cst_21 = arith.constant dense<0.000000e+00> : vector<64x8xf32>
    %54 = tpu.matmul %29, %53, %cst_21 {dimension_numbers = #tpu.dot_dimension_numbers<[1], [0], [0], [1], [0, 0, 1, 1], [], []>} : vector<64x4xf32>, vector<4x8xf32>, vector<64x8xf32> -> vector<64x8xf32>
    %cst_22 = arith.constant 1.400000e+00 : f32
    %55 = vector.broadcast %cst_22 : f32 to vector<64x8xf32>
    %56 = arith.mulf %54, %55 : vector<64x8xf32>
    %57 = arith.addf %52, %56 : vector<64x8xf32>
    %cst_23 = arith.constant 0.707106769 : f32
    %58 = vector.broadcast %cst_23 : f32 to vector<64x8xf32>
    %59 = arith.mulf %57, %58 : vector<64x8xf32>
    %60 = vector.shape_cast %59 : vector<64x8xf32> to vector<8x8x8xf32>
    %c0_24 = arith.constant 0 : index
    %c0_25 = arith.constant 0 : index
    %c0_26 = arith.constant 0 : index
    %c0_27 = arith.constant 0 : index
    %61 = vector.load %arg6[%c0_24, %c0_25, %c0_26, %c0_27] : memref<1x8x8x8xf32, #tpu.memory_space<vmem>>, vector<1x8x8x8xf32>
    %62 = vector.shape_cast %61 : vector<1x8x8x8xf32> to vector<8x8x8xf32>
    %63 = vector.shape_cast %60 : vector<8x8x8xf32> to vector<1x8x8x8xf32>
    tpu.vector_store %arg6[%c0_24, %c0_25, %c0_26, %c0_27], %63 {strides = array<i32>} : memref<1x8x8x8xf32, #tpu.memory_space<vmem>>, vector<1x8x8x8xf32>,
    return
  }
  func.func @transform_0(%arg0: i32) -> (i32, i32, i32, i32) {
    %c0_i32 = arith.constant 0 : i32
    %c0_i32_0 = arith.constant 0 : i32
    %c0_i32_1 = arith.constant 0 : i32
    %c0_i32_2 = arith.constant 0 : i32
    return %arg0, %c0_i32, %c0_i32_0, %c0_i32_1 : i32, i32, i32, i32
  }
  func.func @transform_1(%arg0: i32) -> (i32, i32) {
    %c0_i32 = arith.constant 0 : i32
    %c0_i32_0 = arith.constant 0 : i32
    %c0_i32_1 = arith.constant 0 : i32
    return %c0_i32, %c0_i32_0 : i32, i32
  }
  func.func @transform_2(%arg0: i32) -> (i32, i32) {
    %c0_i32 = arith.constant 0 : i32
    %c0_i32_0 = arith.constant 0 : i32
    %c0_i32_1 = arith.constant 0 : i32
    return %c0_i32, %c0_i32_0 : i32, i32
  }
  func.func @transform_3(%arg0: i32) -> (i32, i32) {
    %c0_i32 = arith.constant 0 : i32
    %c0_i32_0 = arith.constant 0 : i32
    %c0_i32_1 = arith.constant 0 : i32
    return %c0_i32, %c0_i32_0 : i32, i32
  }
  func.func @transform_4(%arg0: i32) -> (i32, i32) {
    %c0_i32 = arith.constant 0 : i32
    %c0_i32_0 = arith.constant 0 : i32
    %c0_i32_1 = arith.constant 0 : i32
    return %c0_i32, %c0_i32_0 : i32, i32
  }
  func.func @transform_5(%arg0: i32) -> (i32, i32, i32, i32) {
    %c0_i32 = arith.constant 0 : i32
    %c0_i32_0 = arith.constant 0 : i32
    %c0_i32_1 = arith.constant 0 : i32
    %c0_i32_2 = arith.constant 0 : i32
    return %arg0, %c0_i32, %c0_i32_0, %c0_i32_1 : i32, i32, i32, i32
  }
}

</mosaic_0001>

<bundles_post_ra>
// kernel: tpu_custom_call.1
= control target key start
LH: loop header
LB: loop body
LE: loop exit
PB: predicated region body
PF: predicated region fallthrough
CT: control target
= control target key end

     0   :  { %10 = vsyncpa [#allocation3], 0  ;;  %s5710_s0 = inlined_call_operand.vmem [shape: f32[2,16,16,4], index: 0, kind: input, shape index: {}]   ;;  %s5711_s1 = inlined_call_operand.vmem [shape: f32[36,4], index: 1, kind: input, shape index: {}]   ;;  %s5712_s2 = inlined_call_operand.vmem [shape: f32[36,8], index: 2, kind: input, shape index: {}]   ;;  %s5713_s3 = inlined_call_operand.vmem [shape: f32[4,8], index: 3, kind: input, shape index: {}]   ;;  %s5714_s4 = inlined_call_operand.vmem [shape: f32[64,256], index: 4, kind: input, shape index: {}]   ;;  %s5715_s5 = inlined_call_operand.hbm [shape: f32[2,8,8,8], index: 5, kind: output, shape index: {}]  }
   0x1   :  { %12 = vsyncpa [#allocation3 + $0x1], 0  ;;  %s3708_s18 = smov 0   ;;  %s3710_s19 = smov 0  }
   0x2   :  { %s3712_s20 = smov 0   ;;  %s3714_s21 = smov 0  }
   0x3 LB: > { %s3729_s22 = sadd.s32 4294967295, %s3664_s21   ;;  %s3105_s23 = sadd.s32 4294967294, %s3664_s21   ;;  %s3664_s21 = sphi %s3714_s21, %s5748_s21   ;;  %s3660_s20 = sphi %s3712_s20, %s5747_s20   ;;  %s3656_s19 = sphi %s3710_s19, %s5746_s19   ;;  %s3652_s18 = sphi %s3708_s18, %s5745_s18  }
   0x4   : > { %s3733_s24 = sadd.s32 1, %s3664_s21   ;;  %s135_s25 = sadd.s32 1, %s3660_s20 }
   0x5   : > { %s132_s26 = ssub.s32 %s3664_s21, %s3733_s24  ;;  %p145_p0 = scmp.ne.s32.totalorder %s3660_s20, %s3656_s19 }
   0x6   : > { %p133_p1 = scmp.eq.s32.totalorder %s132_s26, 0  ;;  %p146_p2 = scmp.eq.s32.totalorder %s3729_s22, 1 }
   0x7   : > { %p151_p3 = scmp.ne.s32.totalorder %s3656_s19, %s3652_s18  ;;  %p152_p4 = scmp.eq.s32.totalorder %s3105_s23, 1 }
   0x8   : > { %s3744_s27 = scalar_select %p133_p1, %s3660_s20, %s135_s25  }
   0x9   : > { %p3746_p5 = por %p146_p2, %p145_p0  ;;  %p3750_p6 = por %p152_p4, %p151_p3 }
   0xa   : > { %p3108_p7 = scmp.ge.s32.totalorder %s3664_s21, 1  ;;  %p190_p8 = scmp.lt.s32.totalorder %s3664_s21, 3 }
   0xc   : > { %p191_p9 = pnand %p3108_p7, %p190_p8 }
   0xe   : > { %194 = sbr.rel (%p191_p9) target bundleno = 1577 (0x629), region = 40 }
  0x15   : > { %vm288_vm0 = vcmask 1040384   ;;  %p218_p10 = scmp.lt.s32.totalorder %s3729_s22, 1  ;;  %v3666_v0 = vmov 0.0   ;;  %vm454_vm1 = vcmask 1046528   ;;  %vm631_vm2 = vcmask 1045504   ;;  %s3667_s10 = smov 4  }
  0x16   : > { %v3757_v1 = vrot.slane %v3666_v0, 7  ;;  %s3668_s11 = smov 12   ;;  %s3669_s12 = smov 8   ;;  %v1660_v39 = vld [vmem:[%s5711_s1] sm:$0xff]  ;;  %v1661_v40 = vld [vmem:[%s5711_s1 + $0x8] sm:$0xff]  ;;  %v1662_v44 = vld [vmem:[%s5711_s1 + $0x10] sm:$0xff] }
  0x17   : > { %s219_s30 = scalar_select %p218_p10, %s3729_s22, 1  ;;  %v3379_v41 = vpack.c.bf16 %v1661_v40, %v1660_v39  ;;  %v1663_v45 = vld [vmem:[%s5711_s1 + $0x18] sm:$0xff]  ;;  %v1664_v52 = vld [vmem:[%s5711_s1 + $0x20] sm:$0xf]  ;;  %vm1762_vm3 = vcmask 1043456   ;;  %vm1396_vm4 = vcmask 31744  }
  0x18   : > { %v3762_v2 = vsel %vm288_vm0, 0.0, %v3757_v1  ;;  %v3766_v3 = vsel %vm288_vm0, %v3757_v1, 0.0  ;;  %v456_v4 = vrot.slane %v3757_v1, 1  ;;  %v633_v5 = vrot.slane %v3757_v1, 2  ;;  %s3670_s13 = smov 16   ;;  %s3671_s14 = smov 20  }
  0x19   : > { %5731 = vst [vmem:[#allocation5_spill] sm:$0xff] %v3766_v3  ;;  %v5718_v6 = vrot.slane %v3762_v2, 1  ;;  %v5719_v7 = vrot.slane %v3766_v3, 1  ;;  %v5717_v8 = vrot.slane %v3766_v3, 2  ;;  %s3168_s6 = sshll.u32 %s219_s30, 8  ;;  %v5716_v9 = vrot.slane %v3762_v2, 2  ;;  %3380 = vmatprep.subr.bf16.mxu0 %v3379_v41 }
  0x1a   : > { %s3777_s9 = scalar_lea.vmem %s5710_s0, %s3168_s6  ;;  %s3672_s25 = smov 24   ;;  %3382 = vmatpush3.bf16.msra.mxu0 %v3379_v41  ;;  %v3383_v46 = vpack.c.bf16 %v1663_v45, %v1662_v44  ;;  %vm1429_vm5 = vcmask 64512   ;;  %vm1462_vm6 = vcmask 97280   ;;  %vm1495_vm7 = vcmask 130048  }
  0x1b   : > { %v457_v10 = vsel %vm454_vm1, %v5718_v6, %v456_v4  ;;  %v459_v11 = vsel %vm454_vm1, %v456_v4, %v5719_v7  ;;  %v223_v12 = vld [vmem:[%s3777_s9] sm:$0xff]  ;;  %v634_v13 = vsel %vm631_vm2, %v5716_v9, %v633_v5  ;;  %v636_v14 = vsel %vm631_vm2, %v633_v5, %v5717_v8  ;;  %v224_v15 = vld [vmem:[%s3777_s9 + $0x8] sm:$0xff]  ;;  %v225_v31 = vld [vmem:[%s3777_s9 + $0x10] sm:$0xff]  ;;  %s5727_s8 = smov 28   ;;  %s5725_s17 = smov 32  }
  0x1c   : > { %v3793_v16 = vpack.i.bf16 %v459_v11, %v457_v10  ;;  %v291_v17 = vrot.slane %v223_v12, 7  ;;  %v3795_v18 = vpack.i.bf16 %v636_v14, %v634_v13  ;;  %v292_v19 = vrot.slane %v224_v15, 7  ;;  %v226_v32 = vld [vmem:[%s3777_s9 + $0x18] sm:$0xff]  ;;  %3384 = vmatprep.subr.bf16.mxu0 %v3383_v46  ;;  %v227_v57 = vld [vmem:[%s3777_s9 + $0x20] sm:$0xff]  ;;  %v228_v58 = vld [vmem:[%s3777_s9 + $0x28] sm:$0xff]  ;;  %s3675_s6 = smov 124  }
  0x1d   : > { %v294_v34 = vrot.slane %v225_v31, 7  ;;  %v295_v35 = vrot.slane %v226_v32, 7  ;;  %v297_v59 = vrot.slane %v227_v57, 7  ;;  %v298_v60 = vrot.slane %v228_v58, 7  ;;  %v231_v40 = vld [vmem:[%s3777_s9 + $0x40] sm:$0xff]  ;;  %v232_v41 = vld [vmem:[%s3777_s9 + $0x48] sm:$0xff] }
  0x1e   : > { %3480 = vrot.lane.b32.xlu0 %v3793_v16, %s3667_s10  ;;  %v3800_v20 = vsel %vm288_vm0, 0.0, %v291_v17  ;;  %v3805_v21 = vsel %vm288_vm0, %v291_v17, %v292_v19  ;;  %v406_v24 = vsel %vm288_vm0, %v292_v19, 0.0  ;;  %3386 = vmatpush3.bf16.msra.mxu0 %v3383_v46  ;;  %v229_v19 = vld [vmem:[%s3777_s9 + $0x30] sm:$0xff]  ;;  %vm1528_vm8 = vcmask 162816   ;;  %s5743_s30 = smov 28   ;;  %s5744_s16 = smov 32  }
  0x1f   : > { %809 = vrot.lane.b32.xlu1 %v3800_v20, %s3668_s11  ;;  %v460_v22 = vrot.slane %v3800_v20, 1  ;;  %v461_v23 = vrot.slane %v3805_v21, 1  ;;  %v463_v26 = vrot.slane %v406_v24, 1  ;;  %v637_v27 = vrot.slane %v3800_v20, 2  ;;  %3293 = vmatprep.subr.msk.mxu0 %vm1762_vm3, %v1664_v52 }
  0x20   : > { %v638_v28 = vrot.slane %v3805_v21, 2  ;;  %v640_v33 = vrot.slane %v406_v24, 2  ;;  %v3829_v37 = vsel %vm288_vm0, 0.0, %v294_v34  ;;  %v3832_v38 = vsel %vm288_vm0, %v294_v34, %v295_v35 }
  0x21   : > { %v462_v25 = vsel %vm454_vm1, %v460_v22, %v461_v23  ;;  %v464_v29 = vsel %vm454_vm1, %v461_v23, %v463_v26  ;;  %v465_v42 = vrot.slane %v3829_v37, 1  ;;  %v466_v43 = vrot.slane %v3832_v38, 1  ;;  %v230_v22 = vld [vmem:[%s3777_s9 + $0x38] sm:$0xff] }
  0x22   : > { %3485 = vrot.lane.b32.xlu0 %v3795_v18, %s3669_s12  ;;  %v639_v30 = vsel %vm631_vm2, %v637_v27, %v638_v28  ;;  %v641_v36 = vsel %vm631_vm2, %v638_v28, %v640_v33  ;;  %v407_v48 = vsel %vm288_vm0, %v295_v35, 0.0  ;;  %v642_v50 = vrot.slane %v3829_v37, 2  ;;  %3294 = vmatpush3.msk.msra.mxu0 %vm1762_vm3, %v1664_v52 }
  0x23   : > { %811 = vrot.lane.b32.xlu1 %v3805_v21, %s3668_s11  ;;  %v467_v47 = vsel %vm454_vm1, %v465_v42, %v466_v43  ;;  %v468_v49 = vrot.slane %v407_v48, 1  ;;  %v643_v51 = vrot.slane %v3832_v38, 2  ;;  %v645_v55 = vrot.slane %v407_v48, 2 }
  0x24   : > { %v3883_v61 = vsel %vm288_vm0, 0.0, %v297_v59  ;;  %v3886_v62 = vsel %vm288_vm0, %v297_v59, %v298_v60  ;;  %v408_v5 = vsel %vm288_vm0, %v298_v60, 0.0  ;;  %v300_v23 = vrot.slane %v229_v19, 7 }
  0x25   : > { %v469_v53 = vsel %vm454_vm1, %v466_v43, %v468_v49  ;;  %v644_v54 = vsel %vm631_vm2, %v642_v50, %v643_v51  ;;  %v646_v56 = vsel %vm631_vm2, %v643_v51, %v645_v55  ;;  %v470_v63 = vrot.slane %v3883_v61, 1 }
  0x26   : > { %911 = vrot.lane.b32.xlu0 %v462_v25, %s3670_s13  ;;  %v471_v0 = vrot.slane %v3886_v62, 1  ;;  %v473_v10 = vrot.slane %v408_v5, 1  ;;  %v647_v11 = vrot.slane %v3883_v61, 2  ;;  %v648_v12 = vrot.slane %v3886_v62, 2 }
  0x27   : > { %539 = vrot.lane.b32.xlu1 %v462_v25, %s3667_s10  ;;  %v650_v15 = vrot.slane %v408_v5, 2  ;;  %v301_v24 = vrot.slane %v230_v22, 7  ;;  %v3920_v25 = vsel %vm288_vm0, 0.0, %v300_v23  ;;  %v303_v42 = vrot.slane %v231_v40, 7  ;;  %v233_v22 = vld [vmem:[%s3777_s9 + $0x50] sm:$0xff] }
  0x28   : > { %v472_v4 = vsel %vm454_vm1, %v470_v63, %v471_v0  ;;  %v474_v13 = vsel %vm454_vm1, %v471_v0, %v473_v10  ;;  %v649_v14 = vsel %vm631_vm2, %v647_v11, %v648_v12  ;;  %v475_v27 = vrot.slane %v3920_v25, 1 }
  0x29   : > { %v651_v17 = vsel %vm631_vm2, %v648_v12, %v650_v15  ;;  %v3923_v26 = vsel %vm288_vm0, %v300_v23, %v301_v24  ;;  %v652_v32 = vrot.slane %v3920_v25, 2  ;;  %v304_v43 = vrot.slane %v232_v41, 7  ;;  %v234_v23 = vld [vmem:[%s3777_s9 + $0x58] sm:$0xff] }
  0x2a   : > { %913 = vrot.lane.b32.xlu0 %v464_v29, %s3670_s13  ;;  %v476_v28 = vrot.slane %v3923_v26, 1  ;;  %v653_v33 = vrot.slane %v3923_v26, 2  ;;  %v3959_v45 = vsel %vm288_vm0, 0.0, %v303_v42  ;;  %vm1561_vm9 = vcmask 195584  }
  0x2b   : > { %1012 = vrot.lane.b32.xlu1 %v639_v30, %s3671_s14  ;;  %v480_v49 = vrot.slane %v3959_v45, 1  ;;  %v657_v58 = vrot.slane %v3959_v45, 2  ;;  %vm1594_vm10 = vcmask 228352   ;;  %vm1627_vm11 = vcmask 261120  }
  0x2c   : > { %v654_v35 = vsel %vm631_vm2, %v652_v32, %v653_v33  ;;  %vm1665_vm12 = vcmask 293888  }
  0x2e   : > { %541 = vrot.lane.b32.xlu0 %v464_v29, %s3667_s10  ;;  %v477_v29 = vsel %vm454_vm1, %v475_v27, %v476_v28 }
  0x2f   : > { %716 = vrot.lane.b32.xlu1 %v639_v30, %s3669_s12  ;;  %v409_v30 = vsel %vm288_vm0, %v301_v24, 0.0 }
  0x30   : > { %v478_v31 = vrot.slane %v409_v30, 1 }
  0x32   : > { %1014 = vrot.lane.b32.xlu0 %v641_v36, %s3671_s14  ;;  %v479_v34 = vsel %vm454_vm1, %v476_v28, %v478_v31  ;;  %v307_v31 = vrot.slane %v234_v23, 7 }
  0x33   : > { %1108 = vrot.lane.b32.xlu1 %v3829_v37, %s3672_s25 }
  0x36   : > { %718 = vrot.lane.b32.xlu0 %v641_v36, %s3669_s12  ;;  %v655_v36 = vrot.slane %v409_v30, 2 }
  0x37   : > { %813 = vrot.lane.b32.xlu1 %v3829_v37, %s3668_s11 }
  0x38   : > { %v656_v39 = vsel %vm631_vm2, %v653_v33, %v655_v36 }
  0x3a   : > { %1110 = vrot.lane.b32.xlu0 %v3832_v38, %s3672_s25 }
  0x3b   : > { %1204 = vrot.lane.b32.xlu1 %v467_v47, %s5727_s8 }
  0x3e   : > { %815 = vrot.lane.b32.xlu0 %v3832_v38, %s3668_s11 }
  0x3f   : > { %915 = vrot.lane.b32.xlu1 %v467_v47, %s3670_s13 }
  0x42   : > { %1206 = vrot.lane.b32.xlu0 %v469_v53, %s5727_s8 }
  0x43   : > { %1300 = vrot.lane.b32.xlu1 %v644_v54, %s5725_s17 }
  0x46   : > { %543 = vrot.lane.b32.xlu0 %v467_v47, %s3667_s10  ;;  %v3962_v47 = vsel %vm288_vm0, %v303_v42, %v304_v43 }
  0x47   : > { %917 = vrot.lane.b32.xlu1 %v469_v53, %s3670_s13  ;;  %v481_v50 = vrot.slane %v3962_v47, 1  ;;  %v658_v59 = vrot.slane %v3962_v47, 2 }
  0x4a   : > { %1016 = vrot.lane.b32.xlu0 %v644_v54, %s3671_s14 }
  0x4b   : > { %1302 = vrot.lane.b32.xlu1 %v646_v56, %s5725_s17 }
  0x4e   : > { %545 = vrot.lane.b32.xlu0 %v469_v53, %s3667_s10  ;;  %v482_v53 = vsel %vm454_vm1, %v480_v49, %v481_v50 }
  0x4f   : > { %720 = vrot.lane.b32.xlu1 %v644_v54, %s3669_s12  ;;  %v410_v54 = vsel %vm288_vm0, %v304_v43, 0.0 }
  0x50   : > { %v660_v11 = vrot.slane %v410_v54, 2 }
  0x52   : > { %1018 = vrot.lane.b32.xlu0 %v646_v56, %s3671_s14 }
  0x53   : > { %1112 = vrot.lane.b32.xlu1 %v3883_v61, %s3672_s25 }
  0x56   : > { %722 = vrot.lane.b32.xlu0 %v646_v56, %s3669_s12  ;;  %v483_v56 = vrot.slane %v410_v54, 1 }
  0x57   : > { %817 = vrot.lane.b32.xlu1 %v3883_v61, %s3668_s11 }
  0x58   : > { %v484_v63 = vsel %vm454_vm1, %v481_v50, %v483_v56 }
  0x5a   : > { %1114 = vrot.lane.b32.xlu0 %v3886_v62, %s3672_s25 }
  0x5b   : > { %1208 = vrot.lane.b32.xlu1 %v472_v4, %s5727_s8 }
  0x5e   : > { %819 = vrot.lane.b32.xlu0 %v3886_v62, %s3668_s11 }
  0x5f   : > { %919 = vrot.lane.b32.xlu1 %v472_v4, %s3670_s13 }
  0x62   : > { %1210 = vrot.lane.b32.xlu0 %v474_v13, %s5727_s8 }
  0x63   : > { %1304 = vrot.lane.b32.xlu1 %v649_v14, %s5725_s17 }
  0x66   : > { %547 = vrot.lane.b32.xlu0 %v472_v4, %s3667_s10  ;;  %v659_v4 = vsel %vm631_vm2, %v657_v58, %v658_v59 }
  0x67   : > { %921 = vrot.lane.b32.xlu1 %v474_v13, %s3670_s13 }
  0x6a   : > { %1020 = vrot.lane.b32.xlu0 %v649_v14, %s3671_s14 }
  0x6b   : > { %1306 = vrot.lane.b32.xlu1 %v651_v17, %s5725_s17 }
  0x6e   : > { %549 = vrot.lane.b32.xlu0 %v474_v13, %s3667_s10 }
  0x6f   : > { %724 = vrot.lane.b32.xlu1 %v649_v14, %s3669_s12 }
  0x72   : > { %1022 = vrot.lane.b32.xlu0 %v651_v17, %s3671_s14 }
  0x73   : > { %1116 = vrot.lane.b32.xlu1 %v3920_v25, %s3672_s25 }
  0x76   : > { %726 = vrot.lane.b32.xlu0 %v651_v17, %s3669_s12  ;;  %v661_v17 = vsel %vm631_vm2, %v658_v59, %v660_v11  ;;  %v411_v59 = vsel %vm288_vm0, %v307_v31, 0.0 }
  0x77   : > { %821 = vrot.lane.b32.xlu1 %v3920_v25, %s3668_s11 }
  0x7a   : > { %1118 = vrot.lane.b32.xlu0 %v3923_v26, %s3672_s25 }
  0x7b   : > { %1212 = vrot.lane.b32.xlu1 %v477_v29, %s5727_s8 }
  0x7e   : > { %823 = vrot.lane.b32.xlu0 %v3923_v26, %s3668_s11 }
  0x7f   : > { %923 = vrot.lane.b32.xlu1 %v477_v29, %s3670_s13 }
  0x82   : > { %1214 = vrot.lane.b32.xlu0 %v479_v34, %s5727_s8 }
  0x83   : > { %1308 = vrot.lane.b32.xlu1 %v654_v35, %s5725_s17 }
  0x86   : > { %551 = vrot.lane.b32.xlu0 %v477_v29, %s3667_s10  ;;  %v306_v29 = vrot.slane %v233_v22, 7 }
  0x87   : > { %925 = vrot.lane.b32.xlu1 %v479_v34, %s3670_s13 }
  0x8a   : > { %1024 = vrot.lane.b32.xlu0 %v654_v35, %s3671_s14 }
  0x8b   : > { %1310 = vrot.lane.b32.xlu1 %v656_v39, %s5725_s17 }
  0x8e   : > { %553 = vrot.lane.b32.xlu0 %v479_v34, %s3667_s10  ;;  %v4020_v34 = vsel %vm288_vm0, 0.0, %v306_v29 }
  0x8f   : > { %728 = vrot.lane.b32.xlu1 %v654_v35, %s3669_s12 }
  0x90   : > { %v3956_v44 = vpop.permute.xlu0 %3480 }
  0x91   : > { %v810_v46 = vpop.permute.xlu1 %809  ;;  %v3482_v13 = vunpack.i.l.bf16 %v3956_v44  ;;  %v3483_v35 = vunpack.i.h.bf16 %v3956_v44 }
  0x92   : > { %1026 = vrot.lane.b32.xlu0 %v656_v39, %s3671_s14 }
  0x93   : > { %1120 = vrot.lane.b32.xlu1 %v3959_v45, %s3672_s25  ;;  %v1397_v24 = vsel %vm1396_vm4, %v3762_v2, %v3482_v13 }
  0x94   : > { %v3967_v48 = vpop.permute.xlu0 %3485 }
  0x95   : > { %v3971_v51 = vpop.permute.xlu1 %811  ;;  %v3487_v14 = vunpack.i.l.bf16 %v3967_v48  ;;  %v3488_v40 = vunpack.i.h.bf16 %v3967_v48  ;;  %v1398_v48 = vsel %vm1396_vm4, %v3757_v1, %v3483_v35 }
  0x96   : > { %730 = vrot.lane.b32.xlu0 %v656_v39, %s3669_s12  ;;  %v4026_v39 = vsel %vm288_vm0, %v306_v29, %v307_v31 }
  0x97   : > { %825 = vrot.lane.b32.xlu1 %v3959_v45, %s3668_s11  ;;  %v1430_v27 = vsel %vm1429_vm5, %v1397_v24, %v3487_v14  ;;  %v486_v49 = vrot.slane %v4026_v39, 1 }
  0x98   : > { %v912_v52 = vpop.permute.xlu0 %911  ;;  %v1463_v32 = vsel %vm1462_vm6, %v1430_v27, %v810_v46  ;;  %v485_v46 = vrot.slane %v4020_v34, 1 }
  0x99   : > { %v3978_v55 = vpop.permute.xlu1 %539  ;;  %v1496_v41 = vsel %vm1495_vm7, %v1463_v32, %v912_v52 }
  0x9a   : > { %1122 = vrot.lane.b32.xlu0 %v3962_v47, %s3672_s25  ;;  %v487_v58 = vsel %vm454_vm1, %v485_v46, %v486_v49 }
  0x9b   : > { %1216 = vrot.lane.b32.xlu1 %v482_v53, %s5727_s8 }
  0x9c   : > { %v3983_v57 = vpop.permute.xlu0 %913 }
  0x9d   : > { %v1013_v60 = vpop.permute.xlu1 %1012 }
  0x9e   : > { %827 = vrot.lane.b32.xlu0 %v3962_v47, %s3668_s11  ;;  %v1529_v42 = vsel %vm1528_vm8, %v1496_v41, %v1013_v60  ;;  %v235_v41 = vld [vmem:[%s3777_s9 + $0x60] sm:$0xff] }
  0x9f   : > { %927 = vrot.lane.b32.xlu1 %v482_v53, %s3670_s13 }
  0xa0   : > { %v3991_v0 = vpop.permute.xlu0 %541 }
  0xa1   : > { %v3994_v5 = vpop.permute.xlu1 %716 }
  0xa2   : > { %1218 = vrot.lane.b32.xlu0 %v484_v63, %s5727_s8 }
  0xa3   : > { %1312 = vrot.lane.b32.xlu1 %v659_v4, %s5725_s17 }
  0xa4   : > { %v1015_v10 = vpop.permute.xlu0 %1014 }
  0xa5   : > { %v1109_v12 = vpop.permute.xlu1 %1108 }
  0xa6   : > { %555 = vrot.lane.b32.xlu0 %v482_v53, %s3667_s10  ;;  %v1562_v43 = vsel %vm1561_vm9, %v1529_v42, %v1109_v12  ;;  %v1431_v53 = vsel %vm1429_vm5, %v1398_v48, %v3488_v40  ;;  %v488_v12 = vrot.slane %v411_v59, 1  ;;  %v236_v42 = vld [vmem:[%s3777_s9 + $0x68] sm:$0xff]  ;;  %v1399_v48 = vsel %vm1396_vm4, %v3800_v20, %v3978_v55 }
  0xa7   : > { %929 = vrot.lane.b32.xlu1 %v484_v63, %s3670_s13  ;;  %v1464_v60 = vsel %vm1462_vm6, %v1431_v53, %v3971_v51  ;;  %v663_v51 = vrot.slane %v4026_v39, 2 }
  0xa8   : > { %v4002_v15 = vpop.permute.xlu0 %718 }
  0xa9   : > { %v4005_v19 = vpop.permute.xlu1 %813 }
  0xaa   : > { %1028 = vrot.lane.b32.xlu0 %v659_v4, %s3671_s14 }
  0xab   : > { %1314 = vrot.lane.b32.xlu1 %v661_v17, %s5725_s17 }
  0xac   : > { %v1111_v28 = vpop.permute.xlu0 %1110 }
  0xad   : > { %v1205_v30 = vpop.permute.xlu1 %1204 }
  0xae   : > { %557 = vrot.lane.b32.xlu0 %v484_v63, %s3667_s10  ;;  %v1595_v50 = vsel %vm1594_vm10, %v1562_v43, %v1205_v30  ;;  %v665_v30 = vrot.slane %v411_v59, 2 }
  0xaf   : > { %732 = vrot.lane.b32.xlu1 %v659_v4, %s3669_s12  ;;  %v1497_v4 = vsel %vm1495_vm7, %v1464_v60, %v3983_v57 }
  0xb0   : > { %v4017_v33 = vpop.permute.xlu0 %815  ;;  %v1530_v11 = vsel %vm1528_vm8, %v1497_v4, %v1015_v10  ;;  %v489_v10 = vsel %vm454_vm1, %v486_v49, %v488_v12  ;;  %v666_v35 = vsel %vm631_vm2, %v663_v51, %v665_v30  ;;  %v310_v49 = vrot.slane %v236_v42, 7 }
  0xb1   : > { %v4023_v36 = vpop.permute.xlu1 %915  ;;  %v1563_v13 = vsel %vm1561_vm9, %v1530_v11, %v1111_v28 }
  0xb2   : > { %1030 = vrot.lane.b32.xlu0 %v661_v17, %s3671_s14 }
  0xb3   : > { %1124 = vrot.lane.b32.xlu1 %v4020_v34, %s3672_s25 }
  0xb4   : > { %v1207_v44 = vpop.permute.xlu0 %1206 }
  0xb5   : > { %v1301_v52 = vpop.permute.xlu1 %1300  ;;  %v1596_v22 = vsel %vm1594_vm10, %v1563_v13, %v1207_v44  ;;  %v309_v44 = vrot.slane %v235_v41, 7 }
  0xb6   : > { %734 = vrot.lane.b32.xlu0 %v661_v17, %s3669_s12  ;;  %v1628_v54 = vsel %vm1627_vm11, %v1595_v50, %v1301_v52  ;;  %v662_v17 = vrot.slane %v4020_v34, 2  ;;  %v1432_v50 = vsel %vm1429_vm5, %v1399_v48, %v3994_v5 }
  0xb7   : > { %829 = vrot.lane.b32.xlu1 %v4020_v34, %s3668_s11  ;;  %3295 = vmatprep.mubr.msk.f32.mxu0 %vm1665_vm12, %v1628_v54  ;;  %v4098_v53 = vsel %vm288_vm0, 0.0, %v309_v44  ;;  %v1465_v54 = vsel %vm1462_vm6, %v1432_v50, %v4005_v19  ;;  %v4105_v59 = vsel %vm288_vm0, %v309_v44, %v310_v49 }
  0xb8   : > { %v4046_v56 = vpop.permute.xlu0 %543  ;;  %v664_v27 = vsel %vm631_vm2, %v662_v17, %v663_v51  ;;  %v1498_v20 = vsel %vm1495_vm7, %v1465_v54, %v4023_v36  ;;  %v490_v19 = vrot.slane %v4098_v53, 1  ;;  %v491_v4 = vrot.slane %v4105_v59, 1 }
  0xb9   : > { %v4052_v63 = vpop.permute.xlu1 %917  ;;  %v1400_v36 = vsel %vm1396_vm4, %v3805_v21, %v3991_v0  ;;  %v667_v30 = vrot.slane %v4098_v53, 2 }
  0xba   : > { %1126 = vrot.lane.b32.xlu0 %v4026_v39, %s3672_s25  ;;  %v492_v51 = vsel %vm454_vm1, %v490_v19, %v491_v4 }
  0xbb   : > { %1220 = vrot.lane.b32.xlu1 %v487_v58, %s5727_s8 }
  0xbc   : > { %v1017_v14 = vpop.permute.xlu0 %1016 }
  0xbd   : > { %v1303_v23 = vpop.permute.xlu1 %1302  ;;  %v1531_v55 = vsel %vm1528_vm8, %v1498_v20, %v1017_v14  ;;  %v1433_v14 = vsel %vm1429_vm5, %v1400_v36, %v4002_v15  ;;  %v237_v20 = vld [vmem:[%s3777_s9 + $0x70] sm:$0xff] }
  0xbe   : > { %v1629_v57 = vsel %vm1627_vm11, %v1596_v22, %v1303_v23  ;;  %831 = vrot.lane.b32.xlu0 %v4026_v39, %s3668_s11  ;;  %v412_v22 = vsel %vm288_vm0, %v310_v49, 0.0  ;;  %v1466_v23 = vsel %vm1462_vm6, %v1433_v14, %v4017_v33  ;;  %v668_v33 = vrot.slane %v4105_v59, 2 }
  0xbf   : > { %931 = vrot.lane.b32.xlu1 %v487_v58, %s3670_s13  ;;  %3296 = vmatmul.mubr.msk.f32.vlgmr.msra.gmra.mrb[0].mxu0 %vm1665_vm12, %v1629_v57  ;;  %v1499_v21 = vsel %vm1495_vm7, %v1466_v23, %v4052_v63  ;;  %v493_v15 = vrot.slane %v412_v22, 1 }
  0xc0   : > { %v4070_v24 = vpop.permute.xlu0 %545  ;;  %v669_v42 = vsel %vm631_vm2, %v667_v30, %v668_v33 }
  0xc1   : > { %v4073_v28 = vpop.permute.xlu1 %720 }
  0xc2   : > { %1222 = vrot.lane.b32.xlu0 %v489_v10, %s5727_s8 }
  0xc3   : > { %1316 = vrot.lane.b32.xlu1 %v664_v27, %s5725_s17 }
  0xc4   : > { %v1019_v29 = vpop.permute.xlu0 %1018 }
  0xc5   : > { %v1113_v31 = vpop.permute.xlu1 %1112  ;;  %v1532_v0 = vsel %vm1528_vm8, %v1499_v21, %v1019_v29  ;;  %v494_v29 = vsel %vm454_vm1, %v491_v4, %v493_v15 }
  0xc6   : > { %559 = vrot.lane.b32.xlu0 %v487_v58, %s3667_s10  ;;  %v1564_v5 = vsel %vm1561_vm9, %v1531_v55, %v1113_v31  ;;  %v238_v55 = vld [vmem:[%s3777_s9 + $0x78] sm:$0xff] }
  0xc7   : > { %933 = vrot.lane.b32.xlu1 %v489_v10, %s3670_s13  ;;  %v313_v4 = vrot.slane %v238_v55, 7 }
  0xc8   : > { %v4079_v32 = vpop.permute.xlu0 %722 }
  0xc9   : > { %v4082_v40 = vpop.permute.xlu1 %817 }
  0xca   : > { %1032 = vrot.lane.b32.xlu0 %v664_v27, %s3671_s14 }
  0xcb   : > { %1318 = vrot.lane.b32.xlu1 %v666_v35, %s5725_s17 }
  0xcc   : > { %v1115_v43 = vpop.permute.xlu0 %1114 }
  0xcd   : > { %v1209_v46 = vpop.permute.xlu1 %1208 }
  0xce   : > { %561 = vrot.lane.b32.xlu0 %v489_v10, %s3667_s10  ;;  %v1597_v11 = vsel %vm1594_vm10, %v1564_v5, %v1209_v46  ;;  %v1565_v10 = vsel %vm1561_vm9, %v1532_v0, %v1115_v43  ;;  %v670_v46 = vrot.slane %v412_v22, 2 }
  0xcf   : > { %736 = vrot.lane.b32.xlu1 %v664_v27, %s3669_s12 }
  0xd0   : > { %v4095_v52 = vpop.permute.xlu0 %819  ;;  %v671_v50 = vsel %vm631_vm2, %v668_v33, %v670_v46 }
  0xd1   : > { %v4102_v58 = vpop.permute.xlu1 %919 }
  0xd2   : > { %1034 = vrot.lane.b32.xlu0 %v666_v35, %s3671_s14 }
  0xd3   : > { %1128 = vrot.lane.b32.xlu1 %v4098_v53, %s3672_s25 }
  0xd4   : > { %v1211_v60 = vpop.permute.xlu0 %1210 }
  0xd5   : > { %v1305_v12 = vpop.permute.xlu1 %1304  ;;  %v1598_v31 = vsel %vm1594_vm10, %v1565_v10, %v1211_v60  ;;  %v312_v60 = vrot.slane %v237_v20, 7 }
  0xd6   : > { %v1630_v13 = vsel %vm1627_vm11, %v1597_v11, %v1305_v12  ;;  %738 = vrot.lane.b32.xlu0 %v666_v35, %s3669_s12  ;;  %v1401_v11 = vsel %vm1396_vm4, %v3829_v37, %v4046_v56 }
  0xd7   : > { %833 = vrot.lane.b32.xlu1 %v4098_v53, %s3668_s11  ;;  %3298 = vmatprep.mubr.msk.f32.mxu0 %vm1665_vm12, %v1630_v13  ;;  %v1434_v12 = vsel %vm1429_vm5, %v1401_v11, %v4073_v28  ;;  %v4179_v36 = vsel %vm288_vm0, 0.0, %v312_v60  ;;  %v4186_v22 = vsel %vm288_vm0, %v312_v60, %v313_v4 }
  0xd8   : > { %v4127_v17 = vpop.permute.xlu0 %547  ;;  %v1467_v14 = vsel %vm1462_vm6, %v1434_v12, %v4082_v40  ;;  %v495_v40 = vrot.slane %v4179_v36, 1  ;;  %v496_v21 = vrot.slane %v4186_v22, 1  ;;  %v672_v46 = vrot.slane %v4179_v36, 2 }
  0xd9   : > { %v4133_v57 = vpop.permute.xlu1 %921  ;;  %v1500_v37 = vsel %vm1495_vm7, %v1467_v14, %v4102_v58  ;;  %v1402_v58 = vsel %vm1396_vm4, %v3832_v38, %v4070_v24 }
  0xda   : > { %1130 = vrot.lane.b32.xlu0 %v4105_v59, %s3672_s25  ;;  %v497_v33 = vsel %vm454_vm1, %v495_v40, %v496_v21 }
  0xdb   : > { %1224 = vrot.lane.b32.xlu1 %v492_v51, %s5727_s8 }
  0xdc   : > { %v1021_v27 = vpop.permute.xlu0 %1020 }
  0xdd   : > { %v1307_v35 = vpop.permute.xlu1 %1306  ;;  %v1533_v56 = vsel %vm1528_vm8, %v1500_v37, %v1021_v27  ;;  %v1435_v27 = vsel %vm1429_vm5, %v1402_v58, %v4079_v32  ;;  %v239_v37 = vld [vmem:[%s3777_s9 + $0x80] sm:$0xff] }
  0xde   : > { %v1631_v63 = vsel %vm1627_vm11, %v1598_v31, %v1307_v35  ;;  %835 = vrot.lane.b32.xlu0 %v4105_v59, %s3668_s11  ;;  %v413_v31 = vsel %vm288_vm0, %v313_v4, 0.0  ;;  %v1468_v35 = vsel %vm1462_vm6, %v1435_v27, %v4095_v52  ;;  %v673_v52 = vrot.slane %v4186_v22, 2 }
  0xdf   : > { %935 = vrot.lane.b32.xlu1 %v492_v51, %s3670_s13  ;;  %3299 = vmatmul.mubr.msk.f32.gmra.mrb[2].mxu0 %vm1665_vm12, %v1631_v63  ;;  %v1501_v38 = vsel %vm1495_vm7, %v1468_v35, %v4133_v57  ;;  %v498_v32 = vrot.slane %v413_v31, 1 }
  0xe0   : > { %v4151_v41 = vpop.permute.xlu0 %549  ;;  %v674_v55 = vsel %vm631_vm2, %v672_v46, %v673_v52 }
  0xe1   : > { %v4154_v43 = vpop.permute.xlu1 %724 }
  0xe2   : > { %1226 = vrot.lane.b32.xlu0 %v494_v29, %s5727_s8 }
  0xe3   : > { %1320 = vrot.lane.b32.xlu1 %v669_v42, %s5725_s17 }
  0xe4   : > { %v1023_v44 = vpop.permute.xlu0 %1022 }
  0xe5   : > { %v1117_v49 = vpop.permute.xlu1 %1116  ;;  %v1534_v24 = vsel %vm1528_vm8, %v1501_v38, %v1023_v44  ;;  %v499_v44 = vsel %vm454_vm1, %v496_v21, %v498_v32 }
  0xe6   : > { %563 = vrot.lane.b32.xlu0 %v492_v51, %s3667_s10  ;;  %v1566_v28 = vsel %vm1561_vm9, %v1533_v56, %v1117_v49  ;;  %v240_v56 = vld [vmem:[%s3777_s9 + $0x88] sm:$0xff] }
  0xe7   : > { %937 = vrot.lane.b32.xlu1 %v494_v29, %s3670_s13  ;;  %v316_v21 = vrot.slane %v240_v56, 7 }
  0xe8   : > { %v4160_v48 = vpop.permute.xlu0 %726 }
  0xe9   : > { %v4163_v54 = vpop.permute.xlu1 %821 }
  0xea   : > { %1036 = vrot.lane.b32.xlu0 %v669_v42, %s3671_s14 }
  0xeb   : > { %1322 = vrot.lane.b32.xlu1 %v671_v50, %s5725_s17 }
  0xec   : > { %v1119_v5 = vpop.permute.xlu0 %1118 }
  0xed   : > { %v1213_v19 = vpop.permute.xlu1 %1212 }
  0xee   : > { %565 = vrot.lane.b32.xlu0 %v494_v29, %s3667_s10  ;;  %v1599_v0 = vsel %vm1594_vm10, %v1566_v28, %v1213_v19  ;;  %v1567_v29 = vsel %vm1561_vm9, %v1534_v24, %v1119_v5  ;;  %v675_v19 = vrot.slane %v413_v31, 2 }
  0xef   : > { %740 = vrot.lane.b32.xlu1 %v669_v42, %s3669_s12 }
  0xf0   : > { %v4176_v13 = vpop.permute.xlu0 %823  ;;  %v676_v12 = vsel %vm631_vm2, %v673_v52, %v675_v19 }
  0xf1   : > { %v4183_v51 = vpop.permute.xlu1 %923 }
  0xf2   : > { %1038 = vrot.lane.b32.xlu0 %v671_v50, %s3671_s14 }
  0xf3   : > { %1132 = vrot.lane.b32.xlu1 %v4179_v36, %s3672_s25 }
  0xf4   : > { %v1215_v23 = vpop.permute.xlu0 %1214 }
  0xf5   : > { %v1309_v15 = vpop.permute.xlu1 %1308  ;;  %v1600_v49 = vsel %vm1594_vm10, %v1567_v29, %v1215_v23  ;;  %v315_v23 = vrot.slane %v239_v37, 7 }
  0xf6   : > { %v1632_v10 = vsel %vm1627_vm11, %v1599_v0, %v1309_v15  ;;  %742 = vrot.lane.b32.xlu0 %v671_v50, %s3669_s12  ;;  %v1403_v0 = vsel %vm1396_vm4, %v3883_v61, %v4127_v17 }
  0xf7   : > { %837 = vrot.lane.b32.xlu1 %v4179_v36, %s3668_s11  ;;  %3301 = vmatprep.mubr.msk.f32.mxu0 %vm1665_vm12, %v1632_v10  ;;  %v1436_v15 = vsel %vm1429_vm5, %v1403_v0, %v4154_v43  ;;  %v4260_v58 = vsel %vm288_vm0, 0.0, %v315_v23  ;;  %v4267_v31 = vsel %vm288_vm0, %v315_v23, %v316_v21 }
  0xf8   : > { %v4208_v30 = vpop.permute.xlu0 %551  ;;  %v1469_v27 = vsel %vm1462_vm6, %v1436_v15, %v4163_v54  ;;  %v500_v54 = vrot.slane %v4260_v58, 1  ;;  %v501_v38 = vrot.slane %v4267_v31, 1  ;;  %v677_v19 = vrot.slane %v4260_v58, 2 }
  0xf9   : > { %v4214_v63 = vpop.permute.xlu1 %925  ;;  %v1502_v61 = vsel %vm1495_vm7, %v1469_v27, %v4183_v51  ;;  %v1404_v51 = vsel %vm1396_vm4, %v3886_v62, %v4151_v41 }
  0xfa   : > { %1134 = vrot.lane.b32.xlu0 %v4186_v22, %s3672_s25  ;;  %v502_v52 = vsel %vm454_vm1, %v500_v54, %v501_v38 }
  0xfb   : > { %1228 = vrot.lane.b32.xlu1 %v497_v33, %s5727_s8 }
  0xfc   : > { %v1025_v42 = vpop.permute.xlu0 %1024 }
  0xfd   : > { %v1311_v50 = vpop.permute.xlu1 %1310  ;;  %v1535_v17 = vsel %vm1528_vm8, %v1502_v61, %v1025_v42  ;;  %v1437_v42 = vsel %vm1429_vm5, %v1404_v51, %v4160_v48  ;;  %v4328_v61 = vld [vmem:[%s3777_s9 + $0x90] sm:$0xff] }
  0xfe   : > { %v1633_v57 = vsel %vm1627_vm11, %v1600_v49, %v1311_v50  ;;  %839 = vrot.lane.b32.xlu0 %v4186_v22, %s3668_s11  ;;  %v414_v49 = vsel %vm288_vm0, %v316_v21, 0.0  ;;  %v1470_v50 = vsel %vm1462_vm6, %v1437_v42, %v4176_v13  ;;  %v678_v13 = vrot.slane %v4267_v31, 2 }
  0xff   : > { %939 = vrot.lane.b32.xlu1 %v497_v33, %s3670_s13  ;;  %3302 = vmatmul.mubr.msk.f32.gmra.mrb[4].mxu0 %vm1665_vm12, %v1633_v57  ;;  %v1503_v62 = vsel %vm1495_vm7, %v1470_v50, %v4214_v63  ;;  %v503_v48 = vrot.slane %v414_v49, 1 }
 0x100   : > { %v4232_v20 = vpop.permute.xlu0 %553  ;;  %v679_v56 = vsel %vm631_vm2, %v677_v19, %v678_v13 }
 0x101   : > { %v4235_v5 = vpop.permute.xlu1 %728 }
 0x102   : > { %1230 = vrot.lane.b32.xlu0 %v499_v44, %s5727_s8 }
 0x103   : > { %1324 = vrot.lane.b32.xlu1 %v674_v55, %s5725_s17 }
 0x104   : > { %v1027_v60 = vpop.permute.xlu0 %1026 }
 0x105   : > { %v1121_v4 = vpop.permute.xlu1 %1120  ;;  %v1536_v41 = vsel %vm1528_vm8, %v1503_v62, %v1027_v60  ;;  %v504_v60 = vsel %vm454_vm1, %v501_v38, %v503_v48 }
 0x106   : > { %567 = vrot.lane.b32.xlu0 %v497_v33, %s3667_s10  ;;  %v1568_v43 = vsel %vm1561_vm9, %v1535_v17, %v1121_v4  ;;  %v4332_v17 = vld [vmem:[%s3777_s9 + $0x98] sm:$0xff] }
 0x107   : > { %941 = vrot.lane.b32.xlu1 %v499_v44, %s3670_s13  ;;  %v319_v38 = vrot.slane %v4332_v17, 7 }
 0x108   : > { %v4241_v11 = vpop.permute.xlu0 %730 }
 0x109   : > { %v4244_v14 = vpop.permute.xlu1 %825 }
 0x10a   : > { %1040 = vrot.lane.b32.xlu0 %v674_v55, %s3671_s14 }
 0x10b   : > { %1326 = vrot.lane.b32.xlu1 %v676_v12, %s5725_s17 }
 0x10c   : > { %v1123_v28 = vpop.permute.xlu0 %1122 }
 0x10d   : > { %v1217_v40 = vpop.permute.xlu1 %1216 }
 0x10e   : > { %569 = vrot.lane.b32.xlu0 %v499_v44, %s3667_s10  ;;  %v1601_v24 = vsel %vm1594_vm10, %v1568_v43, %v1217_v40  ;;  %v1569_v44 = vsel %vm1561_vm9, %v1536_v41, %v1123_v28  ;;  %v680_v40 = vrot.slane %v414_v49, 2 }
 0x10f   : > { %744 = vrot.lane.b32.xlu1 %v674_v55, %s3669_s12 }
 0x110   : > { %v4257_v10 = vpop.permute.xlu0 %827  ;;  %v681_v15 = vsel %vm631_vm2, %v678_v13, %v680_v40 }
 0x111   : > { %v4264_v33 = vpop.permute.xlu1 %927 }
 0x112   : > { %1042 = vrot.lane.b32.xlu0 %v676_v12, %s3671_s14 }
 0x113   : > { %1136 = vrot.lane.b32.xlu1 %v4260_v58, %s3672_s25 }
 0x114   : > { %v1219_v35 = vpop.permute.xlu0 %1218 }
 0x115   : > { %v1313_v32 = vpop.permute.xlu1 %1312  ;;  %v1602_v4 = vsel %vm1594_vm10, %v1569_v44, %v1219_v35  ;;  %v318_v35 = vrot.slane %v4328_v61, 7 }
 0x116   : > { %v1634_v29 = vsel %vm1627_vm11, %v1601_v24, %v1313_v32  ;;  %746 = vrot.lane.b32.xlu0 %v676_v12, %s3669_s12  ;;  %v1405_v24 = vsel %vm1396_vm4, %v3920_v25, %v4208_v30 }
 0x117   : > { %841 = vrot.lane.b32.xlu1 %v4260_v58, %s3668_s11  ;;  %3304 = vmatprep.mubr.msk.f32.mxu0 %vm1665_vm12, %v1634_v29  ;;  %v1438_v32 = vsel %vm1429_vm5, %v1405_v24, %v4235_v5  ;;  %v4347_v51 = vsel %vm288_vm0, 0.0, %v318_v35  ;;  %v4354_v49 = vsel %vm288_vm0, %v318_v35, %v319_v38 }
 0x118   : > { %v4289_v46 = vpop.permute.xlu0 %555  ;;  %v1471_v42 = vsel %vm1462_vm6, %v1438_v32, %v4244_v14  ;;  %v505_v14 = vrot.slane %v4347_v51, 1  ;;  %v506_v62 = vrot.slane %v4354_v49, 1  ;;  %v682_v40 = vrot.slane %v4347_v51, 2 }
 0x119   : > { %v4295_v57 = vpop.permute.xlu1 %929  ;;  %v1504_v25 = vsel %vm1495_vm7, %v1471_v42, %v4264_v33  ;;  %v1406_v33 = vsel %vm1396_vm4, %v3923_v26, %v4232_v20 }
 0x11a   : > { %1138 = vrot.lane.b32.xlu0 %v4267_v31, %s3672_s25  ;;  %v507_v13 = vsel %vm454_vm1, %v505_v14, %v506_v62 }
 0x11b   : > { %1232 = vrot.lane.b32.xlu1 %v502_v52, %s5727_s8 }
 0x11c   : > { %v1029_v55 = vpop.permute.xlu0 %1028 }
 0x11d   : > { %v1315_v12 = vpop.permute.xlu1 %1314  ;;  %v1537_v30 = vsel %vm1528_vm8, %v1504_v25, %v1029_v55  ;;  %v1439_v55 = vsel %vm1429_vm5, %v1406_v33, %v4241_v11 }
 0x11e   : > { %v1635_v63 = vsel %vm1627_vm11, %v1602_v4, %v1315_v12  ;;  %843 = vrot.lane.b32.xlu0 %v4267_v31, %s3668_s11  ;;  %v415_v4 = vsel %vm288_vm0, %v319_v38, 0.0  ;;  %v1472_v12 = vsel %vm1462_vm6, %v1439_v55, %v4257_v10  ;;  %v683_v10 = vrot.slane %v4354_v49, 2 }
 0x11f   : > { %943 = vrot.lane.b32.xlu1 %v502_v52, %s3670_s13  ;;  %3305 = vmatmul.mubr.msk.f32.gmra.mrb[6].mxu0 %vm1665_vm12, %v1635_v63  ;;  %v1505_v26 = vsel %vm1495_vm7, %v1472_v12, %v4295_v57  ;;  %v508_v11 = vrot.slane %v415_v4, 1  ;;  %v685_v24 = vrot.slane %v415_v4, 2 }
 0x120   : > { %v4313_v37 = vpop.permute.xlu0 %557  ;;  %v684_v35 = vsel %vm631_vm2, %v682_v40, %v683_v10 }
 0x121   : > { %v4316_v28 = vpop.permute.xlu1 %732  ;;  %v686_v25 = vsel %vm631_vm2, %v683_v10, %v685_v24 }
 0x122   : > { %1234 = vrot.lane.b32.xlu0 %v504_v60, %s5727_s8 }
 0x123   : > { %1328 = vrot.lane.b32.xlu1 %v679_v56, %s5725_s17 }
 0x124   : > { %v1031_v23 = vpop.permute.xlu0 %1030 }
 0x125   : > { %v1125_v21 = vpop.permute.xlu1 %1124  ;;  %v1538_v20 = vsel %vm1528_vm8, %v1505_v26, %v1031_v23  ;;  %v509_v23 = vsel %vm454_vm1, %v506_v62, %v508_v11 }
 0x126   : > { %571 = vrot.lane.b32.xlu0 %v502_v52, %s3667_s10  ;;  %v1570_v5 = vsel %vm1561_vm9, %v1537_v30, %v1125_v21 }
 0x127   : > { %945 = vrot.lane.b32.xlu1 %v504_v60, %s3670_s13 }
 0x128   : > { %v4322_v0 = vpop.permute.xlu0 %734 }
 0x129   : > { %v4325_v27 = vpop.permute.xlu1 %829 }
 0x12a   : > { %1044 = vrot.lane.b32.xlu0 %v679_v56, %s3671_s14 }
 0x12b   : > { %1330 = vrot.lane.b32.xlu1 %v681_v15, %s5725_s17 }
 0x12c   : > { %v1127_v43 = vpop.permute.xlu0 %1126 }
 0x12d   : > { %v1221_v54 = vpop.permute.xlu1 %1220 }
 0x12e   : > { %573 = vrot.lane.b32.xlu0 %v504_v60, %s3667_s10  ;;  %v1603_v41 = vsel %vm1594_vm10, %v1570_v5, %v1221_v54  ;;  %v1571_v60 = vsel %vm1561_vm9, %v1538_v20, %v1127_v43  ;;  %v4415_v5 = vld [vmem:[%s3777_s9 + $0xa0] sm:$0xff] }
 0x12f   : > { %748 = vrot.lane.b32.xlu1 %v679_v56, %s3669_s12  ;;  %v321_v62 = vrot.slane %v4415_v5, 7 }
 0x130   : > { %v4344_v29 = vpop.permute.xlu0 %831 }
 0x131   : > { %v4351_v52 = vpop.permute.xlu1 %931 }
 0x132   : > { %1046 = vrot.lane.b32.xlu0 %v681_v15, %s3671_s14 }
 0x133   : > { %1140 = vrot.lane.b32.xlu1 %v4347_v51, %s3672_s25 }
 0x134   : > { %v1223_v50 = vpop.permute.xlu0 %1222 }
 0x135   : > { %v1317_v48 = vpop.permute.xlu1 %1316  ;;  %v1604_v21 = vsel %vm1594_vm10, %v1571_v60, %v1223_v50  ;;  %v4419_v50 = vld [vmem:[%s3777_s9 + $0xa8] sm:$0xff] }
 0x136   : > { %v1636_v44 = vsel %vm1627_vm11, %v1603_v41, %v1317_v48  ;;  %750 = vrot.lane.b32.xlu0 %v681_v15, %s3669_s12  ;;  %v322_v48 = vrot.slane %v4419_v50, 7 }
 0x137   : > { %845 = vrot.lane.b32.xlu1 %v4347_v51, %s3668_s11  ;;  %3307 = vmatprep.mubr.msk.f32.mxu0 %vm1665_vm12, %v1636_v44  ;;  %v1407_v44 = vsel %vm1396_vm4, %v3959_v45, %v4289_v46 }
 0x138   : > { %v4376_v19 = vpop.permute.xlu0 %559  ;;  %v1440_v33 = vsel %vm1429_vm5, %v1407_v44, %v4316_v28  ;;  %v4441_v26 = vsel %vm288_vm0, %v321_v62, %v322_v48 }
 0x139   : > { %v4382_v63 = vpop.permute.xlu1 %933  ;;  %v1473_v4 = vsel %vm1462_vm6, %v1440_v33, %v4325_v27  ;;  %v511_v11 = vrot.slane %v4441_v26, 1 }
 0x13a   : > { %1142 = vrot.lane.b32.xlu0 %v4354_v49, %s3672_s25  ;;  %v1506_v45 = vsel %vm1495_vm7, %v1473_v4, %v4351_v52  ;;  %v1408_v52 = vsel %vm1396_vm4, %v3962_v47, %v4313_v37 }
 0x13b   : > { %1236 = vrot.lane.b32.xlu1 %v507_v13, %s5727_s8 }
 0x13c   : > { %v1033_v56 = vpop.permute.xlu0 %1032 }
 0x13d   : > { %v1319_v15 = vpop.permute.xlu1 %1318  ;;  %v1539_v46 = vsel %vm1528_vm8, %v1506_v45, %v1033_v56  ;;  %v1441_v56 = vsel %vm1429_vm5, %v1408_v52, %v4322_v0 }
 0x13e   : > { %v1637_v57 = vsel %vm1627_vm11, %v1604_v21, %v1319_v15  ;;  %847 = vrot.lane.b32.xlu0 %v4354_v49, %s3668_s11 }
 0x13f   : > { %947 = vrot.lane.b32.xlu1 %v507_v13, %s3670_s13  ;;  %3308 = vmatmul.mubr.msk.f32.gmra.mrb[8].mxu0 %vm1665_vm12, %v1637_v57  ;;  %v416_v57 = vsel %vm288_vm0, %v322_v48, 0.0 }
 0x140   : > { %v4400_v43 = vpop.permute.xlu0 %561  ;;  %v513_v0 = vrot.slane %v416_v57, 1  ;;  %v690_v4 = vrot.slane %v416_v57, 2 }
 0x141   : > { %v4403_v54 = vpop.permute.xlu1 %736 }
 0x142   : > { %1238 = vrot.lane.b32.xlu0 %v509_v23, %s5727_s8 }
 0x143   : > { %1332 = vrot.lane.b32.xlu1 %v684_v35, %s5725_s17 }
 0x144   : > { %v1035_v38 = vpop.permute.xlu0 %1034 }
 0x145   : > { %v1129_v32 = vpop.permute.xlu1 %1128 }
 0x146   : > { %575 = vrot.lane.b32.xlu0 %v507_v13, %s3667_s10  ;;  %v4434_v13 = vsel %vm288_vm0, 0.0, %v321_v62  ;;  %v1572_v28 = vsel %vm1561_vm9, %v1539_v46, %v1129_v32 }
 0x147   : > { %949 = vrot.lane.b32.xlu1 %v509_v23, %s3670_s13  ;;  %v510_v27 = vrot.slane %v4434_v13, 1 }
 0x148   : > { %v4409_v42 = vpop.permute.xlu0 %738 }
 0x149   : > { %v4412_v30 = vpop.permute.xlu1 %833  ;;  %v512_v15 = vsel %vm454_vm1, %v510_v27, %v511_v11  ;;  %v4502_v27 = vld [vmem:[%s3777_s9 + $0xb0] sm:$0xff] }
 0x14a   : > { %1048 = vrot.lane.b32.xlu0 %v684_v35, %s3671_s14 }
 0x14b   : > { %1334 = vrot.lane.b32.xlu1 %v686_v25, %s5725_s17 }
 0x14c   : > { %v1131_v14 = vpop.permute.xlu0 %1130 }
 0x14d   : > { %v1225_v41 = vpop.permute.xlu1 %1224 }
 0x14e   : > { %577 = vrot.lane.b32.xlu0 %v509_v23, %s3667_s10  ;;  %v1605_v60 = vsel %vm1594_vm10, %v1572_v28, %v1225_v41  ;;  %v1474_v23 = vsel %vm1462_vm6, %v1441_v56, %v4344_v29  ;;  %v688_v29 = vrot.slane %v4441_v26, 2  ;;  %v1409_v56 = vsel %vm1396_vm4, %v4020_v34, %v4376_v19 }
 0x14f   : > { %752 = vrot.lane.b32.xlu1 %v684_v35, %s3669_s12  ;;  %v1507_v47 = vsel %vm1495_vm7, %v1474_v23, %v4382_v63 }
 0x150   : > { %v4431_v55 = vpop.permute.xlu0 %835  ;;  %v1540_v37 = vsel %vm1528_vm8, %v1507_v47, %v1035_v38  ;;  %v514_v38 = vsel %vm454_vm1, %v511_v11, %v513_v0  ;;  %v691_v28 = vsel %vm631_vm2, %v688_v29, %v690_v4  ;;  %v4506_v11 = vld [vmem:[%s3777_s9 + $0xb8] sm:$0xff] }
 0x151   : > { %v4438_v12 = vpop.permute.xlu1 %935  ;;  %v1573_v24 = vsel %vm1561_vm9, %v1540_v37, %v1131_v14  ;;  %v325_v52 = vrot.slane %v4506_v11, 7 }
 0x152   : > { %1050 = vrot.lane.b32.xlu0 %v686_v25, %s3671_s14 }
 0x153   : > { %1144 = vrot.lane.b32.xlu1 %v4434_v13, %s3672_s25 }
 0x154   : > { %v1227_v20 = vpop.permute.xlu0 %1226 }
 0x155   : > { %v1321_v40 = vpop.permute.xlu1 %1320  ;;  %v1606_v62 = vsel %vm1594_vm10, %v1573_v24, %v1227_v20 }
 0x156   : > { %v1638_v10 = vsel %vm1627_vm11, %v1605_v60, %v1321_v40  ;;  %754 = vrot.lane.b32.xlu0 %v686_v25, %s3669_s12  ;;  %v687_v25 = vrot.slane %v4434_v13, 2  ;;  %v324_v40 = vrot.slane %v4502_v27, 7 }
 0x157   : > { %849 = vrot.lane.b32.xlu1 %v4434_v13, %s3668_s11  ;;  %3310 = vmatprep.mubr.msk.f32.mxu0 %vm1665_vm12, %v1638_v10 }
 0x158   : > { %v4463_v21 = vpop.permute.xlu0 %563  ;;  %v689_v48 = vsel %vm631_vm2, %v687_v25, %v688_v29  ;;  %v4521_v23 = vsel %vm288_vm0, 0.0, %v324_v40  ;;  %v4528_v0 = vsel %vm288_vm0, %v324_v40, %v325_v52 }
 0x159   : > { %v4469_v35 = vpop.permute.xlu1 %937  ;;  %v516_v25 = vrot.slane %v4528_v0, 1 }
 0x15a   : > { %1146 = vrot.lane.b32.xlu0 %v4441_v26, %s3672_s25 }
 0x15b   : > { %1240 = vrot.lane.b32.xlu1 %v512_v15, %s5727_s8 }
 0x15c   : > { %v1037_v32 = vpop.permute.xlu0 %1036 }
 0x15d   : > { %v1323_v41 = vpop.permute.xlu1 %1322 }
 0x15e   : > { %v1639_v63 = vsel %vm1627_vm11, %v1606_v62, %v1323_v41  ;;  %851 = vrot.lane.b32.xlu0 %v4441_v26, %s3668_s11 }
 0x15f   : > { %951 = vrot.lane.b32.xlu1 %v512_v15, %s3670_s13  ;;  %3311 = vmatmul.mubr.msk.f32.gmra.mrb[10].mxu0 %vm1665_vm12, %v1639_v63 }
 0x160   : > { %v4487_v14 = vpop.permute.xlu0 %565 }
 0x161   : > { %v4490_v44 = vpop.permute.xlu1 %740 }
 0x162   : > { %1242 = vrot.lane.b32.xlu0 %v514_v38, %s5727_s8 }
 0x163   : > { %1336 = vrot.lane.b32.xlu1 %v689_v48, %s5725_s17 }
 0x164   : > { %v1039_v33 = vpop.permute.xlu0 %1038 }
 0x165   : > { %v1133_v45 = vpop.permute.xlu1 %1132 }
 0x166   : > { %579 = vrot.lane.b32.xlu0 %v512_v15, %s3667_s10  ;;  %v1442_v15 = vsel %vm1429_vm5, %v1409_v56, %v4403_v54 }
 0x167   : > { %953 = vrot.lane.b32.xlu1 %v514_v38, %s3670_s13  ;;  %v1475_v47 = vsel %vm1462_vm6, %v1442_v15, %v4412_v30  ;;  %v515_v30 = vrot.slane %v4521_v23, 1 }
 0x168   : > { %v4496_v46 = vpop.permute.xlu0 %742  ;;  %v1508_v34 = vsel %vm1495_vm7, %v1475_v47, %v4438_v12  ;;  %v1410_v12 = vsel %vm1396_vm4, %v4026_v39, %v4400_v43 }
 0x169   : > { %v4499_v20 = vpop.permute.xlu1 %837  ;;  %v1541_v19 = vsel %vm1528_vm8, %v1508_v34, %v1037_v32  ;;  %v1443_v32 = vsel %vm1429_vm5, %v1410_v12, %v4409_v42 }
 0x16a   : > { %1052 = vrot.lane.b32.xlu0 %v689_v48, %s3671_s14  ;;  %v1574_v54 = vsel %vm1561_vm9, %v1541_v19, %v1133_v45  ;;  %v1476_v4 = vsel %vm1462_vm6, %v1443_v32, %v4431_v55  ;;  %v693_v55 = vrot.slane %v4528_v0, 2 }
 0x16b   : > { %1338 = vrot.lane.b32.xlu1 %v691_v28, %s5725_s17  ;;  %v1509_v39 = vsel %vm1495_vm7, %v1476_v4, %v4469_v35 }
 0x16c   : > { %v1135_v60 = vpop.permute.xlu0 %1134  ;;  %v1542_v43 = vsel %vm1528_vm8, %v1509_v39, %v1039_v33 }
 0x16d   : > { %v1229_v10 = vpop.permute.xlu1 %1228 }
 0x16e   : > { %581 = vrot.lane.b32.xlu0 %v514_v38, %s3667_s10  ;;  %v1607_v29 = vsel %vm1594_vm10, %v1574_v54, %v1229_v10  ;;  %v517_v38 = vsel %vm454_vm1, %v515_v30, %v516_v25  ;;  %v692_v10 = vrot.slane %v4521_v23, 2 }
 0x16f   : > { %756 = vrot.lane.b32.xlu1 %v689_v48, %s3669_s12  ;;  %v417_v48 = vsel %vm288_vm0, %v325_v52, 0.0 }
 0x170   : > { %v4518_v57 = vpop.permute.xlu0 %839  ;;  %v518_v42 = vrot.slane %v417_v48, 1  ;;  %v694_v15 = vsel %vm631_vm2, %v692_v10, %v693_v55  ;;  %v695_v19 = vrot.slane %v417_v48, 2  ;;  %v1411_v48 = vsel %vm1396_vm4, %v4098_v53, %v4463_v21 }
 0x171   : > { %v4525_v37 = vpop.permute.xlu1 %939  ;;  %v1444_v4 = vsel %vm1429_vm5, %v1411_v48, %v4490_v44 }
 0x172   : > { %1054 = vrot.lane.b32.xlu0 %v691_v28, %s3671_s14  ;;  %v519_v33 = vsel %vm454_vm1, %v516_v25, %v518_v42  ;;  %v696_v30 = vsel %vm631_vm2, %v693_v55, %v695_v19  ;;  %v1477_v42 = vsel %vm1462_vm6, %v1444_v4, %v4499_v20 }
 0x173   : > { %1148 = vrot.lane.b32.xlu1 %v4521_v23, %s3672_s25  ;;  %v1510_v53 = vsel %vm1495_vm7, %v1477_v42, %v4525_v37 }
 0x174   : > { %v1231_v24 = vpop.permute.xlu0 %1230 }
 0x175   : > { %v1325_v62 = vpop.permute.xlu1 %1324 }
 0x176   : > { %v1640_v41 = vsel %vm1627_vm11, %v1607_v29, %v1325_v62  ;;  %758 = vrot.lane.b32.xlu0 %v691_v28, %s3669_s12  ;;  %v1575_v28 = vsel %vm1561_vm9, %v1542_v43, %v1135_v60  ;;  %v4589_v29 = vld [vmem:[%s3777_s9 + $0xc0] sm:$0xff]  ;;  %v4593_v62 = vld [vmem:[%s3777_s9 + $0xc8] sm:$0xff] }
 0x177   : > { %853 = vrot.lane.b32.xlu1 %v4521_v23, %s3668_s11  ;;  %3313 = vmatprep.mubr.msk.f32.mxu0 %vm1665_vm12, %v1640_v41  ;;  %v1608_v52 = vsel %vm1594_vm10, %v1575_v28, %v1231_v24  ;;  %v327_v12 = vrot.slane %v4589_v29, 7 }
 0x178   : > { %v4550_v63 = vpop.permute.xlu0 %567 }
 0x179   : > { %v4556_v45 = vpop.permute.xlu1 %941  ;;  %v4608_v43 = vsel %vm288_vm0, 0.0, %v327_v12 }
 0x17a   : > { %1150 = vrot.lane.b32.xlu0 %v4528_v0, %s3672_s25 }
 0x17b   : > { %1244 = vrot.lane.b32.xlu1 %v517_v38, %s5727_s8 }
 0x17c   : > { %v1041_v40 = vpop.permute.xlu0 %1040 }
 0x17d   : > { %v1327_v56 = vpop.permute.xlu1 %1326  ;;  %v1543_v44 = vsel %vm1528_vm8, %v1510_v53, %v1041_v40  ;;  %v1412_v40 = vsel %vm1396_vm4, %v4105_v59, %v4487_v14 }
 0x17e   : > { %v1641_v35 = vsel %vm1627_vm11, %v1608_v52, %v1327_v56  ;;  %855 = vrot.lane.b32.xlu0 %v4528_v0, %s3668_s11  ;;  %v520_v56 = vrot.slane %v4608_v43, 1  ;;  %v1445_v19 = vsel %vm1429_vm5, %v1412_v40, %v4496_v46 }
 0x17f   : > { %955 = vrot.lane.b32.xlu1 %v517_v38, %s3670_s13  ;;  %3314 = vmatmul.mubr.msk.f32.gmra.mrb[12].mxu0 %vm1665_vm12, %v1641_v35 }
 0x180   : > { %v4574_v60 = vpop.permute.xlu0 %569 }
 0x181   : > { %v4577_v47 = vpop.permute.xlu1 %744 }
 0x182   : > { %1246 = vrot.lane.b32.xlu0 %v519_v33, %s5727_s8 }
 0x183   : > { %1340 = vrot.lane.b32.xlu1 %v694_v15, %s5725_s17 }
 0x184   : > { %v1043_v34 = vpop.permute.xlu0 %1042 }
 0x185   : > { %v1137_v54 = vpop.permute.xlu1 %1136 }
 0x186   : > { %583 = vrot.lane.b32.xlu0 %v517_v38, %s3667_s10  ;;  %v328_v38 = vrot.slane %v4593_v62, 7  ;;  %v1576_v20 = vsel %vm1561_vm9, %v1543_v44, %v1137_v54 }
 0x187   : > { %957 = vrot.lane.b32.xlu1 %v519_v33, %s3670_s13 }
 0x188   : > { %v4583_v24 = vpop.permute.xlu0 %746  ;;  %v4615_v10 = vsel %vm288_vm0, %v327_v12, %v328_v38 }
 0x189   : > { %v4586_v25 = vpop.permute.xlu1 %841  ;;  %v521_v35 = vrot.slane %v4615_v10, 1 }
 0x18a   : > { %1056 = vrot.lane.b32.xlu0 %v694_v15, %s3671_s14 }
 0x18b   : > { %1342 = vrot.lane.b32.xlu1 %v696_v30, %s5725_s17  ;;  %v522_v12 = vsel %vm454_vm1, %v520_v56, %v521_v35 }
 0x18c   : > { %v1139_v41 = vpop.permute.xlu0 %1138 }
 0x18d   : > { %v1233_v32 = vpop.permute.xlu1 %1232 }
 0x18e   : > { %585 = vrot.lane.b32.xlu0 %v519_v33, %s3667_s10  ;;  %v1609_v37 = vsel %vm1594_vm10, %v1576_v20, %v1233_v32  ;;  %v418_v32 = vsel %vm288_vm0, %v328_v38, 0.0  ;;  %v697_v38 = vrot.slane %v4608_v43, 2 }
 0x18f   : > { %760 = vrot.lane.b32.xlu1 %v694_v15, %s3669_s12  ;;  %v523_v46 = vrot.slane %v418_v32, 1 }
 0x190   : > { %v4605_v39 = vpop.permute.xlu0 %843 }
 0x191   : > { %v4612_v28 = vpop.permute.xlu1 %943 }
 0x192   : > { %v4619_v21 = vpop.f32.mrb[0].mxu0  ;;  %1058 = vrot.lane.b32.xlu0 %v696_v30, %s3671_s14 }
 0x193   : > { %1152 = vrot.lane.b32.xlu1 %v4608_v43, %s3672_s25  ;;  %v4625_v55 = vpop.f32.mrb[1].mxu0 }
 0x194   : > { %v1235_v52 = vpop.permute.xlu0 %1234 }
 0x195   : > { %v1329_v33 = vpop.permute.xlu1 %1328 }
 0x196   : > { %v1642_v15 = vsel %vm1627_vm11, %v1609_v37, %v1329_v33  ;;  %762 = vrot.lane.b32.xlu0 %v696_v30, %s3669_s12  ;;  %v1478_v30 = vsel %vm1462_vm6, %v1445_v19, %v4518_v57  ;;  %v698_v57 = vrot.slane %v4615_v10, 2  ;;  %v700_v37 = vrot.slane %v418_v32, 2  ;;  %v4680_v19 = vld [vmem:[%s3777_s9 + $0xd0] sm:$0xff] }
 0x197   : > { %857 = vrot.lane.b32.xlu1 %v4608_v43, %s3668_s11  ;;  %3316 = vmatprep.mubr.msk.f32.mxu0 %vm1665_vm12, %v1642_v15  ;;  %v1511_v59 = vsel %vm1495_vm7, %v1478_v30, %v4556_v45  ;;  %v4684_v30 = vld [vmem:[%s3777_s9 + $0xd8] sm:$0xff] }
 0x198   : > { %v4641_v54 = vpop.permute.xlu0 %571  ;;  %v1544_v14 = vsel %vm1528_vm8, %v1511_v59, %v1043_v34  ;;  %v524_v34 = vsel %vm454_vm1, %v521_v35, %v523_v46  ;;  %v699_v20 = vsel %vm631_vm2, %v697_v38, %v698_v57  ;;  %v701_v35 = vsel %vm631_vm2, %v698_v57, %v700_v37 }
 0x199   : > { %v4647_v48 = vpop.permute.xlu1 %945  ;;  %v1577_v4 = vsel %vm1561_vm9, %v1544_v14, %v1139_v41  ;;  %v330_v59 = vrot.slane %v4680_v19, 7  ;;  %v331_v14 = vrot.slane %v4684_v30, 7  ;;  %v1413_v46 = vsel %vm1396_vm4, %v4179_v36, %v4550_v63 }
 0x19a   : > { %1154 = vrot.lane.b32.xlu0 %v4615_v10, %s3672_s25  ;;  %v1610_v53 = vsel %vm1594_vm10, %v1577_v4, %v1235_v52  ;;  %v1446_v4 = vsel %vm1429_vm5, %v1413_v46, %v4577_v47 }
 0x19b   : > { %1248 = vrot.lane.b32.xlu1 %v522_v12, %s5727_s8  ;;  %v4699_v57 = vsel %vm288_vm0, 0.0, %v330_v59 }
 0x19c   : > { %v1045_v42 = vpop.permute.xlu0 %1044  ;;  %v525_v37 = vrot.slane %v4699_v57, 1 }
 0x19d   : > { %v1331_v44 = vpop.permute.xlu1 %1330 }
 0x19e   : > { %v1643_v45 = vsel %vm1627_vm11, %v1610_v53, %v1331_v44  ;;  %859 = vrot.lane.b32.xlu0 %v4615_v10, %s3668_s11  ;;  %v1479_v53 = vsel %vm1462_vm6, %v1446_v4, %v4586_v25 }
 0x19f   : > { %959 = vrot.lane.b32.xlu1 %v522_v12, %s3670_s13  ;;  %3317 = vmatmul.mubr.msk.f32.gmra.mrb[14].mxu0 %vm1665_vm12, %v1643_v45  ;;  %v4706_v45 = vsel %vm288_vm0, %v330_v59, %v331_v14  ;;  %v1512_v36 = vsel %vm1495_vm7, %v1479_v53, %v4612_v28 }
 0x1a0   : > { %v4665_v41 = vpop.permute.xlu0 %573  ;;  %v1545_v47 = vsel %vm1528_vm8, %v1512_v36, %v1045_v42  ;;  %v526_v59 = vrot.slane %v4706_v45, 1  ;;  %v1414_v42 = vsel %vm1396_vm4, %v4186_v22, %v4574_v60  ;;  %v419_v36 = vsel %vm288_vm0, %v331_v14, 0.0 }
 0x1a1   : > { %v4668_v56 = vpop.permute.xlu1 %748  ;;  %v702_v14 = vrot.slane %v4699_v57, 2 }
 0x1a2   : > { %1250 = vrot.lane.b32.xlu0 %v524_v34, %s5727_s8 }
 0x1a3   : > { %1344 = vrot.lane.b32.xlu1 %v699_v20, %s5725_s17 }
 0x1a4   : > { %v1047_v52 = vpop.permute.xlu0 %1046 }
 0x1a5   : > { %v1141_v33 = vpop.permute.xlu1 %1140 }
 0x1a6   : > { %587 = vrot.lane.b32.xlu0 %v522_v12, %s3667_s10  ;;  %v1578_v25 = vsel %vm1561_vm9, %v1545_v47, %v1141_v33  ;;  %v1447_v33 = vsel %vm1429_vm5, %v1414_v42, %v4583_v24  ;;  %v528_v24 = vrot.slane %v419_v36, 1 }
 0x1a7   : > { %961 = vrot.lane.b32.xlu1 %v524_v34, %s3670_s13 }
 0x1a8   : > { %v4674_v15 = vpop.permute.xlu0 %750 }
 0x1a9   : > { %v4677_v40 = vpop.permute.xlu1 %845 }
 0x1aa   : > { %1060 = vrot.lane.b32.xlu0 %v699_v20, %s3671_s14 }
 0x1ab   : > { %1346 = vrot.lane.b32.xlu1 %v701_v35, %s5725_s17 }
 0x1ac   : > { %v1143_v32 = vpop.permute.xlu0 %1142 }
 0x1ad   : > { %v1237_v12 = vpop.permute.xlu1 %1236 }
 0x1ae   : > { %589 = vrot.lane.b32.xlu0 %v524_v34, %s3667_s10  ;;  %v1611_v28 = vsel %vm1594_vm10, %v1578_v25, %v1237_v12  ;;  %v527_v12 = vsel %vm454_vm1, %v525_v37, %v526_v59 }
 0x1af   : > { %764 = vrot.lane.b32.xlu1 %v699_v20, %s3669_s12 }
 0x1b0   : > { %v4696_v38 = vpop.permute.xlu0 %847 }
 0x1b1   : > { %v4703_v44 = vpop.permute.xlu1 %947 }
 0x1b2   : > { %v4710_v63 = vpop.f32.mrb[2].mxu0  ;;  %1062 = vrot.lane.b32.xlu0 %v701_v35, %s3671_s14 }
 0x1b3   : > { %1156 = vrot.lane.b32.xlu1 %v4699_v57, %s3672_s25  ;;  %v4716_v34 = vpop.f32.mrb[3].mxu0 }
 0x1b4   : > { %5732 = vst [vmem:[#allocation6_spill] sm:$0xff] %v4716_v34  ;;  %v1239_v20 = vpop.permute.xlu0 %1238 }
 0x1b5   : > { %v1333_v46 = vpop.permute.xlu1 %1332 }
 0x1b6   : > { %v1644_v4 = vsel %vm1627_vm11, %v1611_v28, %v1333_v46  ;;  %766 = vrot.lane.b32.xlu0 %v701_v35, %s3669_s12  ;;  %v1480_v35 = vsel %vm1462_vm6, %v1447_v33, %v4605_v39  ;;  %v703_v39 = vrot.slane %v4706_v45, 2  ;;  %v705_v33 = vrot.slane %v419_v36, 2 }
 0x1b7   : > { %861 = vrot.lane.b32.xlu1 %v4699_v57, %s3668_s11  ;;  %3319 = vmatprep.mubr.msk.f32.mxu0 %vm1665_vm12, %v1644_v4  ;;  %v1513_v22 = vsel %vm1495_vm7, %v1480_v35, %v4647_v48 }
 0x1b8   : > { %v4732_v53 = vpop.permute.xlu0 %575  ;;  %v1546_v60 = vsel %vm1528_vm8, %v1513_v22, %v1047_v52  ;;  %v529_v52 = vsel %vm454_vm1, %v526_v59, %v528_v24  ;;  %v704_v4 = vsel %vm631_vm2, %v702_v14, %v703_v39  ;;  %v706_v59 = vsel %vm631_vm2, %v703_v39, %v705_v33  ;;  %v4771_v24 = vld [vmem:[%s3777_s9 + $0xe0] sm:$0xff] }
 0x1b9   : > { %v4738_v47 = vpop.permute.xlu1 %949  ;;  %v1579_v25 = vsel %vm1561_vm9, %v1546_v60, %v1143_v32  ;;  %v333_v14 = vrot.slane %v4771_v24, 7  ;;  %v1415_v39 = vsel %vm1396_vm4, %v4260_v58, %v4641_v54 }
 0x1ba   : > { %1158 = vrot.lane.b32.xlu0 %v4706_v45, %s3672_s25  ;;  %v1612_v28 = vsel %vm1594_vm10, %v1579_v25, %v1239_v20  ;;  %v4775_v25 = vld [vmem:[%s3777_s9 + $0xe8] sm:$0xff] }
 0x1bb   : > { %1252 = vrot.lane.b32.xlu1 %v527_v12, %s5727_s8  ;;  %v4790_v33 = vsel %vm288_vm0, 0.0, %v333_v14 }
 0x1bc   : > { %v1049_v37 = vpop.permute.xlu0 %1048 }
 0x1bd   : > { %v1335_v46 = vpop.permute.xlu1 %1334 }
 0x1be   : > { %v1645_v48 = vsel %vm1627_vm11, %v1612_v28, %v1335_v46  ;;  %863 = vrot.lane.b32.xlu0 %v4706_v45, %s3668_s11  ;;  %v334_v28 = vrot.slane %v4775_v25, 7  ;;  %v1448_v46 = vsel %vm1429_vm5, %v1415_v39, %v4668_v56 }
 0x1bf   : > { %963 = vrot.lane.b32.xlu1 %v527_v12, %s3670_s13  ;;  %3320 = vmatmul.mubr.msk.f32.gmra.mrb[16].mxu0 %vm1665_vm12, %v1645_v48  ;;  %v1481_v9 = vsel %vm1462_vm6, %v1448_v46, %v4677_v40 }
 0x1c0   : > { %v4756_v32 = vpop.permute.xlu0 %577  ;;  %v1514_v58 = vsel %vm1495_vm7, %v1481_v9, %v4703_v44 }
 0x1c1   : > { %v4759_v42 = vpop.permute.xlu1 %752  ;;  %v1547_v56 = vsel %vm1528_vm8, %v1514_v58, %v1049_v37  ;;  %v1416_v37 = vsel %vm1396_vm4, %v4267_v31, %v4665_v41 }
 0x1c2   : > { %1254 = vrot.lane.b32.xlu0 %v529_v52, %s5727_s8 }
 0x1c3   : > { %1348 = vrot.lane.b32.xlu1 %v704_v4, %s5725_s17 }
 0x1c4   : > { %v1051_v20 = vpop.permute.xlu0 %1050 }
 0x1c5   : > { %v1145_v35 = vpop.permute.xlu1 %1144 }
 0x1c6   : > { %591 = vrot.lane.b32.xlu0 %v527_v12, %s3667_s10  ;;  %v1580_v40 = vsel %vm1561_vm9, %v1547_v56, %v1145_v35  ;;  %v1449_v35 = vsel %vm1429_vm5, %v1416_v37, %v4674_v15  ;;  %v420_v56 = vsel %vm288_vm0, %v334_v28, 0.0 }
 0x1c7   : > { %965 = vrot.lane.b32.xlu1 %v529_v52, %s3670_s13  ;;  %v533_v41 = vrot.slane %v420_v56, 1 }
 0x1c8   : > { %v4765_v22 = vpop.permute.xlu0 %754 }
 0x1c9   : > { %v4768_v60 = vpop.permute.xlu1 %849 }
 0x1ca   : > { %1064 = vrot.lane.b32.xlu0 %v704_v4, %s3671_s14 }
 0x1cb   : > { %1350 = vrot.lane.b32.xlu1 %v706_v59, %s5725_s17 }
 0x1cc   : > { %v1147_v36 = vpop.permute.xlu0 %1146 }
 0x1cd   : > { %v1241_v12 = vpop.permute.xlu1 %1240 }
 0x1ce   : > { %593 = vrot.lane.b32.xlu0 %v529_v52, %s3667_s10  ;;  %v4797_v52 = vsel %vm288_vm0, %v333_v14, %v334_v28  ;;  %v530_v14 = vrot.slane %v4790_v33, 1  ;;  %v1613_v9 = vsel %vm1594_vm10, %v1580_v40, %v1241_v12  ;;  %v707_v28 = vrot.slane %v4790_v33, 2 }
 0x1cf   : > { %768 = vrot.lane.b32.xlu1 %v704_v4, %s3669_s12  ;;  %v531_v46 = vrot.slane %v4797_v52, 1 }
 0x1d0   : > { %v4787_v48 = vpop.permute.xlu0 %851 }
 0x1d1   : > { %v4794_v8 = vpop.permute.xlu1 %951  ;;  %v532_v12 = vsel %vm454_vm1, %v530_v14, %v531_v46 }
 0x1d2   : > { %v4801_v54 = vpop.f32.mrb[4].mxu0  ;;  %1066 = vrot.lane.b32.xlu0 %v706_v59, %s3671_s14 }
 0x1d3   : > { %5733 = vst [vmem:[#allocation7_spill] sm:$0xff] %v4801_v54  ;;  %1160 = vrot.lane.b32.xlu1 %v4790_v33, %s3672_s25  ;;  %v4807_v4 = vpop.f32.mrb[5].mxu0 }
 0x1d4   : > { %5734 = vst [vmem:[#allocation8_spill] sm:$0xff] %v4807_v4  ;;  %v1243_v39 = vpop.permute.xlu0 %1242 }
 0x1d5   : > { %v1337_v44 = vpop.permute.xlu1 %1336 }
 0x1d6   : > { %v1646_v6 = vsel %vm1627_vm11, %v1613_v9, %v1337_v44  ;;  %770 = vrot.lane.b32.xlu0 %v706_v59, %s3669_s12  ;;  %v1482_v59 = vsel %vm1462_vm6, %v1449_v35, %v4696_v38  ;;  %v708_v38 = vrot.slane %v4797_v52, 2 }
 0x1d7   : > { %865 = vrot.lane.b32.xlu1 %v4790_v33, %s3668_s11  ;;  %3322 = vmatprep.mubr.msk.f32.mxu0 %vm1665_vm12, %v1646_v6  ;;  %v1515_v31 = vsel %vm1495_vm7, %v1482_v59, %v4738_v47  ;;  %v710_v59 = vrot.slane %v420_v56, 2 }
 0x1d8   : > { %v4823_v58 = vpop.permute.xlu0 %579  ;;  %v1548_v6 = vsel %vm1528_vm8, %v1515_v31, %v1051_v20  ;;  %v534_v20 = vsel %vm454_vm1, %v531_v46, %v533_v41  ;;  %v709_v37 = vsel %vm631_vm2, %v707_v28, %v708_v38  ;;  %v4866_v28 = vld [vmem:[%s3777_s9 + $0xf8] sm:$0xff] }
 0x1d9   : > { %v4829_v40 = vpop.permute.xlu1 %953  ;;  %v1581_v15 = vsel %vm1561_vm9, %v1548_v6, %v1147_v36  ;;  %v711_v46 = vsel %vm631_vm2, %v708_v38, %v710_v59  ;;  %v1417_v38 = vsel %vm1396_vm4, %v4347_v51, %v4732_v53 }
 0x1da   : > { %1162 = vrot.lane.b32.xlu0 %v4797_v52, %s3672_s25  ;;  %v1614_v9 = vsel %vm1594_vm10, %v1581_v15, %v1243_v39  ;;  %v4862_v15 = vld [vmem:[%s3777_s9 + $0xf0] sm:$0xff] }
 0x1db   : > { %1256 = vrot.lane.b32.xlu1 %v532_v12, %s5727_s8 }
 0x1dc   : > { %v1053_v14 = vpop.permute.xlu0 %1052 }
 0x1dd   : > { %v1339_v44 = vpop.permute.xlu1 %1338 }
 0x1de   : > { %v1647_v47 = vsel %vm1627_vm11, %v1614_v9, %v1339_v44  ;;  %867 = vrot.lane.b32.xlu0 %v4797_v52, %s3668_s11  ;;  %v336_v9 = vrot.slane %v4862_v15, 7  ;;  %v337_v44 = vrot.slane %v4866_v28, 7 }
 0x1df   : > { %967 = vrot.lane.b32.xlu1 %v532_v12, %s3670_s13  ;;  %3323 = vmatmul.mubr.msk.f32.gmra.mrb[18].mxu0 %vm1665_vm12, %v1647_v47  ;;  %v1450_v47 = vsel %vm1429_vm5, %v1417_v38, %v4759_v42 }
 0x1e0   : > { %v4847_v36 = vpop.permute.xlu0 %581  ;;  %v404_v7 = vsel %vm288_vm0, 0.0, %v336_v9  ;;  %v1483_v3 = vsel %vm1462_vm6, %v1450_v47, %v4768_v60 }
 0x1e1   : > { %v4850_v35 = vpop.permute.xlu1 %756  ;;  %v1516_v54 = vsel %vm1495_vm7, %v1483_v3, %v4794_v8  ;;  %v906_v60 = vrot.slane %v404_v7, 1  ;;  %v1418_v8 = vsel %vm1396_vm4, %v4354_v49, %v4756_v32 }
 0x1e2   : > { %1258 = vrot.lane.b32.xlu0 %v534_v20, %s5727_s8  ;;  %v1549_v53 = vsel %vm1528_vm8, %v1516_v54, %v1053_v14  ;;  %v1451_v54 = vsel %vm1429_vm5, %v1418_v8, %v4765_v22 }
 0x1e3   : > { %1352 = vrot.lane.b32.xlu1 %v709_v37, %s5725_s17 }
 0x1e4   : > { %v1055_v39 = vpop.permute.xlu0 %1054 }
 0x1e5   : > { %v1149_v31 = vpop.permute.xlu1 %1148 }
 0x1e6   : > { %595 = vrot.lane.b32.xlu0 %v532_v12, %s3667_s10 }
 0x1e7   : > { %969 = vrot.lane.b32.xlu1 %v534_v20, %s3670_s13 }
 0x1e8   : > { %v4856_v6 = vpop.permute.xlu0 %758 }
 0x1e9   : > { %v4859_v41 = vpop.permute.xlu1 %853 }
 0x1ea   : > { %1068 = vrot.lane.b32.xlu0 %v709_v37, %s3671_s14 }
 0x1eb   : > { %1354 = vrot.lane.b32.xlu1 %v711_v46, %s5725_s17 }
 0x1ec   : > { %v1151_v56 = vpop.permute.xlu0 %1150 }
 0x1ed   : > { %v1245_v12 = vpop.permute.xlu1 %1244 }
 0x1ee   : > { %597 = vrot.lane.b32.xlu0 %v534_v20, %s3667_s10  ;;  %v338_v20 = vsel %vm288_vm0, %v336_v9, %v337_v44 }
 0x1ef   : > { %772 = vrot.lane.b32.xlu1 %v709_v37, %s3669_s12  ;;  %v1582_v37 = vsel %vm1561_vm9, %v1549_v53, %v1149_v31  ;;  %v907_v47 = vrot.slane %v338_v20, 1 }
 0x1f0   : > { %v4878_v59 = vpop.permute.xlu0 %855  ;;  %v1615_v9 = vsel %vm1594_vm10, %v1582_v37, %v1245_v12  ;;  %v421_v12 = vsel %vm288_vm0, %v337_v44, 0.0  ;;  %v1007_v37 = vrot.slane %v404_v7, 2 }
 0x1f1   : > { %v4883_v4 = vpop.permute.xlu1 %955  ;;  %v908_v31 = vsel %vm454_vm1, %v906_v60, %v907_v47  ;;  %v909_v22 = vrot.slane %v421_v12, 1  ;;  %v1008_v60 = vrot.slane %v338_v20, 2 }
 0x1f2   : > { %v4888_v51 = vpop.f32.mrb[6].mxu0  ;;  %1070 = vrot.lane.b32.xlu0 %v711_v46, %s3671_s14 }
 0x1f3   : > { %1164 = vrot.lane.b32.xlu1 %v404_v7, %s3672_s25  ;;  %v4893_v42 = vpop.f32.mrb[7].mxu0 }
 0x1f4   : > { %v1247_v38 = vpop.permute.xlu0 %1246 }
 0x1f5   : > { %v1341_v34 = vpop.permute.xlu1 %1340 }
 0x1f6   : > { %v1648_v3 = vsel %vm1627_vm11, %v1615_v9, %v1341_v34  ;;  %774 = vrot.lane.b32.xlu0 %v711_v46, %s3669_s12  ;;  %v1484_v34 = vsel %vm1462_vm6, %v1451_v54, %v4787_v48 }
 0x1f7   : > { %869 = vrot.lane.b32.xlu1 %v404_v7, %s3668_s11  ;;  %3325 = vmatprep.mubr.msk.f32.mxu0 %vm1665_vm12, %v1648_v3  ;;  %v1517_v49 = vsel %vm1495_vm7, %v1484_v34, %v4829_v40  ;;  %v910_v40 = vsel %vm454_vm1, %v907_v47, %v909_v22  ;;  %v3489_v34 = vpack.i.bf16 %v3757_v1, %v3762_v2  ;;  %v3584_v22 = vld [vmem:[%s3777_s9 + $0x80] sm:$0xff] }
 0x1f8   : > { %v4906_v14 = vpop.permute.xlu0 %583  ;;  %v1550_v32 = vsel %vm1528_vm8, %v1517_v49, %v1055_v39 }
 0x1f9   : > { %v4912_v46 = vpop.permute.xlu1 %957  ;;  %v1583_v53 = vsel %vm1561_vm9, %v1550_v32, %v1151_v56  ;;  %v1009_v56 = vsel %vm631_vm2, %v1007_v37, %v1008_v60  ;;  %v1419_v32 = vsel %vm1396_vm4, %v4434_v13, %v4823_v58  ;;  %v3587_v58 = vld [vmem:[%s3777_s9 + $0x8] sm:$0xff] }
 0x1fa   : > { %1166 = vrot.lane.b32.xlu0 %v338_v20, %s3672_s25  ;;  %v1616_v9 = vsel %vm1594_vm10, %v1583_v53, %v1247_v38  ;;  %v1010_v38 = vrot.slane %v421_v12, 2  ;;  %v3585_v53 = vld [vmem:[%s3777_s9 + $0x88] sm:$0xff]  ;;  %v1452_v1 = vsel %vm1429_vm5, %v1419_v32, %v4850_v35  ;;  %v3589_v32 = vld [vmem:[%s3777_s9 + $0x18] sm:$0xff] }
 0x1fb   : > { %1260 = vrot.lane.b32.xlu1 %v908_v31, %s5727_s8  ;;  %v3504_v37 = vpack.i.bf16 %v3585_v53, %v3584_v22  ;;  %v1420_v53 = vsel %vm1396_vm4, %v4441_v26, %v4847_v36  ;;  %v3590_v36 = vld [vmem:[%s3777_s9 + $0x20] sm:$0xff] }
 0x1fc   : > { %v1057_v44 = vpop.permute.xlu0 %1056  ;;  %v1011_v47 = vsel %vm631_vm2, %v1008_v60, %v1010_v38 }
 0x1fd   : > { %v1343_v48 = vpop.permute.xlu1 %1342 }
 0x1fe   : > { %v1649_v3 = vsel %vm1627_vm11, %v1616_v9, %v1343_v48  ;;  %871 = vrot.lane.b32.xlu0 %v338_v20, %s3668_s11  ;;  %v1485_v9 = vsel %vm1462_vm6, %v1452_v1, %v4859_v41  ;;  %v3514_v41 = vpack.i.bf16 %v4332_v17, %v4328_v61  ;;  %v3524_v61 = vpack.i.bf16 %v4419_v50, %v4415_v5  ;;  %v3591_v1 = vld [vmem:[%s3777_s9 + $0x28] sm:$0xff] }
 0x1ff   : > { %971 = vrot.lane.b32.xlu1 %v908_v31, %s3670_s13  ;;  %3326 = vmatmul.mubr.msk.f32.gmra.mrb[20].mxu0 %vm1665_vm12, %v1649_v3  ;;  %v1518_v3 = vsel %vm1495_vm7, %v1485_v9, %v4883_v4  ;;  %v1453_v17 = vsel %vm1429_vm5, %v1420_v53, %v4856_v6  ;;  %v3529_v5 = vpack.i.bf16 %v3591_v1, %v3590_v36 }
 0x200   : > { %v4926_v39 = vpop.permute.xlu0 %585  ;;  %v3534_v6 = vpack.i.bf16 %v4506_v11, %v4502_v27  ;;  %v1421_v1 = vsel %vm1396_vm4, %v4521_v23, %v4906_v14 }
 0x201   : > { %v4929_v7 = vpop.permute.xlu1 %760 }
 0x202   : > { %1262 = vrot.lane.b32.xlu0 %v910_v40, %s5727_s8 }
 0x203   : > { %1356 = vrot.lane.b32.xlu1 %v1009_v56, %s5725_s17 }
 0x204   : > { %v1059_v8 = vpop.permute.xlu0 %1058 }
 0x205   : > { %v1153_v20 = vpop.permute.xlu1 %1152 }
 0x206   : > { %973 = vrot.lane.b32.xlu0 %v910_v40, %s3670_s13  ;;  %v1551_v40 = vsel %vm1528_vm8, %v1518_v3, %v1057_v44  ;;  %v3588_v44 = vld [vmem:[%s3777_s9 + $0x10] sm:$0xff] }
 0x207   : > { %1072 = vrot.lane.b32.xlu1 %v1009_v56, %s3671_s14  ;;  %v1584_v4 = vsel %vm1561_vm9, %v1551_v40, %v1153_v20  ;;  %v3519_v22 = vpack.i.bf16 %v3589_v32, %v3588_v44  ;;  %v3594_v40 = vld [vmem:[%s3777_s9 + $0x40] sm:$0xff] }
 0x208   : > { %v4936_v54 = vpop.permute.xlu0 %762 }
 0x209   : > { %v4938_v31 = vpop.permute.xlu1 %857 }
 0x20a   : > { %1358 = vrot.lane.b32.xlu0 %v1011_v47, %s5725_s17 }
 0x20b   : > { %1074 = vrot.lane.b32.xlu1 %v1011_v47, %s3671_s14 }
 0x20c   : > { %v1155_v12 = vpop.permute.xlu0 %1154 }
 0x20d   : > { %v1249_v49 = vpop.permute.xlu1 %1248 }
 0x20e   : > { %3490 = vrot.lane.b32.xlu0 %v3489_v34, %s3672_s25  ;;  %v1617_v47 = vsel %vm1594_vm10, %v1584_v4, %v1249_v49  ;;  %v1486_v49 = vsel %vm1462_vm6, %v1453_v17, %v4878_v59 }
 0x20f   : > { %3495 = vrot.lane.b32.xlu1 %v3793_v16, %s5727_s8  ;;  %v3586_v16 = vld [vmem:[%s3777_s9] sm:$0xff]  ;;  %v1519_v26 = vsel %vm1495_vm7, %v1486_v49, %v4912_v46  ;;  %v3600_v49 = vld [vmem:[%s3777_s9 + $0x70] sm:$0xff] }
 0x210   : > { %v4954_v60 = vpop.permute.xlu0 %859  ;;  %v3509_v35 = vpack.i.bf16 %v3587_v58, %v3586_v16  ;;  %v1552_v50 = vsel %vm1528_vm8, %v1519_v26, %v1059_v8  ;;  %v3592_v58 = vld [vmem:[%s3777_s9 + $0x30] sm:$0xff]  ;;  %v3593_v8 = vld [vmem:[%s3777_s9 + $0x38] sm:$0xff] }
 0x211   : > { %v4958_v48 = vpop.permute.xlu1 %959  ;;  %v1585_v59 = vsel %vm1561_vm9, %v1552_v50, %v1155_v12  ;;  %v3544_v12 = vpack.i.bf16 %v4593_v62, %v4589_v29  ;;  %v3598_v62 = vld [vmem:[%s3777_s9 + $0x60] sm:$0xff]  ;;  %v3601_v26 = vld [vmem:[%s3777_s9 + $0x78] sm:$0xff] }
 0x212   : > { %v4962_v13 = vpop.f32.mrb[8].mxu0  ;;  %3500 = vrot.lane.b32.xlu0 %v3795_v18, %s5725_s17  ;;  %v3579_v36 = vpack.i.bf16 %v3601_v26, %v3600_v49 }
 0x213   : > { %v4969_v56 = vpop.f32.mrb[9].mxu0  ;;  %3505 = vrot.lane.b32.xlu1 %v3504_v37, %s3667_s10 }
 0x214   : > { %v1251_v38 = vpop.permute.xlu0 %1250 }
 0x215   : > { %v1345_v34 = vpop.permute.xlu1 %1344  ;;  %v1618_v3 = vsel %vm1594_vm10, %v1585_v59, %v1251_v38 }
 0x216   : > { %v1650_v18 = vsel %vm1627_vm11, %v1617_v47, %v1345_v34  ;;  %3510 = vrot.lane.b32.xlu0 %v3509_v35, %s3667_s10  ;;  %v3539_v35 = vpack.i.bf16 %v3593_v8, %v3592_v58  ;;  %v3596_v34 = vld [vmem:[%s3777_s9 + $0x50] sm:$0xff] }
 0x217   : > { %3328 = vmatprep.mubr.msk.f32.mxu0 %vm1665_vm12, %v1650_v18  ;;  %3515 = vrot.lane.b32.xlu1 %v3514_v41, %s3667_s10  ;;  %v3595_v41 = vld [vmem:[%s3777_s9 + $0x48] sm:$0xff]  ;;  %v3597_v18 = vld [vmem:[%s3777_s9 + $0x58] sm:$0xff] }
 0x218   : > { %v4989_v20 = vpop.permute.xlu0 %587  ;;  %v3549_v4 = vpack.i.bf16 %v3595_v41, %v3594_v40  ;;  %v3559_v44 = vpack.i.bf16 %v3597_v18, %v3596_v34 }
 0x219   : > { %v4993_v37 = vpop.permute.xlu1 %961 }
 0x21a   : > { %3520 = vrot.lane.b32.xlu0 %v3519_v22, %s3667_s10  ;;  %v3599_v22 = vld [vmem:[%s3777_s9 + $0x68] sm:$0xff] }
 0x21b   : > { %3525 = vrot.lane.b32.xlu1 %v3524_v61, %s3667_s10  ;;  %v3569_v53 = vpack.i.bf16 %v3599_v22, %v3598_v62 }
 0x21c   : > { %v1061_v9 = vpop.permute.xlu0 %1060 }
 0x21d   : > { %v1347_v46 = vpop.permute.xlu1 %1346 }
 0x21e   : > { %v1651_v16 = vsel %vm1627_vm11, %v1618_v3, %v1347_v46  ;;  %3530 = vrot.lane.b32.xlu0 %v3529_v5, %s3667_s10  ;;  %v1454_v5 = vsel %vm1429_vm5, %v1421_v1, %v4929_v7 }
 0x21f   : > { %3329 = vmatmul.mubr.msk.f32.gmra.mrb[22].mxu0 %vm1665_vm12, %v1651_v16  ;;  %3535 = vrot.lane.b32.xlu1 %v3534_v6, %s3667_s10  ;;  %v1487_v6 = vsel %vm1462_vm6, %v1454_v5, %v4938_v31 }
 0x220   : > { %v5012_v27 = vpop.permute.xlu0 %589  ;;  %v1520_v3 = vsel %vm1495_vm7, %v1487_v6, %v4958_v48  ;;  %v1422_v48 = vsel %vm1396_vm4, %v4528_v0, %v4926_v39 }
 0x221   : > { %v5014_v11 = vpop.permute.xlu1 %764  ;;  %v1553_v16 = vsel %vm1528_vm8, %v1520_v3, %v1061_v9 }
 0x222   : > { %3540 = vrot.lane.b32.xlu0 %v3539_v35, %s3667_s10  ;;  %v1455_v35 = vsel %vm1429_vm5, %v1422_v48, %v4936_v54  ;;  %v3554_v54 = vpack.i.bf16 %v4684_v30, %v4680_v19 }
 0x223   : > { %3545 = vrot.lane.b32.xlu1 %v3544_v12, %s3667_s10  ;;  %v1488_v12 = vsel %vm1462_vm6, %v1455_v35, %v4954_v60 }
 0x224   : > { %v1063_v38 = vpop.permute.xlu0 %1062  ;;  %v1521_v41 = vsel %vm1495_vm7, %v1488_v12, %v4993_v37 }
 0x225   : > { %v1157_v47 = vpop.permute.xlu1 %1156 }
 0x226   : > { %3550 = vrot.lane.b32.xlu0 %v3549_v4, %s3667_s10  ;;  %v1586_v23 = vsel %vm1561_vm9, %v1553_v16, %v1157_v47  ;;  %v1554_v4 = vsel %vm1528_vm8, %v1521_v41, %v1063_v38 }
 0x227   : > { %3555 = vrot.lane.b32.xlu1 %v3554_v54, %s3667_s10 }
 0x228   : > { %v5025_v32 = vpop.permute.xlu0 %766 }
 0x229   : > { %v862_v29 = vpop.permute.xlu1 %861 }
 0x22a   : > { %3560 = vrot.lane.b32.xlu0 %v3559_v44, %s3667_s10 }
 0x22c   : > { %v1159_v61 = vpop.permute.xlu0 %1158 }
 0x22d   : > { %v1253_v17 = vpop.permute.xlu1 %1252  ;;  %v1587_v47 = vsel %vm1561_vm9, %v1554_v4, %v1159_v61 }
 0x22e   : > { %3570 = vrot.lane.b32.xlu0 %v3569_v53, %s3667_s10  ;;  %v1619_v7 = vsel %vm1594_vm10, %v1586_v23, %v1253_v17  ;;  %v1423_v17 = vsel %vm1396_vm4, %v4608_v43, %v4989_v20 }
 0x22f   : > { %v1456_v19 = vsel %vm1429_vm5, %v1423_v17, %v5014_v11 }
 0x230   : > { %v864_v50 = vpop.permute.xlu0 %863  ;;  %v1489_v49 = vsel %vm1462_vm6, %v1456_v19, %v862_v29  ;;  %v1424_v29 = vsel %vm1396_vm4, %v4615_v10, %v5012_v27  ;;  %v3564_v27 = vpack.i.bf16 %v4775_v25, %v4771_v24 }
 0x231   : > { %v964_v59 = vpop.permute.xlu1 %963 }
 0x232   : > { %v5042_v46 = vpop.f32.mrb[10].mxu0  ;;  %3580 = vrot.lane.b32.xlu0 %v3579_v36, %s3667_s10  ;;  %v1522_v36 = vsel %vm1495_vm7, %v1489_v49, %v964_v59  ;;  %v1457_v59 = vsel %vm1429_vm5, %v1424_v29, %v5025_v32  ;;  %3565 = vrot.lane.b32.xlu1 %v3564_v27, %s3667_s10 }
 0x233   : > { %v5046_v58 = vpop.f32.mrb[11].mxu0 }
 0x234   : > { %v1255_v14 = vpop.permute.xlu0 %1254 }
 0x235   : > { %v1349_v8 = vpop.permute.xlu1 %1348  ;;  %v1620_v0 = vsel %vm1594_vm10, %v1587_v47, %v1255_v14  ;;  %v1490_v14 = vsel %vm1462_vm6, %v1457_v59, %v864_v50  ;;  %v3574_v50 = vpack.i.bf16 %v4866_v28, %v4862_v15 }
 0x236   : > { %v1652_v31 = vsel %vm1627_vm11, %v1619_v7, %v1349_v8 }
 0x237   : > { %3331 = vmatprep.mubr.msk.f32.mxu0 %vm1665_vm12, %v1652_v31  ;;  %3575 = vrot.lane.b32.xlu1 %v3574_v50, %s3667_s10 }
 0x238   : > { %v592_v9 = vpop.permute.xlu0 %591 }
 0x239   : > { %v966_v40 = vpop.permute.xlu1 %965  ;;  %v1425_v24 = vsel %vm1396_vm4, %v4699_v57, %v592_v9 }
 0x23a   : > { %v1523_v8 = vsel %vm1495_vm7, %v1490_v14, %v966_v40  ;;  %v1992_v14 = vmul.f32 0.2, %v4619_v21 }
 0x23c   : > { %v1065_v34 = vpop.permute.xlu0 %1064 }
 0x23d   : > { %v1351_v39 = vpop.permute.xlu1 %1350  ;;  %v1555_v5 = vsel %vm1528_vm8, %v1522_v36, %v1065_v34 }
 0x23e   : > { %v1653_v18 = vsel %vm1627_vm11, %v1620_v0, %v1351_v39 }
 0x23f   : > { %3332 = vmatmul.mubr.msk.f32.gmra.mrb[24].mxu0 %vm1665_vm12, %v1653_v18 }
 0x240   : > { %v5068_v60 = vpop.permute.xlu0 %593 }
 0x241   : > { %v769_v37 = vpop.permute.xlu1 %768  ;;  %v1426_v9 = vsel %vm1396_vm4, %v4706_v45, %v5068_v60 }
 0x242   : > { %v1458_v25 = vsel %vm1429_vm5, %v1425_v24, %v769_v37 }
 0x244   : > { %v1067_v44 = vpop.permute.xlu0 %1066 }
 0x245   : > { %v1161_v38 = vpop.permute.xlu1 %1160  ;;  %v1556_v31 = vsel %vm1528_vm8, %v1523_v8, %v1067_v44 }
 0x246   : > { %v1588_v3 = vsel %vm1561_vm9, %v1555_v5, %v1161_v38 }
 0x248   : > { %v771_v62 = vpop.permute.xlu0 %770 }
 0x249   : > { %v866_v22 = vpop.permute.xlu1 %865 }
 0x24a   : > { %v1491_v44 = vsel %vm1462_vm6, %v1458_v25, %v866_v22  ;;  %v1459_v22 = vsel %vm1429_vm5, %v1426_v9, %v771_v62  ;;  %v5737_v9 = vld [vmem:[#allocation8_spill] sm:$0xff] }
 0x24c   : > { %v1163_v53 = vpop.permute.xlu0 %1162 }
 0x24d   : > { %v1257_v61 = vpop.permute.xlu1 %1256  ;;  %v1589_v48 = vsel %vm1561_vm9, %v1556_v31, %v1163_v53 }
 0x24e   : > { %v1621_v43 = vsel %vm1594_vm10, %v1588_v3, %v1257_v61 }
 0x250   : > { %v868_v30 = vpop.permute.xlu0 %867 }
 0x251   : > { %v968_v26 = vpop.permute.xlu1 %967 }
 0x252   : > { %v5078_v1 = vpop.f32.mrb[12].mxu0  ;;  %v1524_v15 = vsel %vm1495_vm7, %v1491_v44, %v968_v26  ;;  %v1492_v26 = vsel %vm1462_vm6, %v1459_v22, %v868_v30 }
 0x253   : > { %v5081_v6 = vpop.f32.mrb[13].mxu0 }
 0x254   : > { %v1259_v16 = vpop.permute.xlu0 %1258 }
 0x255   : > { %v1353_v20 = vpop.permute.xlu1 %1352  ;;  %v1622_v12 = vsel %vm1594_vm10, %v1589_v48, %v1259_v16 }
 0x256   : > { %v1654_v11 = vsel %vm1627_vm11, %v1621_v43, %v1353_v20 }
 0x257   : > { %3334 = vmatprep.mubr.msk.f32.mxu0 %vm1665_vm12, %v1654_v11 }
 0x258   : > { %v596_v23 = vpop.permute.xlu0 %595 }
 0x259   : > { %v970_v7 = vpop.permute.xlu1 %969  ;;  %v1427_v62 = vsel %vm1396_vm4, %v4790_v33, %v596_v23 }
 0x25a   : > { %v1525_v5 = vsel %vm1495_vm7, %v1492_v26, %v970_v7  ;;  %v1991_v7 = vmul.f32 0.2, %v4625_v55 }
 0x25c   : > { %v1069_v35 = vpop.permute.xlu0 %1068 }
 0x25d   : > { %v1355_v41 = vpop.permute.xlu1 %1354  ;;  %v1557_v53 = vsel %vm1528_vm8, %v1524_v15, %v1069_v35 }
 0x25e   : > { %v1655_v10 = vsel %vm1627_vm11, %v1622_v12, %v1355_v41 }
 0x25f   : > { %3335 = vmatmul.mubr.msk.f32.gmra.mrb[26].mxu0 %vm1665_vm12, %v1655_v10 }
 0x260   : > { %v598_v32 = vpop.permute.xlu0 %597 }
 0x261   : > { %v773_v40 = vpop.permute.xlu1 %772  ;;  %v1428_v30 = vsel %vm1396_vm4, %v4797_v52, %v598_v32 }
 0x262   : > { %v1460_v29 = vsel %vm1429_vm5, %v1427_v62, %v773_v40 }
 0x264   : > { %v1071_v4 = vpop.permute.xlu0 %1070 }
 0x265   : > { %v1165_v47 = vpop.permute.xlu1 %1164  ;;  %v1558_v16 = vsel %vm1528_vm8, %v1525_v5, %v1071_v4  ;;  %v2024_v4 = vmax.f32 %v4619_v21, %v1992_v14 }
 0x266   : > { %v1590_v17 = vsel %vm1561_vm9, %v1557_v53, %v1165_v47  ;;  %v2023_v47 = vmax.f32 %v4625_v55, %v1991_v7 }
 0x267   : > { %v2056_v53 = vmul.f32 1.4, %v2024_v4  ;;  %v2001_v4 = vmul.f32 0.2, %v5046_v58 }
 0x268   : > { %v775_v34 = vpop.permute.xlu0 %774 }
 0x269   : > { %v870_v0 = vpop.permute.xlu1 %869  ;;  %v1461_v59 = vsel %vm1429_vm5, %v1428_v30, %v775_v34  ;;  %v1994_v34 = vmul.f32 0.2, %v4710_v63 }
 0x26a   : > { %v1493_v8 = vsel %vm1462_vm6, %v1460_v29, %v870_v0  ;;  %v5735_v0 = vld [vmem:[#allocation6_spill] sm:$0xff] }
 0x26b   : > { %v2026_v21 = vmax.f32 %v4710_v63, %v1994_v34 }
 0x26c   : > { %v1167_v39 = vpop.permute.xlu0 %1166 }
 0x26d   : > { %v1261_v18 = vpop.permute.xlu1 %1260  ;;  %v1591_v43 = vsel %vm1561_vm9, %v1558_v16, %v1167_v39  ;;  %v1993_v39 = vmul.f32 0.2, %v5735_v0 }
 0x26e   : > { %v1623_v49 = vsel %vm1594_vm10, %v1590_v17, %v1261_v18  ;;  %v2055_v17 = vmul.f32 1.4, %v2023_v47 }
 0x26f   : > { %v2025_v55 = vmax.f32 %v5735_v0, %v1993_v39 }
 0x270   : > { %v872_v54 = vpop.permute.xlu0 %871 }
 0x271   : > { %v972_v38 = vpop.permute.xlu1 %971  ;;  %v1494_v31 = vsel %vm1462_vm6, %v1461_v59, %v872_v54  ;;  %v2057_v16 = vmul.f32 1.4, %v2025_v55  ;;  %v2000_v59 = vmul.f32 0.2, %v4962_v13 }
 0x272   : > { %v5110_v28 = vpop.f32.mrb[14].mxu0  ;;  %v1526_v33 = vsel %vm1495_vm7, %v1493_v8, %v972_v38 }
 0x273   : > { %v5113_v61 = vpop.f32.mrb[15].mxu0 }
 0x274   : > { %v1263_v19 = vpop.permute.xlu0 %1262 }
 0x275   : > { %v1357_v57 = vpop.permute.xlu1 %1356  ;;  %v1624_v20 = vsel %vm1594_vm10, %v1591_v43, %v1263_v19  ;;  %v1997_v43 = vmul.f32 0.2, %v4893_v42 }
 0x276   : > { %v1656_v37 = vsel %vm1627_vm11, %v1623_v49, %v1357_v57  ;;  %v5736_v49 = vld [vmem:[#allocation7_spill] sm:$0xff] }
 0x277   : > { %3337 = vmatprep.mubr.msk.f32.mxu0 %vm1665_vm12, %v1656_v37  ;;  %v1996_v57 = vmul.f32 0.2, %v5736_v49  ;;  %v1995_v37 = vmul.f32 0.2, %v5737_v9  ;;  %v2029_v8 = vmax.f32 %v4893_v42, %v1997_v43 }
 0x278   : > { %v974_v36 = vpop.permute.xlu0 %973 }
 0x279   : > { %v1073_v3 = vpop.permute.xlu1 %1072  ;;  %v1527_v52 = vsel %vm1495_vm7, %v1494_v31, %v974_v36  ;;  %v1998_v36 = vmul.f32 0.2, %v4888_v51  ;;  %v1999_v31 = vmul.f32 0.2, %v4969_v56  ;;  %v2061_v39 = vmul.f32 1.4, %v2029_v8 }
 0x27a   : > { %v1559_v41 = vsel %vm1528_vm8, %v1526_v33, %v1073_v3  ;;  %v2058_v3 = vmul.f32 1.4, %v2026_v21 }
 0x27b   : > { %v2030_v29 = vmax.f32 %v4888_v51, %v1998_v36 }
 0x27c   : > { %v1359_v11 = vpop.permute.xlu0 %1358 }
 0x27d   : > { %v1657_v45 = vsel %vm1627_vm11, %v1624_v20, %v1359_v11  ;;  %v1075_v60 = vpop.permute.xlu1 %1074 }
 0x27e   : > { %3338 = vmatmul.mubr.msk.f32.gmra.mrb[28].mxu0 %vm1665_vm12, %v1657_v45  ;;  %v1560_v10 = vsel %vm1528_vm8, %v1527_v52, %v1075_v60  ;;  %v2028_v45 = vmax.f32 %v5736_v49, %v1996_v57  ;;  %v2027_v60 = vmax.f32 %v5737_v9, %v1995_v37  ;;  %v2004_v9 = vmul.f32 0.2, %v5078_v1 }
 0x27f   : > { %v2003_v37 = vmul.f32 0.2, %v5081_v6 }
 0x280   : > { %v5140_v48 = vpop.permute.xlu0 %3490 }
 0x281   : > { %v3493_v23 = vunpack.i.h.bf16 %v5140_v48  ;;  %v3492_v35 = vunpack.i.l.bf16 %v5140_v48  ;;  %v3496_v12 = vpop.permute.xlu1 %3495 }
 0x282   : > { %v3498_v27 = vunpack.i.h.bf16 %v3496_v12  ;;  %v3497_v32 = vunpack.i.l.bf16 %v3496_v12  ;;  %v2059_v12 = vmul.f32 1.4, %v2027_v60 }
 0x283   : > { %v1593_v50 = vsel %vm1561_vm9, %v1560_v10, %v3493_v23  ;;  %v1592_v40 = vsel %vm1561_vm9, %v1559_v41, %v3492_v35  ;;  %v2060_v23 = vmul.f32 1.4, %v2028_v45  ;;  %v2062_v10 = vmul.f32 1.4, %v2030_v29 }
 0x284   : > { %v3501_v18 = vpop.permute.xlu0 %3500  ;;  %v1625_v54 = vsel %vm1594_vm10, %v1592_v40, %v3497_v32  ;;  %v1626_v44 = vsel %vm1594_vm10, %v1593_v50, %v3498_v27  ;;  %v2032_v27 = vmax.f32 %v4962_v13, %v2000_v59  ;;  %v2002_v32 = vmul.f32 0.2, %v5042_v46 }
 0x285   : > { %v3503_v24 = vunpack.i.h.bf16 %v3501_v18  ;;  %v3502_v25 = vunpack.i.l.bf16 %v3501_v18  ;;  %v3506_v40 = vpop.permute.xlu1 %3505  ;;  %v2031_v18 = vmax.f32 %v4969_v56, %v1999_v31  ;;  %v2036_v29 = vmax.f32 %v5078_v1, %v2004_v9 }
 0x286   : > { %v3507_v55 = vunpack.i.l.bf16 %v3506_v40  ;;  %v2035_v59 = vmax.f32 %v5081_v6, %v2003_v37 }
 0x287   : > { %v1658_v38 = vsel %vm1627_vm11, %v1625_v54, %v3502_v25  ;;  %v1659_v15 = vsel %vm1627_vm11, %v1626_v44, %v3503_v24  ;;  %v2063_v36 = vmul.f32 1.4, %v2031_v18  ;;  %v2068_v6 = vmul.f32 1.4, %v2036_v29 }
 0x288   : > { %v3511_v19 = vpop.permute.xlu0 %3510  ;;  %3340 = vmatprep.mubr.msk.f32.mxu0 %vm1665_vm12, %v1658_v38 }
 0x289   : > { %v3513_v22 = vunpack.i.h.bf16 %v3511_v19  ;;  %v3512_v26 = vunpack.i.l.bf16 %v3511_v19  ;;  %3341 = vmatmul.mubr.msk.f32.gmra.mrb[30].mxu0 %vm1665_vm12, %v1659_v15  ;;  %v3508_v15 = vunpack.i.h.bf16 %v3506_v40  ;;  %v2033_v19 = vmax.f32 %v5046_v58, %v2001_v4 }
 0x28b   : > { %v5168_v5 = vsel %vm1396_vm4, %v2055_v17, %v3512_v26  ;;  %v5171_v63 = vsel %vm1396_vm4, %v2056_v53, %v3513_v22  ;;  %v2064_v53 = vmul.f32 1.4, %v2032_v27  ;;  %v2034_v17 = vmax.f32 %v5042_v46, %v2002_v32 }
 0x28c   : > { %v3521_v20 = vpop.permute.xlu0 %3520  ;;  %v3389_v11 = vpack.c.bf16 %v5171_v63, %v5168_v5 }
 0x28d   : > { %v3523_v62 = vunpack.i.h.bf16 %v3521_v20  ;;  %v3522_v30 = vunpack.i.l.bf16 %v3521_v20  ;;  %v2066_v20 = vmul.f32 1.4, %v2034_v17 }
 0x28f   : > { %v5181_v14 = vsel %vm1396_vm4, %v2057_v16, %v3522_v30  ;;  %v5184_v7 = vsel %vm1396_vm4, %v2058_v3, %v3523_v62  ;;  %v2065_v30 = vmul.f32 1.4, %v2033_v19 }
 0x290   : > { %v3531_v33 = vpop.permute.xlu0 %3530  ;;  %v3393_v52 = vpack.c.bf16 %v5184_v7, %v5181_v14  ;;  %v2216_v14 = vld [vmem:[%s5714_s4 + $0x8] sm:$0xff] }
 0x291   : > { %v3533_v41 = vunpack.i.h.bf16 %v3531_v33  ;;  %v3532_v51 = vunpack.i.l.bf16 %v3531_v33  ;;  %v2006_v33 = vmul.f32 0.2, %v5110_v28  ;;  %2295 = vmatprep.mubr.f32.mxu1 %v2216_v14 }
 0x292   : > { %v3321_v50 = vpop.f32.mrb[16].mxu0 }
 0x293   : > { %v2008_v42 = vmul.f32 0.2, %v3321_v50  ;;  %v1912_v47 = vpop.f32.mrb[17].mxu0  ;;  %v5194_v34 = vsel %vm1396_vm4, %v2059_v12, %v3532_v51  ;;  %v5197_v0 = vsel %vm1396_vm4, %v2060_v23, %v3533_v41  ;;  %v2005_v23 = vmul.f32 0.2, %v5113_v61 }
 0x294   : > { %v2007_v24 = vmul.f32 0.2, %v1912_v47  ;;  %v3541_v25 = vpop.permute.xlu0 %3540  ;;  %v3397_v13 = vpack.c.bf16 %v5197_v0, %v5194_v34 }
 0x295   : > { %v2040_v54 = vmax.f32 %v3321_v50, %v2008_v42  ;;  %v3543_v44 = vunpack.i.h.bf16 %v3541_v25  ;;  %v3542_v38 = vunpack.i.l.bf16 %v3541_v25  ;;  %v2038_v50 = vmax.f32 %v5110_v28, %v2006_v33 }
 0x296   : > { %v2039_v21 = vmax.f32 %v1912_v47, %v2007_v24  ;;  %v2037_v40 = vmax.f32 %v5113_v61, %v2005_v23 }
 0x297   : > { %v2072_v49 = vmul.f32 1.4, %v2040_v54  ;;  %v5205_v57 = vsel %vm1396_vm4, %v2061_v39, %v3542_v38  ;;  %v5208_v56 = vsel %vm1396_vm4, %v2062_v10, %v3543_v44  ;;  %v2067_v10 = vmul.f32 1.4, %v2035_v59  ;;  %v3516_v38 = vpop.permute.xlu1 %3515 }
 0x298   : > { %v2071_v22 = vmul.f32 1.4, %v2039_v21  ;;  %v3551_v26 = vpop.permute.xlu0 %3550  ;;  %v3401_v46 = vpack.c.bf16 %v5208_v56, %v5205_v57  ;;  %v2070_v39 = vmul.f32 1.4, %v2038_v50  ;;  %v2069_v18 = vmul.f32 1.4, %v2037_v40 }
 0x299   : > { %v3553_v3 = vunpack.i.h.bf16 %v3551_v26  ;;  %v3552_v16 = vunpack.i.l.bf16 %v3551_v26  ;;  %v2200_v58 = vsel %vm1396_vm4, %v2072_v49, %v3508_v15  ;;  %v3517_v49 = vunpack.i.l.bf16 %v3516_v38 }
 0x29a   : > { %v2199_v43 = vsel %vm1396_vm4, %v2071_v22, %v3507_v55  ;;  %v3518_v55 = vunpack.i.h.bf16 %v3516_v38 }
 0x29b   : > { %v3387_v45 = vpack.c.bf16 %v2200_v58, %v2199_v43  ;;  %v5217_v60 = vsel %vm1396_vm4, %v2063_v36, %v3552_v16  ;;  %v5220_v62 = vsel %vm1396_vm4, %v2064_v53, %v3553_v3  ;;  %v3526_v16 = vpop.permute.xlu1 %3525 }
 0x29c   : > { %v3561_v8 = vpop.permute.xlu0 %3560  ;;  %v3405_v31 = vpack.c.bf16 %v5220_v62, %v5217_v60  ;;  %v3527_v59 = vunpack.i.l.bf16 %v3526_v16 }
 0x29d   : > { %v3563_v12 = vunpack.i.h.bf16 %v3561_v8  ;;  %v3562_v41 = vunpack.i.l.bf16 %v3561_v8  ;;  %3388 = vmatprep.subr.bf16.mxu1 %v3387_v45 }
 0x29e   : > { %3390 = vmatpush3.bf16.msra.mxu1 %v3389_v11 }
 0x29f   : > { %v5232_v51 = vsel %vm1396_vm4, %v2065_v30, %v3562_v41  ;;  %v5235_v1 = vsel %vm1396_vm4, %v2066_v20, %v3563_v12  ;;  %v3528_v30 = vunpack.i.h.bf16 %v3526_v16 }
 0x2a0   : > { %v3571_v27 = vpop.permute.xlu0 %3570  ;;  %v3409_v32 = vpack.c.bf16 %v5235_v1, %v5232_v51 }
 0x2a1   : > { %v3573_v4 = vunpack.i.h.bf16 %v3571_v27  ;;  %v3572_v42 = vunpack.i.l.bf16 %v3571_v27 }
 0x2a3   : > { %v5242_v5 = vsel %vm1396_vm4, %v2067_v10, %v3572_v42  ;;  %v5245_v63 = vsel %vm1396_vm4, %v2068_v6, %v3573_v4 }
 0x2a4   : > { %v3581_v11 = vpop.permute.xlu0 %3580  ;;  %v3413_v47 = vpack.c.bf16 %v5245_v63, %v5242_v5  ;;  %v2215_v5 = vld [vmem:[%s5714_s4] sm:$0xff]  ;;  %v2218_v63 = vld [vmem:[%s5714_s4 + $0x18] sm:$0xff] }
 0x2a5   : > { %v3583_v24 = vunpack.i.h.bf16 %v3581_v11  ;;  %v3582_v25 = vunpack.i.l.bf16 %v3581_v11 }
 0x2a7   : > { %v5250_v28 = vsel %vm1396_vm4, %v2069_v18, %v3582_v25  ;;  %v5253_v61 = vsel %vm1396_vm4, %v2070_v39, %v3583_v24  ;;  %v5740_v25 = vrot.slane %v3762_v2, 1 }
 0x2a8   : > { %v3417_v54 = vpack.c.bf16 %v5253_v61, %v5250_v28  ;;  %v2219_v28 = vld [vmem:[%s5714_s4 + $0x20] sm:$0xff]  ;;  %v2222_v61 = vld [vmem:[%s5714_s4 + $0x38] sm:$0xff] }
 0x2b2   : > { %v3324_v44 = vpop.f32.mrb[18].mxu0 }
 0x2b3   : > { %v2010_v15 = vmul.f32 0.2, %v3324_v44  ;;  %v1922_v53 = vpop.f32.mrb[19].mxu0 }
 0x2b4   : > { %v2009_v17 = vmul.f32 0.2, %v1922_v53 }
 0x2b5   : > { %v2042_v21 = vmax.f32 %v3324_v44, %v2010_v15  ;;  %v5742_v15 = vrot.slane %v3762_v2, 2 }
 0x2b6   : > { %v2041_v19 = vmax.f32 %v1922_v53, %v2009_v17 }
 0x2b7   : > { %v2074_v9 = vmul.f32 1.4, %v2042_v21 }
 0x2b8   : > { %v2073_v37 = vmul.f32 1.4, %v2041_v19 }
 0x2b9   : > { %v2202_v22 = vsel %vm1396_vm4, %v2074_v9, %v3518_v55 }
 0x2ba   : > { %v2201_v26 = vsel %vm1396_vm4, %v2073_v37, %v3517_v49 }
 0x2bb   : > { %v3391_v36 = vpack.c.bf16 %v2202_v22, %v2201_v26 }
 0x2bd   : > { %3392 = vmatprep.subr.bf16.mxu1 %v3391_v36 }
 0x2be   : > { %3394 = vmatpush3.bf16.msra.mxu1 %v3393_v52  ;;  %v3536_v52 = vpop.permute.xlu1 %3535 }
 0x2bf   : > { %v3538_v40 = vunpack.i.h.bf16 %v3536_v52  ;;  %v3537_v42 = vunpack.i.l.bf16 %v3536_v52 }
 0x2c2   : > { %v3546_v56 = vpop.permute.xlu1 %3545 }
 0x2c3   : > { %v3548_v19 = vunpack.i.h.bf16 %v3546_v56  ;;  %v3547_v9 = vunpack.i.l.bf16 %v3546_v56  ;;  %v2220_v56 = vld [vmem:[%s5714_s4 + $0x28] sm:$0xff] }
 0x2d2   : > { %v3327_v3 = vpop.f32.mrb[20].mxu0 }
 0x2d3   : > { %v2012_v58 = vmul.f32 0.2, %v3327_v3  ;;  %v1932_v43 = vpop.f32.mrb[21].mxu0 }
 0x2d4   : > { %v2011_v20 = vmul.f32 0.2, %v1932_v43 }
 0x2d5   : > { %v2044_v45 = vmax.f32 %v3327_v3, %v2012_v58  ;;  %v3556_v58 = vpop.permute.xlu1 %3555 }
 0x2d6   : > { %v2043_v29 = vmax.f32 %v1932_v43, %v2011_v20 }
 0x2d7   : > { %v2076_v8 = vmul.f32 1.4, %v2044_v45 }
 0x2d8   : > { %v2075_v33 = vmul.f32 1.4, %v2043_v29  ;;  %v3558_v29 = vunpack.i.h.bf16 %v3556_v58 }
 0x2d9   : > { %v2204_v23 = vsel %vm1396_vm4, %v2076_v8, %v3528_v30  ;;  %v3557_v8 = vunpack.i.l.bf16 %v3556_v58  ;;  %v3566_v62 = vpop.permute.xlu1 %3565 }
 0x2da   : > { %v2203_v12 = vsel %vm1396_vm4, %v2075_v33, %v3527_v59 }
 0x2db   : > { %v3395_v41 = vpack.c.bf16 %v2204_v23, %v2203_v12 }
 0x2dd   : > { %3396 = vmatprep.subr.bf16.mxu1 %v3395_v41  ;;  %v3576_v51 = vpop.permute.xlu1 %3575 }
 0x2de   : > { %3398 = vmatpush3.bf16.msra.mxu1 %v3397_v13  ;;  %v5738_v13 = vld [vmem:[#allocation5_spill] sm:$0xff] }
 0x2df   : > { %v5739_v24 = vrot.slane %v5738_v13, 1  ;;  %v5741_v38 = vrot.slane %v5738_v13, 2  ;;  %v3578_v13 = vunpack.i.h.bf16 %v3576_v51 }
 0x2e1   : > { %v2390_v44 = vsel %vm454_vm1, %v5740_v25, %v5739_v24  ;;  %v2436_v53 = vsel %vm631_vm2, %v5742_v15, %v5741_v38  ;;  %v3577_v25 = vunpack.i.l.bf16 %v3576_v51 }
 0x2e2   : > { %2412 = vrot.lane.b32.xlu1 %v2390_v44, %s3667_s10 }
 0x2e6   : > { %2458 = vrot.lane.b32.xlu1 %v2436_v53, %s3669_s12 }
 0x2ea   : > { %2597 = vrot.lane.b32.xlu1 %v2390_v44, %s5727_s8 }
 0x2ee   : > { %2621 = vrot.lane.b32.xlu1 %v2436_v53, %s5725_s17  ;;  %s3676_s17 = smov [#allocation2]  }
 0x2ef   : > { %s3606_s26 = sshll.u32 %s3676_s17, 4  ;;  %s3607_s26 = int_to_ptr.vmem [resolvable:$false] %s3606_s26 }
 0x2f2   : > { %v3330_v7 = vpop.f32.mrb[22].mxu0 }
 0x2f3   : > { %v2014_v6 = vmul.f32 0.2, %v3330_v7  ;;  %v1942_v10 = vpop.f32.mrb[23].mxu0 }
 0x2f4   : > { %v2013_v27 = vmul.f32 0.2, %v1942_v10 }
 0x2f5   : > { %v2046_v50 = vmax.f32 %v3330_v7, %v2014_v6 }
 0x2f6   : > { %v2045_v4 = vmax.f32 %v1942_v10, %v2013_v27  ;;  %v3568_v10 = vunpack.i.h.bf16 %v3566_v62 }
 0x2f7   : > { %v2078_v11 = vmul.f32 1.4, %v2046_v50  ;;  %v3567_v50 = vunpack.i.l.bf16 %v3566_v62 }
 0x2f8   : > { %v2077_v39 = vmul.f32 1.4, %v2045_v4 }
 0x2f9   : > { %v2206_v18 = vsel %vm1396_vm4, %v2078_v11, %v3538_v40 }
 0x2fa   : > { %v2205_v34 = vsel %vm1396_vm4, %v2077_v39, %v3537_v42 }
 0x2fb   : > { %v3399_v0 = vpack.c.bf16 %v2206_v18, %v2205_v34 }
 0x2fd   : > { %3400 = vmatprep.subr.bf16.mxu1 %v3399_v0 }
 0x2fe   : > { %3402 = vmatpush3.bf16.msra.mxu1 %v3401_v46 }
 0x312   : > { %v3333_v57 = vpop.f32.mrb[24].mxu0 }
 0x313   : > { %v2016_v46 = vmul.f32 0.2, %v3333_v57  ;;  %v1952_v17 = vpop.f32.mrb[25].mxu0 }
 0x314   : > { %v2015_v21 = vmul.f32 0.2, %v1952_v17 }
 0x315   : > { %v2048_v55 = vmax.f32 %v3333_v57, %v2016_v46  ;;  %v2224_v46 = vld [vmem:[%s5714_s4 + $0x48] sm:$0xff] }
 0x316   : > { %v2047_v49 = vmax.f32 %v1952_v17, %v2015_v21  ;;  %v2223_v17 = vld [vmem:[%s5714_s4 + $0x40] sm:$0xff]  ;;  %v2226_v21 = vld [vmem:[%s5714_s4 + $0x58] sm:$0xff] }
 0x317   : > { %v2080_v37 = vmul.f32 1.4, %v2048_v55  ;;  %v2225_v55 = vld [vmem:[%s5714_s4 + $0x50] sm:$0xff] }
 0x318   : > { %v2079_v22 = vmul.f32 1.4, %v2047_v49  ;;  %v2227_v49 = vld [vmem:[%s5714_s4 + $0x60] sm:$0xff] }
 0x319   : > { %v2208_v26 = vsel %vm1396_vm4, %v2080_v37, %v3548_v19  ;;  %v2228_v19 = vld [vmem:[%s5714_s4 + $0x68] sm:$0xff]  ;;  %v2229_v37 = vld [vmem:[%s5714_s4 + $0x70] sm:$0xff] }
 0x31a   : > { %v2207_v36 = vsel %vm1396_vm4, %v2079_v22, %v3547_v9  ;;  %v2230_v9 = vld [vmem:[%s5714_s4 + $0x78] sm:$0xff] }
 0x31b   : > { %v3403_v3 = vpack.c.bf16 %v2208_v26, %v2207_v36  ;;  %v5357_v36 = vld [vmem:[%s5713_s3] sm:$0xf] }
 0x31c   : > { %3365 = vmatprep.subr.msk.mxu0 %vm1762_vm3, %v5357_v36 }
 0x31d   : > { %3404 = vmatprep.subr.bf16.mxu1 %v3403_v3  ;;  %3366 = vmatpush3.msk.msra.mxu0 %vm1762_vm3, %v5357_v36 }
 0x31e   : > { %3406 = vmatpush3.bf16.msra.mxu1 %v3405_v31 }
 0x332   : > { %v3336_v16 = vpop.f32.mrb[26].mxu0 }
 0x333   : > { %v2018_v43 = vmul.f32 0.2, %v3336_v16  ;;  %v1962_v20 = vpop.f32.mrb[27].mxu0 }
 0x334   : > { %v2017_v45 = vmul.f32 0.2, %v1962_v20 }
 0x335   : > { %v2050_v30 = vmax.f32 %v3336_v16, %v2018_v43 }
 0x336   : > { %v2049_v59 = vmax.f32 %v1962_v20, %v2017_v45 }
 0x337   : > { %v2082_v33 = vmul.f32 1.4, %v2050_v30 }
 0x338   : > { %v2081_v23 = vmul.f32 1.4, %v2049_v59 }
 0x339   : > { %v2210_v12 = vsel %vm1396_vm4, %v2082_v33, %v3558_v29 }
 0x33a   : > { %v2209_v41 = vsel %vm1396_vm4, %v2081_v23, %v3557_v8 }
 0x33b   : > { %v3407_v14 = vpack.c.bf16 %v2210_v12, %v2209_v41 }
 0x33d   : > { %3408 = vmatprep.subr.bf16.mxu1 %v3407_v14 }
 0x33e   : > { %3410 = vmatpush3.bf16.msra.mxu1 %v3409_v32 }
 0x351   : > { %v3339_v60 = vpop.f32.mrb[28].mxu0 }
 0x352   : > { %v2020_v31 = vmul.f32 0.2, %v3339_v60  ;;  %v1972_v7 = vpop.f32.mrb[29].mxu0 }
 0x353   : > { %v2019_v52 = vmul.f32 0.2, %v1972_v7 }
 0x354   : > { %v2052_v6 = vmax.f32 %v3339_v60, %v2020_v31 }
 0x355   : > { %v2051_v27 = vmax.f32 %v1972_v7, %v2019_v52 }
 0x356   : > { %v2084_v40 = vmul.f32 1.4, %v2052_v6 }
 0x357   : > { %v2083_v4 = vmul.f32 1.4, %v2051_v27 }
 0x358   : > { %v2212_v42 = vsel %vm1396_vm4, %v2084_v40, %v3568_v10 }
 0x359   : > { %v2211_v11 = vsel %vm1396_vm4, %v2083_v4, %v3567_v50 }
 0x35a   : > { %v3411_v39 = vpack.c.bf16 %v2212_v42, %v2211_v11 }
 0x35c   : > { %v3342_v18 = vpop.f32.mrb[30].mxu0  ;;  %3412 = vmatprep.subr.bf16.mxu1 %v3411_v39 }
 0x35d   : > { %v2022_v1 = vmul.f32 0.2, %v3342_v18  ;;  %v1982_v32 = vpop.f32.mrb[31].mxu0  ;;  %3414 = vmatpush3.bf16.msra.mxu1 %v3413_v47  ;;  %v2217_v47 = vld [vmem:[%s5714_s4 + $0x10] sm:$0xff] }
 0x35e   : > { %v2021_v34 = vmul.f32 0.2, %v1982_v32 }
 0x35f   : > { %v2054_v0 = vmax.f32 %v3342_v18, %v2022_v1 }
 0x360   : > { %v2053_v24 = vmax.f32 %v1982_v32, %v2021_v34 }
 0x361   : > { %v2086_v44 = vmul.f32 1.4, %v2054_v0 }
 0x362   : > { %v2085_v38 = vmul.f32 1.4, %v2053_v24 }
 0x363   : > { %v2214_v15 = vsel %vm1396_vm4, %v2086_v44, %v3578_v13 }
 0x364   : > { %v2213_v53 = vsel %vm1396_vm4, %v2085_v38, %v3577_v25 }
 0x365   : > { %v3415_v57 = vpack.c.bf16 %v2214_v15, %v2213_v53 }
 0x367   : > { %3416 = vmatprep.subr.bf16.mxu1 %v3415_v57 }
 0x368   : > { %3418 = vmatpush3.bf16.msra.mxu1 %v3417_v54  ;;  %v2221_v54 = vld [vmem:[%s5714_s4 + $0x30] sm:$0xff] }
 0x36b   : > { %2296 = vmatmul.mubr.f32.vlgmr.msra.gmra.mrb[0].mxu1 %v2215_v5 }
 0x36c   : > { %2300 = vmatprep.mubr.f32.mxu1 %v2218_v63 }
 0x36f   : > { %2301 = vmatmul.mubr.f32.gmra.mrb[2].mxu1 %v2217_v47 }
 0x370   : > { %2305 = vmatprep.mubr.f32.mxu1 %v2220_v56  ;;  %v2695_v56 = vld [vmem:[%s5712_s2] sm:$0xff] }
 0x373   : > { %2306 = vmatmul.mubr.f32.gmra.mrb[4].mxu1 %v2219_v28  ;;  %v2696_v28 = vld [vmem:[%s5712_s2 + $0x8] sm:$0xff] }
 0x374   : > { %2310 = vmatprep.mubr.f32.mxu1 %v2222_v61 }
 0x377   : > { %2311 = vmatmul.mubr.f32.gmra.mrb[6].mxu1 %v2221_v54 }
 0x378   : > { %2315 = vmatprep.mubr.f32.mxu1 %v2224_v46  ;;  %v3419_v46 = vpack.c.bf16 %v2696_v28, %v2695_v56 }
 0x37a   : > { %3420 = vmatprep.subr.bf16.mxu1 %v3419_v46 }
 0x37b   : > { %2316 = vmatmul.mubr.f32.gmra.mrb[8].mxu1 %v2223_v17  ;;  %v2697_v17 = vld [vmem:[%s5712_s2 + $0x10] sm:$0xff] }
 0x37c   : > { %2320 = vmatprep.mubr.f32.mxu1 %v2226_v21  ;;  %3422 = vmatpush3.bf16.msra.mxu1 %v3419_v46  ;;  %v2698_v21 = vld [vmem:[%s5712_s2 + $0x18] sm:$0xff] }
 0x37f   : > { %2321 = vmatmul.mubr.f32.gmra.mrb[10].mxu1 %v2225_v55 }
 0x380   : > { %2325 = vmatprep.mubr.f32.mxu1 %v2228_v19  ;;  %v3423_v19 = vpack.c.bf16 %v2698_v21, %v2697_v17 }
 0x382   : > { %3424 = vmatprep.subr.bf16.mxu1 %v3423_v19 }
 0x383   : > { %2326 = vmatmul.mubr.f32.gmra.mrb[12].mxu1 %v2227_v49  ;;  %v2699_v49 = vld [vmem:[%s5712_s2 + $0x20] sm:$0xf] }
 0x384   : > { %2330 = vmatprep.mubr.f32.mxu1 %v2230_v9  ;;  %3426 = vmatpush3.bf16.msra.mxu1 %v3423_v19 }
 0x385   : > { %3351 = vmatprep.subr.msk.mxu1 %vm1762_vm3, %v2699_v49 }
 0x387   : > { %2331 = vmatmul.mubr.f32.gmra.mrb[14].mxu1 %v2229_v37 }
 0x388   : > { %3352 = vmatpush3.msk.msra.mxu1 %vm1762_vm3, %v2699_v49 }
 0x389   : > { %3427 = vmatprep.subr.msk.mxu1 %vm1762_vm3, %v5357_v36 }
 0x43e   : > { %v3239_v22 = vpop.f32.mrb[0].mxu1 }
 0x43f   : > { %v3240_v26 = vpop.f32.mrb[1].mxu1 }
 0x440   : > { %v3241_v3 = vadd.f32 %v3240_v26, %v3239_v22 }
 0x442   : > { %v2344_v16 = vrot.slane %v3241_v3, 7  ;;  %2857 = vrot.lane.b32.xlu0 %v3241_v3, %s3675_s6  ;;  %v3242_v58 = vpop.f32.mrb[2].mxu1 }
 0x443   : > { %v3243_v43 = vpop.f32.mrb[3].mxu1 }
 0x444   : > { %v2368_v20 = vsel %vm288_vm0, %v2344_v16, 0.0  ;;  %v5366_v45 = vsel %vm288_vm0, 0.0, %v2344_v16  ;;  %v3244_v30 = vadd.f32 %v3243_v43, %v3242_v58 }
 0x445   : > { %v2392_v29 = vrot.slane %v2368_v20, 1  ;;  %2483 = vrot.lane.b32.xlu1 %v5366_v45, %s3668_s11  ;;  %v2391_v59 = vrot.slane %v5366_v45, 1  ;;  %v2438_v23 = vrot.slane %v2368_v20, 2  ;;  %v2437_v12 = vrot.slane %v5366_v45, 2 }
 0x446   : > { %v2345_v8 = vrot.slane %v3244_v30, 7  ;;  %v3245_v33 = vpop.f32.mrb[4].mxu1 }
 0x447   : > { %v2393_v41 = vsel %vm454_vm1, %v2391_v59, %v2392_v29  ;;  %v3246_v14 = vpop.f32.mrb[5].mxu1  ;;  %v2439_v10 = vsel %vm631_vm2, %v2437_v12, %v2438_v23 }
 0x448   : > { %v5374_v60 = vsel %vm288_vm0, 0.0, %v2345_v8  ;;  %v2369_v62 = vsel %vm288_vm0, %v2345_v8, 0.0  ;;  %2414 = vrot.lane.b32.xlu0 %v2393_v41, %s3667_s10  ;;  %v3247_v31 = vadd.f32 %v3246_v14, %v3245_v33 }
 0x449   : > { %2859 = vrot.lane.b32.xlu1 %v3244_v30, %s3675_s6  ;;  %v2395_v7 = vrot.slane %v2369_v62, 1  ;;  %v2394_v52 = vrot.slane %v5374_v60, 1  ;;  %v2441_v40 = vrot.slane %v2369_v62, 2  ;;  %v2440_v42 = vrot.slane %v5374_v60, 2 }
 0x44a   : > { %v3248_v6 = vpop.f32.mrb[6].mxu1  ;;  %v2346_v51 = vrot.slane %v3247_v31, 7 }
 0x44b   : > { %v3249_v27 = vpop.f32.mrb[7].mxu1  ;;  %v2396_v4 = vsel %vm454_vm1, %v2394_v52, %v2395_v7  ;;  %v2442_v1 = vsel %vm631_vm2, %v2440_v42, %v2441_v40 }
 0x44c   : > { %2460 = vrot.lane.b32.xlu0 %v2439_v10, %s3669_s12  ;;  %v3250_v50 = vadd.f32 %v3249_v27, %v3248_v6  ;;  %v5396_v13 = vsel %vm288_vm0, 0.0, %v2346_v51  ;;  %v2370_v25 = vsel %vm288_vm0, %v2346_v51, 0.0 }
 0x44d   : > { %2511 = vrot.lane.b32.xlu1 %v2393_v41, %s3670_s13  ;;  %v2398_v15 = vrot.slane %v2370_v25, 1  ;;  %v2397_v53 = vrot.slane %v5396_v13, 1  ;;  %v2444_v61 = vrot.slane %v2370_v25, 2  ;;  %v2443_v54 = vrot.slane %v5396_v13, 2 }
 0x44e   : > { %v3251_v11 = vpop.f32.mrb[8].mxu1  ;;  %v2347_v9 = vrot.slane %v3250_v50, 7 }
 0x44f   : > { %v3252_v39 = vpop.f32.mrb[9].mxu1  ;;  %v2399_v47 = vsel %vm454_vm1, %v2397_v53, %v2398_v15  ;;  %v2445_v55 = vsel %vm631_vm2, %v2443_v54, %v2444_v61 }
 0x450   : > { %2538 = vrot.lane.b32.xlu0 %v2439_v10, %s3671_s14  ;;  %v5386_v18 = vadd.f32 %v3252_v39, %v3251_v11  ;;  %v5440_v37 = vsel %vm288_vm0, 0.0, %v2347_v9  ;;  %v2371_v22 = vsel %vm288_vm0, %v2347_v9, 0.0 }
 0x451   : > { %2513 = vrot.lane.b32.xlu1 %v2396_v4, %s3670_s13  ;;  %v2401_v26 = vrot.slane %v2371_v22, 1  ;;  %v2400_v3 = vrot.slane %v5440_v37, 1  ;;  %v2447_v58 = vrot.slane %v2371_v22, 2  ;;  %v2446_v20 = vrot.slane %v5440_v37, 2 }
 0x452   : > { %v3254_v32 = vpop.f32.mrb[10].mxu1  ;;  %v2348_v16 = vrot.slane %v5386_v18, 7 }
 0x453   : > { %v3255_v34 = vpop.f32.mrb[11].mxu1  ;;  %v2402_v43 = vsel %vm454_vm1, %v2400_v3, %v2401_v26  ;;  %v2448_v59 = vsel %vm631_vm2, %v2446_v20, %v2447_v58 }
 0x454   : > { %2485 = vrot.lane.b32.xlu0 %v5374_v60, %s3668_s11  ;;  %v5392_v0 = vadd.f32 %v3255_v34, %v3254_v32  ;;  %v5455_v30 = vsel %vm288_vm0, 0.0, %v2348_v16  ;;  %v2372_v29 = vsel %vm288_vm0, %v2348_v16, 0.0 }
 0x455   : > { %2540 = vrot.lane.b32.xlu1 %v2442_v1, %s3671_s14  ;;  %v2404_v8 = vrot.slane %v2372_v29, 1  ;;  %v2403_v33 = vrot.slane %v5455_v30, 1  ;;  %v2450_v23 = vrot.slane %v2372_v29, 2  ;;  %v2449_v41 = vrot.slane %v5455_v30, 2 }
 0x456   : > { %v3257_v24 = vpop.f32.mrb[12].mxu1  ;;  %v2349_v62 = vrot.slane %v5392_v0, 7 }
 0x457   : > { %v3258_v44 = vpop.f32.mrb[13].mxu1  ;;  %v2405_v12 = vsel %vm454_vm1, %v2403_v33, %v2404_v8  ;;  %v2451_v14 = vsel %vm631_vm2, %v2449_v41, %v2450_v23 }
 0x458   : > { %2562 = vrot.lane.b32.xlu0 %v5374_v60, %s3672_s25  ;;  %v5401_v38 = vadd.f32 %v3258_v44, %v3257_v24  ;;  %v2373_v7 = vsel %vm288_vm0, %v2349_v62, 0.0  ;;  %v2413_v24 = vpop.permute.xlu1 %2412 }
 0x459   : > { %2564 = vrot.lane.b32.xlu1 %v5396_v13, %s3672_s25  ;;  %v2407_v52 = vrot.slane %v2373_v7, 1  ;;  %v2453_v10 = vrot.slane %v2373_v7, 2  ;;  %v2631_v8 = vsel %vm1396_vm4, %v3762_v2, %v2413_v24 }
 0x45a   : > { %v3260_v57 = vpop.f32.mrb[14].mxu1  ;;  %v2350_v40 = vrot.slane %v5401_v38, 7 }
 0x45b   : > { %v3261_v5 = vpop.f32.mrb[15].mxu1 }
 0x45c   : > { %2861 = vrot.lane.b32.xlu0 %v3247_v31, %s3675_s6  ;;  %v5407_v63 = vadd.f32 %v3261_v5, %v3260_v57  ;;  %v5477_v31 = vsel %vm288_vm0, 0.0, %v2349_v62  ;;  %v5494_v42 = vsel %vm288_vm0, 0.0, %v2350_v40  ;;  %v2374_v11 = vsel %vm288_vm0, %v2350_v40, 0.0  ;;  %v2459_v44 = vpop.permute.xlu1 %2458 }
 0x45d   : > { %2863 = vrot.lane.b32.xlu1 %v3250_v50, %s3675_s6  ;;  %v2406_v6 = vrot.slane %v5477_v31, 1  ;;  %v2452_v50 = vrot.slane %v5477_v31, 2  ;;  %v2410_v39 = vrot.slane %v2374_v11, 1  ;;  %v2409_v51 = vrot.slane %v5494_v42, 1 }
 0x45e   : > { %v2455_v34 = vrot.slane %v5494_v42, 2  ;;  %v2351_v15 = vrot.slane %v5407_v63, 7 }
 0x45f   : > { %v2408_v27 = vsel %vm454_vm1, %v2406_v6, %v2407_v52  ;;  %v2411_v32 = vsel %vm454_vm1, %v2409_v51, %v2410_v39 }
 0x460   : > { %2416 = vrot.lane.b32.xlu0 %v2396_v4, %s3667_s10  ;;  %v2375_v53 = vsel %vm288_vm0, %v2351_v15, 0.0  ;;  %v5515_v57 = vpop.permute.xlu1 %2597  ;;  %v2367_v5 = vsel %vm288_vm0, 0.0, %v2351_v15 }
 0x461   : > { %2418 = vrot.lane.b32.xlu1 %v2399_v47, %s3667_s10  ;;  %v2508_v56 = vrot.slane %v2367_v5, 1  ;;  %v2536_v61 = vrot.slane %v2375_v53, 2  ;;  %v2535_v54 = vrot.slane %v2367_v5, 2 }
 0x463   : > { %v2537_v21 = vsel %vm631_vm2, %v2535_v54, %v2536_v61 }
 0x464   : > { %2462 = vrot.lane.b32.xlu0 %v2442_v1, %s3669_s12  ;;  %v5523_v28 = vpop.permute.xlu1 %2621 }
 0x465   : > { %2464 = vrot.lane.b32.xlu1 %v2445_v55, %s3669_s12 }
 0x468   : > { %2583 = vrot.lane.b32.xlu0 %v2396_v4, %s5743_s30  ;;  %v2454_v4 = vsel %vm631_vm2, %v2452_v50, %v2453_v10 }
 0x469   : > { %2585 = vrot.lane.b32.xlu1 %v2399_v47, %s5743_s30 }
 0x46c   : > { %2607 = vrot.lane.b32.xlu0 %v2442_v1, %s5744_s16  ;;  %v2456_v1 = vrot.slane %v2374_v11, 2 }
 0x46d   : > { %2542 = vrot.lane.b32.xlu1 %v2445_v55, %s3671_s14 }
 0x46e   : > { %v2457_v25 = vsel %vm631_vm2, %v2455_v34, %v2456_v1 }
 0x470   : > { %2487 = vrot.lane.b32.xlu0 %v5396_v13, %s3668_s11 }
 0x471   : > { %2489 = vrot.lane.b32.xlu1 %v5440_v37, %s3668_s11 }
 0x474   : > { %2515 = vrot.lane.b32.xlu0 %v2399_v47, %s3670_s13  ;;  %v2509_v47 = vrot.slane %v2375_v53, 1 }
 0x475   : > { %2420 = vrot.lane.b32.xlu1 %v2402_v43, %s3667_s10 }
 0x476   : > { %v2510_v46 = vsel %vm454_vm1, %v2508_v56, %v2509_v47 }
 0x478   : > { %2609 = vrot.lane.b32.xlu0 %v2445_v55, %s5744_s16 }
 0x479   : > { %2544 = vrot.lane.b32.xlu1 %v2448_v59, %s3671_s14 }
 0x47c   : > { %2566 = vrot.lane.b32.xlu0 %v5440_v37, %s3672_s25 }
 0x47d   : > { %2568 = vrot.lane.b32.xlu1 %v5455_v30, %s3672_s25 }
 0x480   : > { %2517 = vrot.lane.b32.xlu0 %v2402_v43, %s3670_s13 }
 0x481   : > { %2422 = vrot.lane.b32.xlu1 %v2405_v12, %s3667_s10 }
 0x484   : > { %2466 = vrot.lane.b32.xlu0 %v2448_v59, %s3669_s12 }
 0x485   : > { %2468 = vrot.lane.b32.xlu1 %v2451_v14, %s3669_s12 }
 0x488   : > { %2587 = vrot.lane.b32.xlu0 %v2402_v43, %s5743_s30 }
 0x489   : > { %2589 = vrot.lane.b32.xlu1 %v2405_v12, %s5743_s30 }
 0x48c   : > { %2611 = vrot.lane.b32.xlu0 %v2448_v59, %s5744_s16 }
 0x48d   : > { %2546 = vrot.lane.b32.xlu1 %v2451_v14, %s3671_s14 }
 0x490   : > { %2491 = vrot.lane.b32.xlu0 %v5455_v30, %s3668_s11 }
 0x491   : > { %2493 = vrot.lane.b32.xlu1 %v5477_v31, %s3668_s11 }
 0x494   : > { %2519 = vrot.lane.b32.xlu0 %v2405_v12, %s3670_s13 }
 0x495   : > { %2424 = vrot.lane.b32.xlu1 %v2408_v27, %s3667_s10 }
 0x498   : > { %2613 = vrot.lane.b32.xlu0 %v2451_v14, %s5744_s16 }
 0x499   : > { %2548 = vrot.lane.b32.xlu1 %v2454_v4, %s3671_s14 }
 0x49c   : > { %2570 = vrot.lane.b32.xlu0 %v5477_v31, %s3672_s25 }
 0x49d   : > { %2572 = vrot.lane.b32.xlu1 %v5494_v42, %s3672_s25 }
 0x4a0   : > { %2521 = vrot.lane.b32.xlu0 %v2408_v27, %s3670_s13 }
 0x4a1   : > { %2426 = vrot.lane.b32.xlu1 %v2411_v32, %s3667_s10  ;;  %s215_s10 = sand.u32 1, %s3656_s19  }
 0x4a4   : > { %2470 = vrot.lane.b32.xlu0 %v2454_v4, %s3669_s12 }
 0x4a5   : > { %2472 = vrot.lane.b32.xlu1 %v2457_v25, %s3669_s12 }
 0x4a8   : > { %2591 = vrot.lane.b32.xlu0 %v2408_v27, %s5743_s30 }
 0x4a9   : > { %2593 = vrot.lane.b32.xlu1 %v2411_v32, %s5743_s30 }
 0x4ac   : > { %2615 = vrot.lane.b32.xlu0 %v2454_v4, %s5744_s16 }
 0x4ad   : > { %2617 = vrot.lane.b32.xlu1 %v2457_v25, %s5744_s16 }
 0x4b0   : > { %2495 = vrot.lane.b32.xlu0 %v5494_v42, %s3668_s11 }
 0x4b1   : > { %2497 = vrot.lane.b32.xlu1 %v2367_v5, %s3668_s11  ;;  %s3109_s11 = sshll.u32 %s215_s10, 6 }
 0x4b4   : > { %v2858_v17 = vpop.permute.xlu0 %2857  ;;  %2523 = vrot.lane.b32.xlu0 %v2411_v32, %s3670_s13 }
 0x4b5   : > { %3367 = vmatprep.mubr.msk.f32.mxu0 %vm1396_vm4, %v2858_v17  ;;  %2525 = vrot.lane.b32.xlu1 %v2510_v46, %s3670_s13  ;;  %s5639_s13 = scalar_lea.vmem [#allocation2], %s3109_s11 }
 0x4b7   : > { %v2484_v55 = vpop.permute.xlu1 %2483 }
 0x4b8   : > { %2550 = vrot.lane.b32.xlu0 %v2457_v25, %s3671_s14 }
 0x4b9   : > { %2552 = vrot.lane.b32.xlu1 %v2537_v21, %s3671_s14  ;;  %s3169_s14 = sshll.u32 %s3729_s22, 10  ;;  %s5668_s22 = scalar_lea.sflag [#allocation3], %s215_s10 }
 0x4ba   : > { %v2415_v19 = vpop.permute.xlu0 %2414  ;;  %s5656_s23 = scalar_lea.hbm %s5715_s5, %s3169_s14 }
 0x4bb   : > { %v2860_v49 = vpop.permute.xlu1 %2859  ;;  %v2632_v27 = vsel %vm1396_vm4, %v5366_v45, %v2415_v19 }
 0x4bc   : > { %2574 = vrot.lane.b32.xlu0 %v2367_v5, %s3672_s25  ;;  %3368 = vmatmul.mubr.msk.f32.vlgmr.msra.gmra.mrb[32].mxu0 %vm1396_vm4, %v2860_v49  ;;  %s3043_s25 = sshll.u32 %s5639_s13, 4  ;;  %s5660_s25 = int_to_ptr.vmem [resolvable:$true] %s3043_s25 }
 0x4bd   : > { %2869 = vrot.lane.b32.xlu1 %v5401_v38, %s3675_s6  ;;  %s3602_s8 = scalar_lea.vmem %s5660_s25, 1024  ;;  %p3609_p0 = scmp.lt.s32.totalorder %s5660_s25, %s3607_s26 }
 0x4be   : > { %v2461_v9 = vpop.permute.xlu0 %2460  ;;  %p3603_p11 = scmp.ne.s32.totalorder %s5660_s25, %s3602_s8 }
 0x4bf   : > { %v2512_v22 = vpop.permute.xlu1 %2511  ;;  %v2640_v50 = vsel %vm1429_vm5, %v2632_v27, %v2461_v9 }
 0x4c0   : > { %2595 = vrot.lane.b32.xlu0 %v2510_v46, %s5743_s30  ;;  %p3604_p12 = pnand %p3603_p11, %p3746_p5  ;;  %s3608_s30 = scalar_lea.vmem %s3607_s26, 2048 }
 0x4c1   : > { %2871 = vrot.lane.b32.xlu1 %v5407_v63, %s3675_s6  ;;  %p3610_p1 = scmp.lt.s32.totalorder %s3608_s30, %s3602_s8 }
 0x4c2   : > { %v2539_v26 = vpop.permute.xlu0 %2538  ;;  %p3605_p13 = pneg %p3604_p12 }
 0x4c3   : > { %v2514_v3 = vpop.permute.xlu1 %2513  ;;  %p3611_p2 = por %p3610_p1, %p3609_p0 }
 0x4c4   : > { %2619 = vrot.lane.b32.xlu0 %v2537_v21, %s5744_s16 }
 0x4c5   : > { %p3612_p3 = pnand %p3611_p2, %p3605_p13 }
 0x4c6   : > { %v2486_v16 = vpop.permute.xlu0 %2485 }
 0x4c7   : > { %v2541_v58 = vpop.permute.xlu1 %2540  ;;  %v2648_v40 = vsel %vm1462_vm6, %v2640_v50, %v2486_v16 }
 0x4c8   : > { %2865 = vrot.lane.b32.xlu0 %v5386_v18, %s3675_s6  ;;  %v2639_v18 = vsel %vm1429_vm5, %v2631_v8, %v2459_v44  ;;  %v2656_v39 = vsel %vm1495_vm7, %v2648_v40, %v2514_v3 }
 0x4c9   : > { %v2647_v12 = vsel %vm1462_vm6, %v2639_v18, %v2484_v55  ;;  %v2664_v32 = vsel %vm1528_vm8, %v2656_v39, %v2541_v58 }
 0x4ca   : > { %v2563_v43 = vpop.permute.xlu0 %2562 }
 0x4cb   : > { %v2565_v20 = vpop.permute.xlu1 %2564 }
 0x4cc   : > { %2867 = vrot.lane.b32.xlu0 %v5392_v0, %s3675_s6  ;;  %v2655_v0 = vsel %vm1495_vm7, %v2647_v12, %v2512_v22  ;;  %v2672_v34 = vsel %vm1561_vm9, %v2664_v32, %v2565_v20 }
 0x4cd   : > { %v2663_v62 = vsel %vm1528_vm8, %v2655_v0, %v2539_v26 }
 0x4ce   : > { %v2862_v38 = vpop.permute.xlu0 %2861  ;;  %v2671_v7 = vsel %vm1561_vm9, %v2663_v62, %v2563_v43 }
 0x4cf   : > { %v2864_v29 = vpop.permute.xlu1 %2863  ;;  %3370 = vmatprep.mubr.msk.f32.mxu0 %vm1396_vm4, %v2862_v38 }
 0x4d0   : > { %3371 = vmatmul.mubr.msk.f32.gmra.mrb[34].mxu0 %vm1396_vm4, %v2864_v29 }
 0x4d2   : > { %v2417_v63 = vpop.permute.xlu0 %2416 }
 0x4d3   : > { %v2419_v59 = vpop.permute.xlu1 %2418  ;;  %v2633_v56 = vsel %vm1396_vm4, %v5374_v60, %v2417_v63 }
 0x4d4   : > { %v2634_v3 = vsel %vm1396_vm4, %v5396_v13, %v2419_v59 }
 0x4d6   : > { %v2463_v33 = vpop.permute.xlu0 %2462 }
 0x4d7   : > { %v2465_v23 = vpop.permute.xlu1 %2464  ;;  %v2641_v54 = vsel %vm1429_vm5, %v2633_v56, %v2463_v33 }
 0x4d8   : > { %v2642_v16 = vsel %vm1429_vm5, %v2634_v3, %v2465_v23 }
 0x4da   : > { %v2584_v41 = vpop.permute.xlu0 %2583 }
 0x4db   : > { %v2586_v14 = vpop.permute.xlu1 %2585  ;;  %v2679_v52 = vsel %vm1594_vm10, %v2671_v7, %v2584_v41 }
 0x4dc   : > { %v2680_v24 = vsel %vm1594_vm10, %v2672_v34, %v2586_v14 }
 0x4de   : > { %v2608_v6 = vpop.permute.xlu0 %2607 }
 0x4df   : > { %v2687_v10 = vsel %vm1627_vm11, %v2679_v52, %v2608_v6  ;;  %v2543_v2 = vpop.permute.xlu1 %2542 }
 0x4e0   : > { %3353 = vmatprep.mubr.msk.f32.mxu1 %vm1665_vm12, %v2687_v10 }
 0x4e2   : > { %v2488_v4 = vpop.permute.xlu0 %2487 }
 0x4e3   : > { %v2490_v11 = vpop.permute.xlu1 %2489  ;;  %v2649_v17 = vsel %vm1462_vm6, %v2641_v54, %v2488_v4 }
 0x4e4   : > { %v2650_v58 = vsel %vm1462_vm6, %v2642_v16, %v2490_v11 }
 0x4e6   : > { %v2516_v51 = vpop.permute.xlu0 %2515 }
 0x4e7   : > { %v2421_v1 = vpop.permute.xlu1 %2420  ;;  %v2657_v21 = vsel %vm1495_vm7, %v2649_v17, %v2516_v51 }
 0x4e8   : > { %v2665_v49 = vsel %vm1528_vm8, %v2657_v21, %v2543_v2  ;;  %v2635_v7 = vsel %vm1396_vm4, %v5440_v37, %v2421_v1 }
 0x4ea   : > { %v2610_v25 = vpop.permute.xlu0 %2609 }
 0x4eb   : > { %v2688_v45 = vsel %vm1627_vm11, %v2680_v24, %v2610_v25  ;;  %v2545_v44 = vpop.permute.xlu1 %2544 }
 0x4ec   : > { %3354 = vmatmul.mubr.msk.f32.vlgmr.msra.gmra.mrb[16].mxu1 %vm1665_vm12, %v2688_v45 }
 0x4ed   : > { %3428 = vmatpush3.msk.msra.mxu1 %vm1762_vm3, %v5357_v36 }
 0x4ee   : > { %v2567_v15 = vpop.permute.xlu0 %2566 }
 0x4ef   : > { %v2569_v53 = vpop.permute.xlu1 %2568  ;;  %v2673_v36 = vsel %vm1561_vm9, %v2665_v49, %v2567_v15 }
 0x4f2   : > { %v2518_v5 = vpop.permute.xlu0 %2517 }
 0x4f3   : > { %v2423_v47 = vpop.permute.xlu1 %2422  ;;  %v2658_v20 = vsel %vm1495_vm7, %v2650_v58, %v2518_v5 }
 0x4f4   : > { %v2666_v29 = vsel %vm1528_vm8, %v2658_v20, %v2545_v44  ;;  %v2636_v62 = vsel %vm1396_vm4, %v5455_v30, %v2423_v47 }
 0x4f5   : > { %v2674_v33 = vsel %vm1561_vm9, %v2666_v29, %v2569_v53 }
 0x4f6   : > { %v2467_v61 = vpop.permute.xlu0 %2466 }
 0x4f7   : > { %v2469_v46 = vpop.permute.xlu1 %2468  ;;  %v2643_v10 = vsel %vm1429_vm5, %v2635_v7, %v2467_v61 }
 0x4f8   : > { %v2644_v52 = vsel %vm1429_vm5, %v2636_v62, %v2469_v46 }
 0x4fa   : > { %v2588_v55 = vpop.permute.xlu0 %2587 }
 0x4fb   : > { %v2590_v19 = vpop.permute.xlu1 %2589  ;;  %v2681_v9 = vsel %vm1594_vm10, %v2673_v36, %v2588_v55 }
 0x4fc   : > { %v2682_v18 = vsel %vm1594_vm10, %v2674_v33, %v2590_v19 }
 0x4fe   : > { %v2612_v22 = vpop.permute.xlu0 %2611 }
 0x4ff   : > { %v2689_v26 = vsel %vm1627_vm11, %v2681_v9, %v2612_v22  ;;  %v2547_v60 = vpop.permute.xlu1 %2546 }
 0x500   : > { %3356 = vmatprep.mubr.msk.f32.mxu1 %vm1665_vm12, %v2689_v26 }
 0x502   : > { %v2492_v43 = vpop.permute.xlu0 %2491 }
 0x503   : > { %v2494_v38 = vpop.permute.xlu1 %2493  ;;  %v2651_v50 = vsel %vm1462_vm6, %v2643_v10, %v2492_v43 }
 0x504   : > { %v2652_v2 = vsel %vm1462_vm6, %v2644_v52, %v2494_v38 }
 0x506   : > { %v2520_v63 = vpop.permute.xlu0 %2519 }
 0x507   : > { %v2425_v8 = vpop.permute.xlu1 %2424  ;;  %v2659_v4 = vsel %vm1495_vm7, %v2651_v50, %v2520_v63 }
 0x508   : > { %v2667_v37 = vsel %vm1528_vm8, %v2659_v4, %v2547_v60  ;;  %v2637_v49 = vsel %vm1396_vm4, %v5477_v31, %v2425_v8 }
 0x50a   : > { %v2614_v12 = vpop.permute.xlu0 %2613 }
 0x50b   : > { %v2690_v13 = vsel %vm1627_vm11, %v2682_v18, %v2614_v12  ;;  %v2549_v59 = vpop.permute.xlu1 %2548 }
 0x50c   : > { %3357 = vmatmul.mubr.msk.f32.gmra.mrb[18].mxu1 %vm1665_vm12, %v2690_v13 }
 0x50e   : > { %v2571_v23 = vpop.permute.xlu0 %2570 }
 0x50f   : > { %v2573_v41 = vpop.permute.xlu1 %2572  ;;  %v2675_v51 = vsel %vm1561_vm9, %v2667_v37, %v2571_v23 }
 0x512   : > { %v2522_v0 = vpop.permute.xlu0 %2521 }
 0x513   : > { %v2427_v14 = vpop.permute.xlu1 %2426  ;;  %v2660_v40 = vsel %vm1495_vm7, %v2652_v2, %v2522_v0 }
 0x514   : > { %v2668_v30 = vsel %vm1528_vm8, %v2660_v40, %v2549_v59  ;;  %v2638_v61 = vsel %vm1396_vm4, %v5494_v42, %v2427_v14 }
 0x515   : > { %v2676_v32 = vsel %vm1561_vm9, %v2668_v30, %v2573_v41 }
 0x516   : > { %v2471_v6 = vpop.permute.xlu0 %2470 }
 0x517   : > { %v2473_v27 = vpop.permute.xlu1 %2472  ;;  %v2645_v36 = vsel %vm1429_vm5, %v2637_v49, %v2471_v6 }
 0x518   : > { %v2646_v54 = vsel %vm1429_vm5, %v2638_v61, %v2473_v27 }
 0x51a   : > { %v2592_v11 = vpop.permute.xlu0 %2591 }
 0x51b   : > { %v2594_v39 = vpop.permute.xlu1 %2593  ;;  %v2683_v1 = vsel %vm1594_vm10, %v2675_v51, %v2592_v11 }
 0x51c   : > { %v2684_v24 = vsel %vm1594_vm10, %v2676_v32, %v2594_v39 }
 0x51e   : > { %v2616_v34 = vpop.permute.xlu0 %2615 }
 0x51f   : > { %v2691_v25 = vsel %vm1627_vm11, %v2683_v1, %v2616_v34  ;;  %v2618_v45 = vpop.permute.xlu1 %2617 }
 0x520   : > { %v2692_v44 = vsel %vm1627_vm11, %v2684_v24, %v2618_v45  ;;  %3359 = vmatprep.mubr.msk.f32.mxu1 %vm1665_vm12, %v2691_v25 }
 0x521   : > { %3360 = vmatmul.mubr.msk.f32.gmra.mrb[20].mxu1 %vm1665_vm12, %v2692_v44 }
 0x522   : > { %v2496_v15 = vpop.permute.xlu0 %2495 }
 0x523   : > { %v2498_v53 = vpop.permute.xlu1 %2497  ;;  %v2653_v9 = vsel %vm1462_vm6, %v2645_v36, %v2496_v15 }
 0x524   : > { %v2654_v17 = vsel %vm1462_vm6, %v2646_v54, %v2498_v53 }
 0x526   : > { %v2524_v5 = vpop.permute.xlu0 %2523 }
 0x527   : > { %v2526_v47 = vpop.permute.xlu1 %2525  ;;  %v2661_v26 = vsel %vm1495_vm7, %v2653_v9, %v2524_v5 }
 0x528   : > { %v2662_v21 = vsel %vm1495_vm7, %v2654_v17, %v2526_v47 }
 0x52a   : > { %v2551_v56 = vpop.permute.xlu0 %2550 }
 0x52b   : > { %v2553_v46 = vpop.permute.xlu1 %2552  ;;  %v2669_v60 = vsel %vm1528_vm8, %v2661_v26, %v2551_v56 }
 0x52c   : > { %v2670_v19 = vsel %vm1528_vm8, %v2662_v21, %v2553_v46 }
 0x52d   : > { %v2678_v42 = vsel %vm1561_vm9, %v2670_v19, %v3492_v35 }
 0x52e   : > { %v2575_v55 = vpop.permute.xlu0 %2574  ;;  %v2686_v16 = vsel %vm1594_vm10, %v2678_v42, %v5515_v57 }
 0x52f   : > { %v2677_v3 = vsel %vm1561_vm9, %v2669_v60, %v2575_v55  ;;  %v2870_v58 = vpop.permute.xlu1 %2869  ;;  %v2694_v48 = vsel %vm1627_vm11, %v2686_v16, %v5523_v28 }
 0x532   : > { %v2596_v22 = vpop.permute.xlu0 %2595 }
 0x533   : > { %v2685_v31 = vsel %vm1594_vm10, %v2677_v3, %v2596_v22  ;;  %v2872_v57 = vpop.permute.xlu1 %2871 }
 0x536   : > { %v2620_v43 = vpop.permute.xlu0 %2619 }
 0x537   : > { %v2693_v20 = vsel %vm1627_vm11, %v2685_v31, %v2620_v43 }
 0x538   : > { %3362 = vmatprep.mubr.msk.f32.mxu1 %vm1665_vm12, %v2693_v20 }
 0x539   : > { %3363 = vmatmul.mubr.msk.f32.gmra.mrb[22].mxu1 %vm1665_vm12, %v2694_v48 }
 0x53a   : > { %3376 = vmatprep.mubr.msk.f32.mxu1 %vm1396_vm4, %v2870_v58  ;;  %v2866_v35 = vpop.permute.xlu0 %2865 }
 0x53b   : > { %3373 = vmatprep.mubr.msk.f32.mxu0 %vm1396_vm4, %v2866_v35 }
 0x53d   : > { %3377 = vmatmul.mubr.msk.f32.vlgmr.msra.gmra.mrb[24].mxu1 %vm1396_vm4, %v2872_v57 }
 0x53e   : > { %v2868_v38 = vpop.permute.xlu0 %2867 }
 0x53f   : > { %3374 = vmatmul.mubr.msk.f32.gmra.mrb[36].mxu0 %vm1396_vm4, %v2868_v38 }
 0x58f   : > { %v3369_v29 = vpop.f32.mrb[32].mxu0 }
 0x590   : > { %v2958_v63 = vpop.f32.mrb[33].mxu0  ;;  %v2998_v41 = vmul.f32 1.4, %v3369_v29 }
 0x591   : > { %v2997_v14 = vmul.f32 1.4, %v2958_v63 }
 0x5a3   : > { %v3372_v8 = vpop.f32.mrb[34].mxu0 }
 0x5a4   : > { %v2968_v33 = vpop.f32.mrb[35].mxu0  ;;  %v3000_v30 = vmul.f32 1.4, %v3372_v8 }
 0x5a5   : > { %v2999_v37 = vmul.f32 1.4, %v2968_v33 }
 0x5bf   : > { %v3355_v28 = vpop.f32.mrb[16].mxu1 }
 0x5c0   : > { %v2833_v18 = vmul.f32 0.2, %v3355_v28  ;;  %v2793_v12 = vpop.f32.mrb[17].mxu1 }
 0x5c1   : > { %v2832_v13 = vmul.f32 0.2, %v2793_v12 }
 0x5c2   : > { %v2841_v59 = vmax.f32 %v3355_v28, %v2833_v18 }
 0x5c3   : > { %v2840_v23 = vmax.f32 %v2793_v12, %v2832_v13 }
 0x5c4   : > { %v2849_v0 = vmul.f32 1.4, %v2841_v59 }
 0x5c5   : > { %v2848_v62 = vmul.f32 1.4, %v2840_v23 }
 0x5c6   : > { %v3006_v7 = vadd.f32 %v2998_v41, %v2849_v0 }
 0x5c7   : > { %v3005_v52 = vadd.f32 %v2997_v14, %v2848_v62 }
 0x5c8   : > { %v3014_v6 = vmul.f32 0.70710677, %v3006_v7 }
 0x5c9   : > { %v3013_v10 = vmul.f32 0.70710677, %v3005_v52 }
 0x5ca   : > { %3022 = vst.msk [vmem:[%s5639_s13 + $0x8] sm:$0xff] %vm1429_vm5, %v3014_v6 }
 0x5cb   : > { %3021 = vst.msk [vmem:[%s5639_s13] sm:$0xff] %vm1429_vm5, %v3013_v10 }
 0x5df   : > { %v3358_v2 = vpop.f32.mrb[18].mxu1 }
 0x5e0   : > { %v2835_v27 = vmul.f32 0.2, %v3358_v2  ;;  %v2803_v50 = vpop.f32.mrb[19].mxu1 }
 0x5e1   : > { %v2834_v40 = vmul.f32 0.2, %v2803_v50 }
 0x5e2   : > { %v2843_v4 = vmax.f32 %v3358_v2, %v2835_v27 }
 0x5e3   : > { %v2842_v11 = vmax.f32 %v2803_v50, %v2834_v40 }
 0x5e4   : > { %v2851_v39 = vmul.f32 1.4, %v2843_v4 }
 0x5e5   : > { %v2850_v51 = vmul.f32 1.4, %v2842_v11 }
 0x5e6   : > { %v3008_v1 = vadd.f32 %v3000_v30, %v2851_v39 }
 0x5e7   : > { %v3007_v32 = vadd.f32 %v2999_v37, %v2850_v51 }
 0x5e8   : > { %v3016_v34 = vmul.f32 0.70710677, %v3008_v1 }
 0x5e9   : > { %v3015_v24 = vmul.f32 0.70710677, %v3007_v32 }
 0x5ea   : > { %3024 = vst.msk [vmem:[%s5639_s13 + $0x18] sm:$0xff] %vm1429_vm5, %v3016_v34 }
 0x5eb   : > { %3023 = vst.msk [vmem:[%s5639_s13 + $0x10] sm:$0xff] %vm1429_vm5, %v3015_v24 }
 0x5f4   : > { %v3361_v25 = vpop.f32.mrb[20].mxu1 }
 0x5f5   : > { %v2813_v45 = vpop.f32.mrb[21].mxu1  ;;  %v2837_v44 = vmul.f32 0.2, %v3361_v25 }
 0x5f6   : > { %v2836_v15 = vmul.f32 0.2, %v2813_v45 }
 0x5f7   : > { %v2845_v61 = vmax.f32 %v3361_v25, %v2837_v44 }
 0x5f8   : > { %v2844_v46 = vmax.f32 %v2813_v45, %v2836_v15 }
 0x5f9   : > { %v2853_v22 = vmul.f32 1.4, %v2845_v61 }
 0x5fa   : > { %v2852_v16 = vmul.f32 1.4, %v2844_v46 }
 0x60c   : > { %v3364_v53 = vpop.f32.mrb[22].mxu1 }
 0x60d   : > { %v2839_v5 = vmul.f32 0.2, %v3364_v53  ;;  %v2823_v47 = vpop.f32.mrb[23].mxu1 }
 0x60e   : > { %v2838_v56 = vmul.f32 0.2, %v2823_v47 }
 0x60f   : > { %v2847_v54 = vmax.f32 %v3364_v53, %v2839_v5 }
 0x610   : > { %v2846_v17 = vmax.f32 %v2823_v47, %v2838_v56  ;;  %v3378_v21 = vpop.f32.mrb[24].mxu1 }
 0x611   : > { %v2855_v55 = vmul.f32 1.4, %v2847_v54  ;;  %v3004_v19 = vmul.f32 1.4, %v3378_v21  ;;  %v2988_v49 = vpop.f32.mrb[25].mxu1 }
 0x612   : > { %v2854_v36 = vmul.f32 1.4, %v2846_v17  ;;  %v3003_v9 = vmul.f32 1.4, %v2988_v49  ;;  %v3375_v42 = vpop.f32.mrb[36].mxu0 }
 0x613   : > { %v3012_v26 = vadd.f32 %v3004_v19, %v2855_v55  ;;  %v3002_v60 = vmul.f32 1.4, %v3375_v42  ;;  %v2978_v3 = vpop.f32.mrb[37].mxu0 }
 0x614   : > { %v3011_v58 = vadd.f32 %v3003_v9, %v2854_v36  ;;  %v3001_v31 = vmul.f32 1.4, %v2978_v3 }
 0x615   : > { %v3020_v43 = vmul.f32 0.70710677, %v3012_v26  ;;  %v3010_v20 = vadd.f32 %v3002_v60, %v2853_v22 }
 0x616   : > { %v3019_v48 = vmul.f32 0.70710677, %v3011_v58  ;;  %v3009_v35 = vadd.f32 %v3001_v31, %v2852_v16 }
 0x617   : > { %3028 = vst.msk [vmem:[%s5639_s13 + $0x38] sm:$0xff] %vm1429_vm5, %v3020_v43  ;;  %v3018_v57 = vmul.f32 0.70710677, %v3010_v20 }
 0x618   : > { %3027 = vst.msk [vmem:[%s5639_s13 + $0x30] sm:$0xff] %vm1429_vm5, %v3019_v48  ;;  %v3017_v38 = vmul.f32 0.70710677, %v3009_v35 }
 0x619   : > { %3026 = vst.msk [vmem:[%s5639_s13 + $0x28] sm:$0xff] %vm1429_vm5, %v3018_v57 }
 0x61a   : > { %3025 = vst.msk [vmem:[%s5639_s13 + $0x20] sm:$0xff] %vm1429_vm5, %v3017_v38 }
 0x61b   : > { %3615 = shalt.err (!%p3612_p3)
}
 0x61c   : > { %s3616_s7 = scalar_lea.hbm %s5656_s23, 1024  ;;  %s3620_s10 = scalar_lea.hbm %s5715_s5, 2048 }
 0x61d   : > { %p3617_p4 = scmp.ne.s32.totalorder %s5656_s23, %s3616_s7  ;;  %p3621_p9 = scmp.lt.u32.totalorder %s5656_s23, %s5715_s5 }
 0x61e   : > { %p3622_p10 = scmp.lt.u32.totalorder %s3620_s10, %s3616_s7  ;;  %p3624_p12 = scmp.lt.u32.totalorder %s3616_s7, %s5656_s23 }
 0x61f   : > { %p3618_p7 = pnand %p3617_p4, %p3746_p5 }
 0x620   : > { %p3623_p11 = por %p3622_p10, %p3621_p9 }
 0x621   : > { %p3619_p8 = pneg %p3618_p7 }
 0x622   : > { %p3625_p13 = por %p3624_p12, %p3623_p11 }
 0x624   : > { %p3626_p0 = pnand %p3625_p13, %p3619_p8 }
 0x626   : > { %3629 = shalt.err (!%p3626_p0)
}
 0x627   : > { %s3677_s14 = smov 128  }
 0x628   : > { %3429 = dma.vmem_to_hbm [thread:$0]  (%p3746_p5), %s5660_s25, 1024, %s5656_s23, %s5668_s22, %s3677_s14, %s3677_s14, %s3669_s12  }
 0x629 PF: > { %p3435_p1 = scmp.ge.s32.totalorder %s3664_s21, 2  ;;  %s3058_s6 = sand.u32 1, %s3652_s18  }
 0x62a   : > { %s3059_s9 = scalar_lea.sflag [#allocation3], %s3058_s6 }
 0x62b   : > { %p3432_p2 = pnand %p3435_p1, %p3750_p6 }
 0x62d   : > { %3647 = dma.done.wait (!%p3432_p2), %s3059_s9, 1024  }
 0x62e   : > { %3649 = vsyncadd (!%p3432_p2), %s3059_s9, 4294966272  ;;  %p15_p3 = scmp.ge.s32.totalorder %s3733_s24, 4   ;;  %s5745_s18 = smov %s3656_s19 }
 0x62f   : > { %s5746_s19 = smov %s3660_s20  ;;  %s5747_s20 = smov %s3744_s27 }
 0x630   : > { %s5748_s21 = smov %s3733_s24  ;;  %17 = sbr.rel (!%p15_p3) target bundleno = 3 (0x3), region = 75 }
 0x637   :  { %3064 = vsyncpa [#allocation3], 1 }
 0x638   :  { %3066 = vsyncpa [#allocation3 + $0x1], 1 }

</bundles_post_ra>
